<compile_context>
chip_gen: v6e
topology: v6e:2x2x1
jax: 0.10.0
libtpu: 0.0.40
codegen_flags: <defaults>
</compile_context>

<pallas_src>
import jax
import jax.numpy as jnp
import numpy as np
from jax.experimental import pallas as pl
from jax.experimental.pallas import tpu as pltpu

# Model dimensions (consistent with RNNQNetwork(input_size, hidden, output)).
INPUT_SIZE = 16
HIDDEN = 32
OUTPUT = 4
NUM_LAYERS = 4
BATCH = 2
SEQ = 8
FC_DIMS = [(HIDDEN, 128), (128, 256), (256, 128), (128, 64), (64, OUTPUT)]


def _pad8(n):
    return ((n + 7) // 8) * 8


# fc1 / fc3 / fc4 / fc5 share one 128-lane slab: (fc index, padded W^T rows).
_SMALL_FC = [(0, HIDDEN), (2, 256), (3, 128), (4, 128)]
_SMALL_OFFS = []
_off = 0
for _idx, _rows in _SMALL_FC:
    _SMALL_OFFS.append(_off)
    _off += _pad8(_rows + 1)        # W^T rows + 1 bias row, padded to sublanes
_SMALL_TOTAL_ROWS = _off            # 576
_FC2_ROWS = _pad8(128 + 1)          # 136


def _build_kernel(T, Bp, H, num_layers):
    """Fused wavefront LSTM + MLP head kernel for static (T, padded batch, H)."""
    small = list(zip(_SMALL_OFFS, [r for _, r in _SMALL_FC]))

    def kernel(x_ref, lstm_ref, fcs_hbm, fc2_hbm, o_ref,
               fcs_vmem, fc2_vmem, dma_sem):
        # Kick off the FC-weight DMAs now; they complete behind the recurrence.
        cp_small = pltpu.make_async_copy(fcs_hbm, fcs_vmem, dma_sem.at[0])
        cp_fc2 = pltpu.make_async_copy(fc2_hbm, fc2_vmem, dma_sem.at[1])
        cp_small.start()
        cp_fc2.start()

        zeros_bh = jnp.zeros((Bp, H), jnp.float32)
        h = [zeros_bh] * num_layers
        c = [zeros_bh] * num_layers

        # (layer, time) wavefront, fully unrolled (T=8, L=4 are static).
        for d in range(T + num_layers - 1):
            new_h = {}
            new_c = {}
            for l in range(num_layers):
                t = d - l
                if t < 0 or t >= T:
                    continue
                # Input of this step: x_t for layer 0, else layer l-1's hidden
                # at time t (produced on the previous diagonal).
                inp = x_ref[t * Bp:(t + 1) * Bp, :] if l == 0 else h[l - 1]
                # Fused step matmul: [inp | h_{t-1}] @ [W_ih^T ; W_hh^T] + b.
                z = jnp.concatenate([inp, h[l]], axis=1)            # (Bp, 2H)
                w = lstm_ref[l, 0:2 * H, :]                         # (2H, 4H)
                b = lstm_ref[l, 2 * H:2 * H + 1, :]                 # (1, 4H)
                gates = jnp.dot(z, w, preferred_element_type=jnp.float32) + b
                # One full-width sigmoid; g columns were pre-scaled by 2, so
                # tanh(x_g) = 2*sigmoid(2*x_g) - 1 needs no extra EUP tanh.
                s = jax.nn.sigmoid(gates)
                i_g = s[:, 0:H]
                f_g = s[:, H:2 * H]
                g_g = 2.0 * s[:, 2 * H:3 * H] - 1.0
                o_g = s[:, 3 * H:4 * H]
                nc = f_g * c[l] + i_g * g_g
                new_c[l] = nc
                new_h[l] = o_g * jnp.tanh(nc)
            for l in new_h:                 # commit after the whole diagonal
                h[l] = new_h[l]
                c[l] = new_c[l]

        # The MLP head starts here; FC weights must be resident now.
        cp_small.wait()
        cp_fc2.wait()

        def dense(v, ref, w_off, w_rows, relu):
            w = ref[w_off:w_off + w_rows, :]
            bb = ref[w_off + w_rows:w_off + w_rows + 1, :]
            r = jnp.dot(v, w, preferred_element_type=jnp.float32) + bb
            return jnp.maximum(r, 0.0) if relu else r

        out = h[num_layers - 1]                                     # (Bp, H)
        out = dense(out, fcs_vmem, small[0][0], small[0][1], True)  # fc1 -> 128
        out = dense(out, fc2_vmem, 0, 128, True)                    # fc2 -> 256
        out = dense(out, fcs_vmem, small[1][0], small[1][1], True)  # fc3 -> 128
        out = dense(out, fcs_vmem, small[2][0], small[2][1], True)  # fc4 (cols 64: zero)
        out = dense(out, fcs_vmem, small[3][0], small[3][1], False) # fc5 (cols 4: zero)
        o_ref[...] = out.astype(o_ref.dtype)                        # lane-dense store

    return kernel


def rnn_qnetwork_forward(x_btf, params):
    """x_btf: (B, T, input_size) float32, PyTorch batch_first layout."""
    B, T, F_in = x_btf.shape
    H = HIDDEN
    Bp = max(_pad8(B), 8)

    # Time-major, batch zero-padded to full sublanes, features zero-padded to H.
    x = jnp.transpose(x_btf, (1, 0, 2)).astype(jnp.float32)         # (T, B, F_in)
    x = jnp.pad(x, ((0, 0), (0, Bp - B), (0, H - F_in)))
    x = x.reshape(T * Bp, H)

    # LSTM slab: per layer rows [0:H]=W_ih^T (zero-padded for layer 0),
    # [H:2H]=W_hh^T, [2H]=b_ih+b_hh.  g-gate columns [2H:3H] pre-scaled by 2
    # (tanh-via-sigmoid fold; bias columns scaled too).
    g_scale = jnp.ones((1, 4 * H), jnp.float32).at[0, 2 * H:3 * H].set(2.0)
    layers = []
    for (w_ih, w_hh, b_ih, b_hh) in params["lstm"]:
        w_ih_t = jnp.zeros((H, 4 * H), jnp.float32)
        w_ih_t = w_ih_t.at[: w_ih.shape[1], :].set(w_ih.T.astype(jnp.float32))
        slab = jnp.concatenate(
            [w_ih_t,
             w_hh.T.astype(jnp.float32),
             (b_ih + b_hh).reshape(1, 4 * H).astype(jnp.float32)], axis=0)
        layers.append(slab * g_scale)
    lstm_packed = jnp.stack(layers, axis=0)                         # (L, 2H+1, 4H)

    # FC head: fc1/fc3/fc4/fc5 -> one (576,128) slab, fc2 -> one (136,256) slab.
    # Each section is W^T (zero-padded to 128 cols / padded fan-in rows) then a
    # bias row, padded to a multiple of 8 rows so all bias rows stay aligned.
    def packed_wt_bias(idx, rows, cols):
        w, b = params["fc"][idx]
        sec = jnp.zeros((_pad8(rows + 1), cols), jnp.float32)
        sec = sec.at[: w.shape[1], : w.shape[0]].set(w.T.astype(jnp.float32))
        sec = sec.at[rows, : w.shape[0]].set(b.astype(jnp.float32))
        return sec

    fc_small = jnp.concatenate(
        [packed_wt_bias(idx, rows, 128) for idx, rows in _SMALL_FC], axis=0)
    fc2 = packed_wt_bias(1, 128, 256)

    kernel = _build_kernel(T, Bp, H, NUM_LAYERS)
    out = pl.pallas_call(
        kernel,
        out_shape=jax.ShapeDtypeStruct((Bp, 128), jnp.float32),
        in_specs=[
            pl.BlockSpec(memory_space=pltpu.MemorySpace.VMEM),      # x
            pl.BlockSpec(memory_space=pltpu.MemorySpace.VMEM),      # LSTM slab
            pl.BlockSpec(memory_space=pl.ANY),                      # fc small slab (HBM)
            pl.BlockSpec(memory_space=pl.ANY),                      # fc2 slab (HBM)
        ],
        out_specs=pl.BlockSpec(memory_space=pltpu.MemorySpace.VMEM),
        scratch_shapes=[
            pltpu.VMEM((_SMALL_TOTAL_ROWS, 128), jnp.float32),      # fc small landing buf
            pltpu.VMEM((_FC2_ROWS, 256), jnp.float32),              # fc2 landing buf
            pltpu.SemaphoreType.DMA((2,)),
        ],
    )(x, lstm_packed, fc_small, fc2)
    return out[:B, :OUTPUT]


def init_params(key):
    """Deterministic synthetic parameters matching torch.nn.LSTM / nn.Linear shapes."""
    params = {"lstm": [], "fc": []}
    k_lstm = 1.0 / np.sqrt(HIDDEN)
    for l in range(NUM_LAYERS):
        in_dim = INPUT_SIZE if l == 0 else HIDDEN
        key, k1, k2, k3, k4 = jax.random.split(key, 5)
        w_ih = jax.random.uniform(k1, (4 * HIDDEN, in_dim), jnp.float32, -k_lstm, k_lstm)
        w_hh = jax.random.uniform(k2, (4 * HIDDEN, HIDDEN), jnp.float32, -k_lstm, k_lstm)
        b_ih = jax.random.uniform(k3, (4 * HIDDEN,), jnp.float32, -k_lstm, k_lstm)
        b_hh = jax.random.uniform(k4, (4 * HIDDEN,), jnp.float32, -k_lstm, k_lstm)
        params["lstm"].append((w_ih, w_hh, b_ih, b_hh))
    for (fan_in, fan_out) in FC_DIMS:
        key, k1, k2 = jax.random.split(key, 3)
        bound = 1.0 / np.sqrt(fan_in)
        w = jax.random.uniform(k1, (fan_out, fan_in), jnp.float32, -bound, bound)
        b = jax.random.uniform(k2, (fan_out,), jnp.float32, -bound, bound)
        params["fc"].append((w, b))
    return params, key


def reference_forward(x_btf, params):
    """Pure-JAX reference reproducing torch semantics (for correctness check)."""
    B, T, _ = x_btf.shape
    h_seq = x_btf
    H = HIDDEN
    for (w_ih, w_hh, b_ih, b_hh) in params["lstm"]:
        h = jnp.zeros((B, H), jnp.float32)
        c = jnp.zeros((B, H), jnp.float32)
        outs = []
        for t in range(T):
            gates = h_seq[:, t, :] @ w_ih.T + h @ w_hh.T + b_ih + b_hh
            i = jax.nn.sigmoid(gates[:, 0:H])
            f = jax.nn.sigmoid(gates[:, H:2 * H])
            g = jnp.tanh(gates[:, 2 * H:3 * H])
            o = jax.nn.sigmoid(gates[:, 3 * H:4 * H])
            c = f * c + i * g
            h = o * jnp.tanh(c)
            outs.append(h)
        h_seq = jnp.stack(outs, axis=1)
    out = h_seq[:, -1, :]
    for k, (w, b) in enumerate(params["fc"]):
        out = out @ w.T + b
        if k < 4:
            out = jax.nn.relu(out)
    return out


if __name__ == "__main__":
    key = jax.random.PRNGKey(0)
    params, key = init_params(key)
    key, kx = jax.random.split(key)
    x = jax.random.normal(kx, (BATCH, SEQ, INPUT_SIZE), jnp.float32)

    out = jax.block_until_ready(rnn_qnetwork_forward(x, params))
    ref = jax.block_until_ready(reference_forward(x, params))
    np.testing.assert_allclose(np.asarray(out), np.asarray(ref), rtol=1e-4, atol=1e-4)

    print("KERNEL_OK")
</pallas_src>

<mosaic_0001>
module attributes {stable_mosaic.version = 11 : i64} {
  func.func @kernel(%arg0: memref<64x32xf32, #tpu.memory_space<vmem>>, %arg1: memref<4x65x128xf32, #tpu.memory_space<vmem>>, %arg2: memref<576x128xf32, #tpu.memory_space<any>>, %arg3: memref<136x256xf32, #tpu.memory_space<any>>, %arg4: memref<8x128xf32, #tpu.memory_space<vmem>>, %arg5: memref<576x128xf32, #tpu.memory_space<vmem>>, %arg6: memref<136x256xf32, #tpu.memory_space<vmem>>, %arg7: memref<2x!tpu.dma_semaphore, #tpu.memory_space<semaphore_mem>>) attributes {dimension_semantics = [], scalar_prefetch = 0 : i64, scratch_operands = 3 : i64, tpu.core_type = #tpu.core_type<tc>} {
    %c0_i32 = arith.constant 0 : i32
    %0 = tpu.memref_slice %arg7[%c0_i32] : memref<2x!tpu.dma_semaphore, #tpu.memory_space<semaphore_mem>> -> memref<1x!tpu.dma_semaphore, #tpu.memory_space<semaphore_mem>>
    %1 = tpu.memref_squeeze %0 : memref<1x!tpu.dma_semaphore, #tpu.memory_space<semaphore_mem>> -> memref<!tpu.dma_semaphore, #tpu.memory_space<semaphore_mem>>
    tpu.enqueue_dma source(%arg2 : memref<576x128xf32, #tpu.memory_space<any>>) target(%arg5 : memref<576x128xf32, #tpu.memory_space<vmem>>) target_semaphore(%1 : memref<!tpu.dma_semaphore, #tpu.memory_space<semaphore_mem>>)
    %c1_i32 = arith.constant 1 : i32
    %2 = tpu.memref_slice %arg7[%c1_i32] : memref<2x!tpu.dma_semaphore, #tpu.memory_space<semaphore_mem>> -> memref<1x!tpu.dma_semaphore, #tpu.memory_space<semaphore_mem>>
    %3 = tpu.memref_squeeze %2 : memref<1x!tpu.dma_semaphore, #tpu.memory_space<semaphore_mem>> -> memref<!tpu.dma_semaphore, #tpu.memory_space<semaphore_mem>>
    tpu.enqueue_dma source(%arg3 : memref<136x256xf32, #tpu.memory_space<any>>) target(%arg6 : memref<136x256xf32, #tpu.memory_space<vmem>>) target_semaphore(%3 : memref<!tpu.dma_semaphore, #tpu.memory_space<semaphore_mem>>)
    %cst = arith.constant 0.000000e+00 : f32
    %4 = vector.broadcast %cst : f32 to vector<8x32xf32>
    %c0 = arith.constant 0 : index
    %c0_0 = arith.constant 0 : index
    %5 = vector.load %arg0[%c0, %c0_0] : memref<64x32xf32, #tpu.memory_space<vmem>>, vector<8x32xf32>
    %6 = tpu.concatenate %5, %4 in 1 : vector<8x32xf32>, vector<8x32xf32> -> vector<8x64xf32>
    %c0_1 = arith.constant 0 : index
    %c0_2 = arith.constant 0 : index
    %c0_3 = arith.constant 0 : index
    %7 = vector.load %arg1[%c0_1, %c0_2, %c0_3] : memref<4x65x128xf32, #tpu.memory_space<vmem>>, vector<1x64x128xf32>
    %8 = vector.shape_cast %7 : vector<1x64x128xf32> to vector<64x128xf32>
    %c0_4 = arith.constant 0 : index
    %c64 = arith.constant 64 : index
    %c0_5 = arith.constant 0 : index
    %9 = vector.load %arg1[%c0_4, %c64, %c0_5] : memref<4x65x128xf32, #tpu.memory_space<vmem>>, vector<1x1x128xf32>
    %10 = vector.shape_cast %9 : vector<1x1x128xf32> to vector<1x128xf32>
    %cst_6 = arith.constant dense<0.000000e+00> : vector<8x128xf32>
    %11 = tpu.matmul %6, %8, %cst_6 {dimension_numbers = #tpu.dot_dimension_numbers<[1], [0], [0], [1], [0, 0, 1, 1], [], []>} : vector<8x64xf32>, vector<64x128xf32>, vector<8x128xf32> -> vector<8x128xf32>
    %12 = vector.broadcast %10 : vector<1x128xf32> to vector<8x128xf32>
    %13 = arith.addf %11, %12 : vector<8x128xf32>
    %14 = arith.negf %13 : vector<8x128xf32>
    %15 = math.exp %14 : vector<8x128xf32>
    %cst_7 = arith.constant 1.000000e+00 : f32
    %16 = vector.broadcast %cst_7 : f32 to vector<8x128xf32>
    %17 = arith.addf %16, %15 : vector<8x128xf32>
    %18 = arith.divf %16, %17 : vector<8x128xf32>
    %19 = vector.extract_strided_slice %18 {offsets = [0, 0], sizes = [8, 32], strides = [1, 1]} : vector<8x128xf32> to vector<8x32xf32>
    %20 = vector.extract_strided_slice %18 {offsets = [0, 32], sizes = [8, 32], strides = [1, 1]} : vector<8x128xf32> to vector<8x32xf32>
    %21 = vector.extract_strided_slice %18 {offsets = [0, 64], sizes = [8, 32], strides = [1, 1]} : vector<8x128xf32> to vector<8x32xf32>
    %cst_8 = arith.constant 2.000000e+00 : f32
    %22 = vector.broadcast %cst_8 : f32 to vector<8x32xf32>
    %23 = arith.mulf %22, %21 : vector<8x32xf32>
    %cst_9 = arith.constant 1.000000e+00 : f32
    %24 = vector.broadcast %cst_9 : f32 to vector<8x32xf32>
    %25 = arith.subf %23, %24 : vector<8x32xf32>
    %26 = vector.extract_strided_slice %18 {offsets = [0, 96], sizes = [8, 32], strides = [1, 1]} : vector<8x128xf32> to vector<8x32xf32>
    %27 = arith.mulf %20, %4 : vector<8x32xf32>
    %28 = arith.mulf %19, %25 : vector<8x32xf32>
    %29 = arith.addf %27, %28 : vector<8x32xf32>
    %30 = math.tanh %29 : vector<8x32xf32>
    %31 = arith.mulf %26, %30 : vector<8x32xf32>
    %c8 = arith.constant 8 : index
    %c0_10 = arith.constant 0 : index
    %32 = vector.load %arg0[%c8, %c0_10] : memref<64x32xf32, #tpu.memory_space<vmem>>, vector<8x32xf32>
    %33 = tpu.concatenate %32, %31 in 1 : vector<8x32xf32>, vector<8x32xf32> -> vector<8x64xf32>
    %c0_11 = arith.constant 0 : index
    %c0_12 = arith.constant 0 : index
    %c0_13 = arith.constant 0 : index
    %34 = vector.load %arg1[%c0_11, %c0_12, %c0_13] : memref<4x65x128xf32, #tpu.memory_space<vmem>>, vector<1x64x128xf32>
    %35 = vector.shape_cast %34 : vector<1x64x128xf32> to vector<64x128xf32>
    %c0_14 = arith.constant 0 : index
    %c64_15 = arith.constant 64 : index
    %c0_16 = arith.constant 0 : index
    %36 = vector.load %arg1[%c0_14, %c64_15, %c0_16] : memref<4x65x128xf32, #tpu.memory_space<vmem>>, vector<1x1x128xf32>
    %37 = vector.shape_cast %36 : vector<1x1x128xf32> to vector<1x128xf32>
    %cst_17 = arith.constant dense<0.000000e+00> : vector<8x128xf32>
    %38 = tpu.matmul %33, %35, %cst_17 {dimension_numbers = #tpu.dot_dimension_numbers<[1], [0], [0], [1], [0, 0, 1, 1], [], []>} : vector<8x64xf32>, vector<64x128xf32>, vector<8x128xf32> -> vector<8x128xf32>
    %39 = vector.broadcast %37 : vector<1x128xf32> to vector<8x128xf32>
    %40 = arith.addf %38, %39 : vector<8x128xf32>
    %41 = arith.negf %40 : vector<8x128xf32>
    %42 = math.exp %41 : vector<8x128xf32>
    %cst_18 = arith.constant 1.000000e+00 : f32
    %43 = vector.broadcast %cst_18 : f32 to vector<8x128xf32>
    %44 = arith.addf %43, %42 : vector<8x128xf32>
    %45 = arith.divf %43, %44 : vector<8x128xf32>
    %46 = vector.extract_strided_slice %45 {offsets = [0, 0], sizes = [8, 32], strides = [1, 1]} : vector<8x128xf32> to vector<8x32xf32>
    %47 = vector.extract_strided_slice %45 {offsets = [0, 32], sizes = [8, 32], strides = [1, 1]} : vector<8x128xf32> to vector<8x32xf32>
    %48 = vector.extract_strided_slice %45 {offsets = [0, 64], sizes = [8, 32], strides = [1, 1]} : vector<8x128xf32> to vector<8x32xf32>
    %cst_19 = arith.constant 2.000000e+00 : f32
    %49 = vector.broadcast %cst_19 : f32 to vector<8x32xf32>
    %50 = arith.mulf %49, %48 : vector<8x32xf32>
    %cst_20 = arith.constant 1.000000e+00 : f32
    %51 = vector.broadcast %cst_20 : f32 to vector<8x32xf32>
    %52 = arith.subf %50, %51 : vector<8x32xf32>
    %53 = vector.extract_strided_slice %45 {offsets = [0, 96], sizes = [8, 32], strides = [1, 1]} : vector<8x128xf32> to vector<8x32xf32>
    %54 = arith.mulf %47, %29 : vector<8x32xf32>
    %55 = arith.mulf %46, %52 : vector<8x32xf32>
    %56 = arith.addf %54, %55 : vector<8x32xf32>
    %57 = math.tanh %56 : vector<8x32xf32>
    %58 = arith.mulf %53, %57 : vector<8x32xf32>
    %59 = tpu.concatenate %31, %4 in 1 : vector<8x32xf32>, vector<8x32xf32> -> vector<8x64xf32>
    %c1 = arith.constant 1 : index
    %c0_21 = arith.constant 0 : index
    %c0_22 = arith.constant 0 : index
    %60 = vector.load %arg1[%c1, %c0_21, %c0_22] : memref<4x65x128xf32, #tpu.memory_space<vmem>>, vector<1x64x128xf32>
    %61 = vector.shape_cast %60 : vector<1x64x128xf32> to vector<64x128xf32>
    %c1_23 = arith.constant 1 : index
    %c64_24 = arith.constant 64 : index
    %c0_25 = arith.constant 0 : index
    %62 = vector.load %arg1[%c1_23, %c64_24, %c0_25] : memref<4x65x128xf32, #tpu.memory_space<vmem>>, vector<1x1x128xf32>
    %63 = vector.shape_cast %62 : vector<1x1x128xf32> to vector<1x128xf32>
    %cst_26 = arith.constant dense<0.000000e+00> : vector<8x128xf32>
    %64 = tpu.matmul %59, %61, %cst_26 {dimension_numbers = #tpu.dot_dimension_numbers<[1], [0], [0], [1], [0, 0, 1, 1], [], []>} : vector<8x64xf32>, vector<64x128xf32>, vector<8x128xf32> -> vector<8x128xf32>
    %65 = vector.broadcast %63 : vector<1x128xf32> to vector<8x128xf32>
    %66 = arith.addf %64, %65 : vector<8x128xf32>
    %67 = arith.negf %66 : vector<8x128xf32>
    %68 = math.exp %67 : vector<8x128xf32>
    %cst_27 = arith.constant 1.000000e+00 : f32
    %69 = vector.broadcast %cst_27 : f32 to vector<8x128xf32>
    %70 = arith.addf %69, %68 : vector<8x128xf32>
    %71 = arith.divf %69, %70 : vector<8x128xf32>
    %72 = vector.extract_strided_slice %71 {offsets = [0, 0], sizes = [8, 32], strides = [1, 1]} : vector<8x128xf32> to vector<8x32xf32>
    %73 = vector.extract_strided_slice %71 {offsets = [0, 32], sizes = [8, 32], strides = [1, 1]} : vector<8x128xf32> to vector<8x32xf32>
    %74 = vector.extract_strided_slice %71 {offsets = [0, 64], sizes = [8, 32], strides = [1, 1]} : vector<8x128xf32> to vector<8x32xf32>
    %cst_28 = arith.constant 2.000000e+00 : f32
    %75 = vector.broadcast %cst_28 : f32 to vector<8x32xf32>
    %76 = arith.mulf %75, %74 : vector<8x32xf32>
    %cst_29 = arith.constant 1.000000e+00 : f32
    %77 = vector.broadcast %cst_29 : f32 to vector<8x32xf32>
    %78 = arith.subf %76, %77 : vector<8x32xf32>
    %79 = vector.extract_strided_slice %71 {offsets = [0, 96], sizes = [8, 32], strides = [1, 1]} : vector<8x128xf32> to vector<8x32xf32>
    %80 = arith.mulf %73, %4 : vector<8x32xf32>
    %81 = arith.mulf %72, %78 : vector<8x32xf32>
    %82 = arith.addf %80, %81 : vector<8x32xf32>
    %83 = math.tanh %82 : vector<8x32xf32>
    %84 = arith.mulf %79, %83 : vector<8x32xf32>
    %c16 = arith.constant 16 : index
    %c0_30 = arith.constant 0 : index
    %85 = vector.load %arg0[%c16, %c0_30] : memref<64x32xf32, #tpu.memory_space<vmem>>, vector<8x32xf32>
    %86 = tpu.concatenate %85, %58 in 1 : vector<8x32xf32>, vector<8x32xf32> -> vector<8x64xf32>
    %c0_31 = arith.constant 0 : index
    %c0_32 = arith.constant 0 : index
    %c0_33 = arith.constant 0 : index
    %87 = vector.load %arg1[%c0_31, %c0_32, %c0_33] : memref<4x65x128xf32, #tpu.memory_space<vmem>>, vector<1x64x128xf32>
    %88 = vector.shape_cast %87 : vector<1x64x128xf32> to vector<64x128xf32>
    %c0_34 = arith.constant 0 : index
    %c64_35 = arith.constant 64 : index
    %c0_36 = arith.constant 0 : index
    %89 = vector.load %arg1[%c0_34, %c64_35, %c0_36] : memref<4x65x128xf32, #tpu.memory_space<vmem>>, vector<1x1x128xf32>
    %90 = vector.shape_cast %89 : vector<1x1x128xf32> to vector<1x128xf32>
    %cst_37 = arith.constant dense<0.000000e+00> : vector<8x128xf32>
    %91 = tpu.matmul %86, %88, %cst_37 {dimension_numbers = #tpu.dot_dimension_numbers<[1], [0], [0], [1], [0, 0, 1, 1], [], []>} : vector<8x64xf32>, vector<64x128xf32>, vector<8x128xf32> -> vector<8x128xf32>
    %92 = vector.broadcast %90 : vector<1x128xf32> to vector<8x128xf32>
    %93 = arith.addf %91, %92 : vector<8x128xf32>
    %94 = arith.negf %93 : vector<8x128xf32>
    %95 = math.exp %94 : vector<8x128xf32>
    %cst_38 = arith.constant 1.000000e+00 : f32
    %96 = vector.broadcast %cst_38 : f32 to vector<8x128xf32>
    %97 = arith.addf %96, %95 : vector<8x128xf32>
    %98 = arith.divf %96, %97 : vector<8x128xf32>
    %99 = vector.extract_strided_slice %98 {offsets = [0, 0], sizes = [8, 32], strides = [1, 1]} : vector<8x128xf32> to vector<8x32xf32>
    %100 = vector.extract_strided_slice %98 {offsets = [0, 32], sizes = [8, 32], strides = [1, 1]} : vector<8x128xf32> to vector<8x32xf32>
    %101 = vector.extract_strided_slice %98 {offsets = [0, 64], sizes = [8, 32], strides = [1, 1]} : vector<8x128xf32> to vector<8x32xf32>
    %cst_39 = arith.constant 2.000000e+00 : f32
    %102 = vector.broadcast %cst_39 : f32 to vector<8x32xf32>
    %103 = arith.mulf %102, %101 : vector<8x32xf32>
    %cst_40 = arith.constant 1.000000e+00 : f32
    %104 = vector.broadcast %cst_40 : f32 to vector<8x32xf32>
    %105 = arith.subf %103, %104 : vector<8x32xf32>
    %106 = vector.extract_strided_slice %98 {offsets = [0, 96], sizes = [8, 32], strides = [1, 1]} : vector<8x128xf32> to vector<8x32xf32>
    %107 = arith.mulf %100, %56 : vector<8x32xf32>
    %108 = arith.mulf %99, %105 : vector<8x32xf32>
    %109 = arith.addf %107, %108 : vector<8x32xf32>
    %110 = math.tanh %109 : vector<8x32xf32>
    %111 = arith.mulf %106, %110 : vector<8x32xf32>
    %112 = tpu.concatenate %58, %84 in 1 : vector<8x32xf32>, vector<8x32xf32> -> vector<8x64xf32>
    %c1_41 = arith.constant 1 : index
    %c0_42 = arith.constant 0 : index
    %c0_43 = arith.constant 0 : index
    %113 = vector.load %arg1[%c1_41, %c0_42, %c0_43] : memref<4x65x128xf32, #tpu.memory_space<vmem>>, vector<1x64x128xf32>
    %114 = vector.shape_cast %113 : vector<1x64x128xf32> to vector<64x128xf32>
    %c1_44 = arith.constant 1 : index
    %c64_45 = arith.constant 64 : index
    %c0_46 = arith.constant 0 : index
    %115 = vector.load %arg1[%c1_44, %c64_45, %c0_46] : memref<4x65x128xf32, #tpu.memory_space<vmem>>, vector<1x1x128xf32>
    %116 = vector.shape_cast %115 : vector<1x1x128xf32> to vector<1x128xf32>
    %cst_47 = arith.constant dense<0.000000e+00> : vector<8x128xf32>
    %117 = tpu.matmul %112, %114, %cst_47 {dimension_numbers = #tpu.dot_dimension_numbers<[1], [0], [0], [1], [0, 0, 1, 1], [], []>} : vector<8x64xf32>, vector<64x128xf32>, vector<8x128xf32> -> vector<8x128xf32>
    %118 = vector.broadcast %116 : vector<1x128xf32> to vector<8x128xf32>
    %119 = arith.addf %117, %118 : vector<8x128xf32>
    %120 = arith.negf %119 : vector<8x128xf32>
    %121 = math.exp %120 : vector<8x128xf32>
    %cst_48 = arith.constant 1.000000e+00 : f32
    %122 = vector.broadcast %cst_48 : f32 to vector<8x128xf32>
    %123 = arith.addf %122, %121 : vector<8x128xf32>
    %124 = arith.divf %122, %123 : vector<8x128xf32>
    %125 = vector.extract_strided_slice %124 {offsets = [0, 0], sizes = [8, 32], strides = [1, 1]} : vector<8x128xf32> to vector<8x32xf32>
    %126 = vector.extract_strided_slice %124 {offsets = [0, 32], sizes = [8, 32], strides = [1, 1]} : vector<8x128xf32> to vector<8x32xf32>
    %127 = vector.extract_strided_slice %124 {offsets = [0, 64], sizes = [8, 32], strides = [1, 1]} : vector<8x128xf32> to vector<8x32xf32>
    %cst_49 = arith.constant 2.000000e+00 : f32
    %128 = vector.broadcast %cst_49 : f32 to vector<8x32xf32>
    %129 = arith.mulf %128, %127 : vector<8x32xf32>
    %cst_50 = arith.constant 1.000000e+00 : f32
    %130 = vector.broadcast %cst_50 : f32 to vector<8x32xf32>
    %131 = arith.subf %129, %130 : vector<8x32xf32>
    %132 = vector.extract_strided_slice %124 {offsets = [0, 96], sizes = [8, 32], strides = [1, 1]} : vector<8x128xf32> to vector<8x32xf32>
    %133 = arith.mulf %126, %82 : vector<8x32xf32>
    %134 = arith.mulf %125, %131 : vector<8x32xf32>
    %135 = arith.addf %133, %134 : vector<8x32xf32>
    %136 = math.tanh %135 : vector<8x32xf32>
    %137 = arith.mulf %132, %136 : vector<8x32xf32>
    %138 = tpu.concatenate %84, %4 in 1 : vector<8x32xf32>, vector<8x32xf32> -> vector<8x64xf32>
    %c2 = arith.constant 2 : index
    %c0_51 = arith.constant 0 : index
    %c0_52 = arith.constant 0 : index
    %139 = vector.load %arg1[%c2, %c0_51, %c0_52] : memref<4x65x128xf32, #tpu.memory_space<vmem>>, vector<1x64x128xf32>
    %140 = vector.shape_cast %139 : vector<1x64x128xf32> to vector<64x128xf32>
    %c2_53 = arith.constant 2 : index
    %c64_54 = arith.constant 64 : index
    %c0_55 = arith.constant 0 : index
    %141 = vector.load %arg1[%c2_53, %c64_54, %c0_55] : memref<4x65x128xf32, #tpu.memory_space<vmem>>, vector<1x1x128xf32>
    %142 = vector.shape_cast %141 : vector<1x1x128xf32> to vector<1x128xf32>
    %cst_56 = arith.constant dense<0.000000e+00> : vector<8x128xf32>
    %143 = tpu.matmul %138, %140, %cst_56 {dimension_numbers = #tpu.dot_dimension_numbers<[1], [0], [0], [1], [0, 0, 1, 1], [], []>} : vector<8x64xf32>, vector<64x128xf32>, vector<8x128xf32> -> vector<8x128xf32>
    %144 = vector.broadcast %142 : vector<1x128xf32> to vector<8x128xf32>
    %145 = arith.addf %143, %144 : vector<8x128xf32>
    %146 = arith.negf %145 : vector<8x128xf32>
    %147 = math.exp %146 : vector<8x128xf32>
    %cst_57 = arith.constant 1.000000e+00 : f32
    %148 = vector.broadcast %cst_57 : f32 to vector<8x128xf32>
    %149 = arith.addf %148, %147 : vector<8x128xf32>
    %150 = arith.divf %148, %149 : vector<8x128xf32>
    %151 = vector.extract_strided_slice %150 {offsets = [0, 0], sizes = [8, 32], strides = [1, 1]} : vector<8x128xf32> to vector<8x32xf32>
    %152 = vector.extract_strided_slice %150 {offsets = [0, 32], sizes = [8, 32], strides = [1, 1]} : vector<8x128xf32> to vector<8x32xf32>
    %153 = vector.extract_strided_slice %150 {offsets = [0, 64], sizes = [8, 32], strides = [1, 1]} : vector<8x128xf32> to vector<8x32xf32>
    %cst_58 = arith.constant 2.000000e+00 : f32
    %154 = vector.broadcast %cst_58 : f32 to vector<8x32xf32>
    %155 = arith.mulf %154, %153 : vector<8x32xf32>
    %cst_59 = arith.constant 1.000000e+00 : f32
    %156 = vector.broadcast %cst_59 : f32 to vector<8x32xf32>
    %157 = arith.subf %155, %156 : vector<8x32xf32>
    %158 = vector.extract_strided_slice %150 {offsets = [0, 96], sizes = [8, 32], strides = [1, 1]} : vector<8x128xf32> to vector<8x32xf32>
    %159 = arith.mulf %152, %4 : vector<8x32xf32>
    %160 = arith.mulf %151, %157 : vector<8x32xf32>
    %161 = arith.addf %159, %160 : vector<8x32xf32>
    %162 = math.tanh %161 : vector<8x32xf32>
    %163 = arith.mulf %158, %162 : vector<8x32xf32>
    %c24 = arith.constant 24 : index
    %c0_60 = arith.constant 0 : index
    %164 = vector.load %arg0[%c24, %c0_60] : memref<64x32xf32, #tpu.memory_space<vmem>>, vector<8x32xf32>
    %165 = tpu.concatenate %164, %111 in 1 : vector<8x32xf32>, vector<8x32xf32> -> vector<8x64xf32>
    %c0_61 = arith.constant 0 : index
    %c0_62 = arith.constant 0 : index
    %c0_63 = arith.constant 0 : index
    %166 = vector.load %arg1[%c0_61, %c0_62, %c0_63] : memref<4x65x128xf32, #tpu.memory_space<vmem>>, vector<1x64x128xf32>
    %167 = vector.shape_cast %166 : vector<1x64x128xf32> to vector<64x128xf32>
    %c0_64 = arith.constant 0 : index
    %c64_65 = arith.constant 64 : index
    %c0_66 = arith.constant 0 : index
    %168 = vector.load %arg1[%c0_64, %c64_65, %c0_66] : memref<4x65x128xf32, #tpu.memory_space<vmem>>, vector<1x1x128xf32>
    %169 = vector.shape_cast %168 : vector<1x1x128xf32> to vector<1x128xf32>
    %cst_67 = arith.constant dense<0.000000e+00> : vector<8x128xf32>
    %170 = tpu.matmul %165, %167, %cst_67 {dimension_numbers = #tpu.dot_dimension_numbers<[1], [0], [0], [1], [0, 0, 1, 1], [], []>} : vector<8x64xf32>, vector<64x128xf32>, vector<8x128xf32> -> vector<8x128xf32>
    %171 = vector.broadcast %169 : vector<1x128xf32> to vector<8x128xf32>
    %172 = arith.addf %170, %171 : vector<8x128xf32>
    %173 = arith.negf %172 : vector<8x128xf32>
    %174 = math.exp %173 : vector<8x128xf32>
    %cst_68 = arith.constant 1.000000e+00 : f32
    %175 = vector.broadcast %cst_68 : f32 to vector<8x128xf32>
    %176 = arith.addf %175, %174 : vector<8x128xf32>
    %177 = arith.divf %175, %176 : vector<8x128xf32>
    %178 = vector.extract_strided_slice %177 {offsets = [0, 0], sizes = [8, 32], strides = [1, 1]} : vector<8x128xf32> to vector<8x32xf32>
    %179 = vector.extract_strided_slice %177 {offsets = [0, 32], sizes = [8, 32], strides = [1, 1]} : vector<8x128xf32> to vector<8x32xf32>
    %180 = vector.extract_strided_slice %177 {offsets = [0, 64], sizes = [8, 32], strides = [1, 1]} : vector<8x128xf32> to vector<8x32xf32>
    %cst_69 = arith.constant 2.000000e+00 : f32
    %181 = vector.broadcast %cst_69 : f32 to vector<8x32xf32>
    %182 = arith.mulf %181, %180 : vector<8x32xf32>
    %cst_70 = arith.constant 1.000000e+00 : f32
    %183 = vector.broadcast %cst_70 : f32 to vector<8x32xf32>
    %184 = arith.subf %182, %183 : vector<8x32xf32>
    %185 = vector.extract_strided_slice %177 {offsets = [0, 96], sizes = [8, 32], strides = [1, 1]} : vector<8x128xf32> to vector<8x32xf32>
    %186 = arith.mulf %179, %109 : vector<8x32xf32>
    %187 = arith.mulf %178, %184 : vector<8x32xf32>
    %188 = arith.addf %186, %187 : vector<8x32xf32>
    %189 = math.tanh %188 : vector<8x32xf32>
    %190 = arith.mulf %185, %189 : vector<8x32xf32>
    %191 = tpu.concatenate %111, %137 in 1 : vector<8x32xf32>, vector<8x32xf32> -> vector<8x64xf32>
    %c1_71 = arith.constant 1 : index
    %c0_72 = arith.constant 0 : index
    %c0_73 = arith.constant 0 : index
    %192 = vector.load %arg1[%c1_71, %c0_72, %c0_73] : memref<4x65x128xf32, #tpu.memory_space<vmem>>, vector<1x64x128xf32>
    %193 = vector.shape_cast %192 : vector<1x64x128xf32> to vector<64x128xf32>
    %c1_74 = arith.constant 1 : index
    %c64_75 = arith.constant 64 : index
    %c0_76 = arith.constant 0 : index
    %194 = vector.load %arg1[%c1_74, %c64_75, %c0_76] : memref<4x65x128xf32, #tpu.memory_space<vmem>>, vector<1x1x128xf32>
    %195 = vector.shape_cast %194 : vector<1x1x128xf32> to vector<1x128xf32>
    %cst_77 = arith.constant dense<0.000000e+00> : vector<8x128xf32>
    %196 = tpu.matmul %191, %193, %cst_77 {dimension_numbers = #tpu.dot_dimension_numbers<[1], [0], [0], [1], [0, 0, 1, 1], [], []>} : vector<8x64xf32>, vector<64x128xf32>, vector<8x128xf32> -> vector<8x128xf32>
    %197 = vector.broadcast %195 : vector<1x128xf32> to vector<8x128xf32>
    %198 = arith.addf %196, %197 : vector<8x128xf32>
    %199 = arith.negf %198 : vector<8x128xf32>
    %200 = math.exp %199 : vector<8x128xf32>
    %cst_78 = arith.constant 1.000000e+00 : f32
    %201 = vector.broadcast %cst_78 : f32 to vector<8x128xf32>
    %202 = arith.addf %201, %200 : vector<8x128xf32>
    %203 = arith.divf %201, %202 : vector<8x128xf32>
    %204 = vector.extract_strided_slice %203 {offsets = [0, 0], sizes = [8, 32], strides = [1, 1]} : vector<8x128xf32> to vector<8x32xf32>
    %205 = vector.extract_strided_slice %203 {offsets = [0, 32], sizes = [8, 32], strides = [1, 1]} : vector<8x128xf32> to vector<8x32xf32>
    %206 = vector.extract_strided_slice %203 {offsets = [0, 64], sizes = [8, 32], strides = [1, 1]} : vector<8x128xf32> to vector<8x32xf32>
    %cst_79 = arith.constant 2.000000e+00 : f32
    %207 = vector.broadcast %cst_79 : f32 to vector<8x32xf32>
    %208 = arith.mulf %207, %206 : vector<8x32xf32>
    %cst_80 = arith.constant 1.000000e+00 : f32
    %209 = vector.broadcast %cst_80 : f32 to vector<8x32xf32>
    %210 = arith.subf %208, %209 : vector<8x32xf32>
    %211 = vector.extract_strided_slice %203 {offsets = [0, 96], sizes = [8, 32], strides = [1, 1]} : vector<8x128xf32> to vector<8x32xf32>
    %212 = arith.mulf %205, %135 : vector<8x32xf32>
    %213 = arith.mulf %204, %210 : vector<8x32xf32>
    %214 = arith.addf %212, %213 : vector<8x32xf32>
    %215 = math.tanh %214 : vector<8x32xf32>
    %216 = arith.mulf %211, %215 : vector<8x32xf32>
    %217 = tpu.concatenate %137, %163 in 1 : vector<8x32xf32>, vector<8x32xf32> -> vector<8x64xf32>
    %c2_81 = arith.constant 2 : index
    %c0_82 = arith.constant 0 : index
    %c0_83 = arith.constant 0 : index
    %218 = vector.load %arg1[%c2_81, %c0_82, %c0_83] : memref<4x65x128xf32, #tpu.memory_space<vmem>>, vector<1x64x128xf32>
    %219 = vector.shape_cast %218 : vector<1x64x128xf32> to vector<64x128xf32>
    %c2_84 = arith.constant 2 : index
    %c64_85 = arith.constant 64 : index
    %c0_86 = arith.constant 0 : index
    %220 = vector.load %arg1[%c2_84, %c64_85, %c0_86] : memref<4x65x128xf32, #tpu.memory_space<vmem>>, vector<1x1x128xf32>
    %221 = vector.shape_cast %220 : vector<1x1x128xf32> to vector<1x128xf32>
    %cst_87 = arith.constant dense<0.000000e+00> : vector<8x128xf32>
    %222 = tpu.matmul %217, %219, %cst_87 {dimension_numbers = #tpu.dot_dimension_numbers<[1], [0], [0], [1], [0, 0, 1, 1], [], []>} : vector<8x64xf32>, vector<64x128xf32>, vector<8x128xf32> -> vector<8x128xf32>
    %223 = vector.broadcast %221 : vector<1x128xf32> to vector<8x128xf32>
    %224 = arith.addf %222, %223 : vector<8x128xf32>
    %225 = arith.negf %224 : vector<8x128xf32>
    %226 = math.exp %225 : vector<8x128xf32>
    %cst_88 = arith.constant 1.000000e+00 : f32
    %227 = vector.broadcast %cst_88 : f32 to vector<8x128xf32>
    %228 = arith.addf %227, %226 : vector<8x128xf32>
    %229 = arith.divf %227, %228 : vector<8x128xf32>
    %230 = vector.extract_strided_slice %229 {offsets = [0, 0], sizes = [8, 32], strides = [1, 1]} : vector<8x128xf32> to vector<8x32xf32>
    %231 = vector.extract_strided_slice %229 {offsets = [0, 32], sizes = [8, 32], strides = [1, 1]} : vector<8x128xf32> to vector<8x32xf32>
    %232 = vector.extract_strided_slice %229 {offsets = [0, 64], sizes = [8, 32], strides = [1, 1]} : vector<8x128xf32> to vector<8x32xf32>
    %cst_89 = arith.constant 2.000000e+00 : f32
    %233 = vector.broadcast %cst_89 : f32 to vector<8x32xf32>
    %234 = arith.mulf %233, %232 : vector<8x32xf32>
    %cst_90 = arith.constant 1.000000e+00 : f32
    %235 = vector.broadcast %cst_90 : f32 to vector<8x32xf32>
    %236 = arith.subf %234, %235 : vector<8x32xf32>
    %237 = vector.extract_strided_slice %229 {offsets = [0, 96], sizes = [8, 32], strides = [1, 1]} : vector<8x128xf32> to vector<8x32xf32>
    %238 = arith.mulf %231, %161 : vector<8x32xf32>
    %239 = arith.mulf %230, %236 : vector<8x32xf32>
    %240 = arith.addf %238, %239 : vector<8x32xf32>
    %241 = math.tanh %240 : vector<8x32xf32>
    %242 = arith.mulf %237, %241 : vector<8x32xf32>
    %243 = tpu.concatenate %163, %4 in 1 : vector<8x32xf32>, vector<8x32xf32> -> vector<8x64xf32>
    %c3 = arith.constant 3 : index
    %c0_91 = arith.constant 0 : index
    %c0_92 = arith.constant 0 : index
    %244 = vector.load %arg1[%c3, %c0_91, %c0_92] : memref<4x65x128xf32, #tpu.memory_space<vmem>>, vector<1x64x128xf32>
    %245 = vector.shape_cast %244 : vector<1x64x128xf32> to vector<64x128xf32>
    %c3_93 = arith.constant 3 : index
    %c64_94 = arith.constant 64 : index
    %c0_95 = arith.constant 0 : index
    %246 = vector.load %arg1[%c3_93, %c64_94, %c0_95] : memref<4x65x128xf32, #tpu.memory_space<vmem>>, vector<1x1x128xf32>
    %247 = vector.shape_cast %246 : vector<1x1x128xf32> to vector<1x128xf32>
    %cst_96 = arith.constant dense<0.000000e+00> : vector<8x128xf32>
    %248 = tpu.matmul %243, %245, %cst_96 {dimension_numbers = #tpu.dot_dimension_numbers<[1], [0], [0], [1], [0, 0, 1, 1], [], []>} : vector<8x64xf32>, vector<64x128xf32>, vector<8x128xf32> -> vector<8x128xf32>
    %249 = vector.broadcast %247 : vector<1x128xf32> to vector<8x128xf32>
    %250 = arith.addf %248, %249 : vector<8x128xf32>
    %251 = arith.negf %250 : vector<8x128xf32>
    %252 = math.exp %251 : vector<8x128xf32>
    %cst_97 = arith.constant 1.000000e+00 : f32
    %253 = vector.broadcast %cst_97 : f32 to vector<8x128xf32>
    %254 = arith.addf %253, %252 : vector<8x128xf32>
    %255 = arith.divf %253, %254 : vector<8x128xf32>
    %256 = vector.extract_strided_slice %255 {offsets = [0, 0], sizes = [8, 32], strides = [1, 1]} : vector<8x128xf32> to vector<8x32xf32>
    %257 = vector.extract_strided_slice %255 {offsets = [0, 32], sizes = [8, 32], strides = [1, 1]} : vector<8x128xf32> to vector<8x32xf32>
    %258 = vector.extract_strided_slice %255 {offsets = [0, 64], sizes = [8, 32], strides = [1, 1]} : vector<8x128xf32> to vector<8x32xf32>
    %cst_98 = arith.constant 2.000000e+00 : f32
    %259 = vector.broadcast %cst_98 : f32 to vector<8x32xf32>
    %260 = arith.mulf %259, %258 : vector<8x32xf32>
    %cst_99 = arith.constant 1.000000e+00 : f32
    %261 = vector.broadcast %cst_99 : f32 to vector<8x32xf32>
    %262 = arith.subf %260, %261 : vector<8x32xf32>
    %263 = vector.extract_strided_slice %255 {offsets = [0, 96], sizes = [8, 32], strides = [1, 1]} : vector<8x128xf32> to vector<8x32xf32>
    %264 = arith.mulf %257, %4 : vector<8x32xf32>
    %265 = arith.mulf %256, %262 : vector<8x32xf32>
    %266 = arith.addf %264, %265 : vector<8x32xf32>
    %267 = math.tanh %266 : vector<8x32xf32>
    %268 = arith.mulf %263, %267 : vector<8x32xf32>
    %c32 = arith.constant 32 : index
    %c0_100 = arith.constant 0 : index
    %269 = vector.load %arg0[%c32, %c0_100] : memref<64x32xf32, #tpu.memory_space<vmem>>, vector<8x32xf32>
    %270 = tpu.concatenate %269, %190 in 1 : vector<8x32xf32>, vector<8x32xf32> -> vector<8x64xf32>
    %c0_101 = arith.constant 0 : index
    %c0_102 = arith.constant 0 : index
    %c0_103 = arith.constant 0 : index
    %271 = vector.load %arg1[%c0_101, %c0_102, %c0_103] : memref<4x65x128xf32, #tpu.memory_space<vmem>>, vector<1x64x128xf32>
    %272 = vector.shape_cast %271 : vector<1x64x128xf32> to vector<64x128xf32>
    %c0_104 = arith.constant 0 : index
    %c64_105 = arith.constant 64 : index
    %c0_106 = arith.constant 0 : index
    %273 = vector.load %arg1[%c0_104, %c64_105, %c0_106] : memref<4x65x128xf32, #tpu.memory_space<vmem>>, vector<1x1x128xf32>
    %274 = vector.shape_cast %273 : vector<1x1x128xf32> to vector<1x128xf32>
    %cst_107 = arith.constant dense<0.000000e+00> : vector<8x128xf32>
    %275 = tpu.matmul %270, %272, %cst_107 {dimension_numbers = #tpu.dot_dimension_numbers<[1], [0], [0], [1], [0, 0, 1, 1], [], []>} : vector<8x64xf32>, vector<64x128xf32>, vector<8x128xf32> -> vector<8x128xf32>
    %276 = vector.broadcast %274 : vector<1x128xf32> to vector<8x128xf32>
    %277 = arith.addf %275, %276 : vector<8x128xf32>
    %278 = arith.negf %277 : vector<8x128xf32>
    %279 = math.exp %278 : vector<8x128xf32>
    %cst_108 = arith.constant 1.000000e+00 : f32
    %280 = vector.broadcast %cst_108 : f32 to vector<8x128xf32>
    %281 = arith.addf %280, %279 : vector<8x128xf32>
    %282 = arith.divf %280, %281 : vector<8x128xf32>
    %283 = vector.extract_strided_slice %282 {offsets = [0, 0], sizes = [8, 32], strides = [1, 1]} : vector<8x128xf32> to vector<8x32xf32>
    %284 = vector.extract_strided_slice %282 {offsets = [0, 32], sizes = [8, 32], strides = [1, 1]} : vector<8x128xf32> to vector<8x32xf32>
    %285 = vector.extract_strided_slice %282 {offsets = [0, 64], sizes = [8, 32], strides = [1, 1]} : vector<8x128xf32> to vector<8x32xf32>
    %cst_109 = arith.constant 2.000000e+00 : f32
    %286 = vector.broadcast %cst_109 : f32 to vector<8x32xf32>
    %287 = arith.mulf %286, %285 : vector<8x32xf32>
    %cst_110 = arith.constant 1.000000e+00 : f32
    %288 = vector.broadcast %cst_110 : f32 to vector<8x32xf32>
    %289 = arith.subf %287, %288 : vector<8x32xf32>
    %290 = vector.extract_strided_slice %282 {offsets = [0, 96], sizes = [8, 32], strides = [1, 1]} : vector<8x128xf32> to vector<8x32xf32>
    %291 = arith.mulf %284, %188 : vector<8x32xf32>
    %292 = arith.mulf %283, %289 : vector<8x32xf32>
    %293 = arith.addf %291, %292 : vector<8x32xf32>
    %294 = math.tanh %293 : vector<8x32xf32>
    %295 = arith.mulf %290, %294 : vector<8x32xf32>
    %296 = tpu.concatenate %190, %216 in 1 : vector<8x32xf32>, vector<8x32xf32> -> vector<8x64xf32>
    %c1_111 = arith.constant 1 : index
    %c0_112 = arith.constant 0 : index
    %c0_113 = arith.constant 0 : index
    %297 = vector.load %arg1[%c1_111, %c0_112, %c0_113] : memref<4x65x128xf32, #tpu.memory_space<vmem>>, vector<1x64x128xf32>
    %298 = vector.shape_cast %297 : vector<1x64x128xf32> to vector<64x128xf32>
    %c1_114 = arith.constant 1 : index
    %c64_115 = arith.constant 64 : index
    %c0_116 = arith.constant 0 : index
    %299 = vector.load %arg1[%c1_114, %c64_115, %c0_116] : memref<4x65x128xf32, #tpu.memory_space<vmem>>, vector<1x1x128xf32>
    %300 = vector.shape_cast %299 : vector<1x1x128xf32> to vector<1x128xf32>
    %cst_117 = arith.constant dense<0.000000e+00> : vector<8x128xf32>
    %301 = tpu.matmul %296, %298, %cst_117 {dimension_numbers = #tpu.dot_dimension_numbers<[1], [0], [0], [1], [0, 0, 1, 1], [], []>} : vector<8x64xf32>, vector<64x128xf32>, vector<8x128xf32> -> vector<8x128xf32>
    %302 = vector.broadcast %300 : vector<1x128xf32> to vector<8x128xf32>
    %303 = arith.addf %301, %302 : vector<8x128xf32>
    %304 = arith.negf %303 : vector<8x128xf32>
    %305 = math.exp %304 : vector<8x128xf32>
    %cst_118 = arith.constant 1.000000e+00 : f32
    %306 = vector.broadcast %cst_118 : f32 to vector<8x128xf32>
    %307 = arith.addf %306, %305 : vector<8x128xf32>
    %308 = arith.divf %306, %307 : vector<8x128xf32>
    %309 = vector.extract_strided_slice %308 {offsets = [0, 0], sizes = [8, 32], strides = [1, 1]} : vector<8x128xf32> to vector<8x32xf32>
    %310 = vector.extract_strided_slice %308 {offsets = [0, 32], sizes = [8, 32], strides = [1, 1]} : vector<8x128xf32> to vector<8x32xf32>
    %311 = vector.extract_strided_slice %308 {offsets = [0, 64], sizes = [8, 32], strides = [1, 1]} : vector<8x128xf32> to vector<8x32xf32>
    %cst_119 = arith.constant 2.000000e+00 : f32
    %312 = vector.broadcast %cst_119 : f32 to vector<8x32xf32>
    %313 = arith.mulf %312, %311 : vector<8x32xf32>
    %cst_120 = arith.constant 1.000000e+00 : f32
    %314 = vector.broadcast %cst_120 : f32 to vector<8x32xf32>
    %315 = arith.subf %313, %314 : vector<8x32xf32>
    %316 = vector.extract_strided_slice %308 {offsets = [0, 96], sizes = [8, 32], strides = [1, 1]} : vector<8x128xf32> to vector<8x32xf32>
    %317 = arith.mulf %310, %214 : vector<8x32xf32>
    %318 = arith.mulf %309, %315 : vector<8x32xf32>
    %319 = arith.addf %317, %318 : vector<8x32xf32>
    %320 = math.tanh %319 : vector<8x32xf32>
    %321 = arith.mulf %316, %320 : vector<8x32xf32>
    %322 = tpu.concatenate %216, %242 in 1 : vector<8x32xf32>, vector<8x32xf32> -> vector<8x64xf32>
    %c2_121 = arith.constant 2 : index
    %c0_122 = arith.constant 0 : index
    %c0_123 = arith.constant 0 : index
    %323 = vector.load %arg1[%c2_121, %c0_122, %c0_123] : memref<4x65x128xf32, #tpu.memory_space<vmem>>, vector<1x64x128xf32>
    %324 = vector.shape_cast %323 : vector<1x64x128xf32> to vector<64x128xf32>
    %c2_124 = arith.constant 2 : index
    %c64_125 = arith.constant 64 : index
    %c0_126 = arith.constant 0 : index
    %325 = vector.load %arg1[%c2_124, %c64_125, %c0_126] : memref<4x65x128xf32, #tpu.memory_space<vmem>>, vector<1x1x128xf32>
    %326 = vector.shape_cast %325 : vector<1x1x128xf32> to vector<1x128xf32>
    %cst_127 = arith.constant dense<0.000000e+00> : vector<8x128xf32>
    %327 = tpu.matmul %322, %324, %cst_127 {dimension_numbers = #tpu.dot_dimension_numbers<[1], [0], [0], [1], [0, 0, 1, 1], [], []>} : vector<8x64xf32>, vector<64x128xf32>, vector<8x128xf32> -> vector<8x128xf32>
    %328 = vector.broadcast %326 : vector<1x128xf32> to vector<8x128xf32>
    %329 = arith.addf %327, %328 : vector<8x128xf32>
    %330 = arith.negf %329 : vector<8x128xf32>
    %331 = math.exp %330 : vector<8x128xf32>
    %cst_128 = arith.constant 1.000000e+00 : f32
    %332 = vector.broadcast %cst_128 : f32 to vector<8x128xf32>
    %333 = arith.addf %332, %331 : vector<8x128xf32>
    %334 = arith.divf %332, %333 : vector<8x128xf32>
    %335 = vector.extract_strided_slice %334 {offsets = [0, 0], sizes = [8, 32], strides = [1, 1]} : vector<8x128xf32> to vector<8x32xf32>
    %336 = vector.extract_strided_slice %334 {offsets = [0, 32], sizes = [8, 32], strides = [1, 1]} : vector<8x128xf32> to vector<8x32xf32>
    %337 = vector.extract_strided_slice %334 {offsets = [0, 64], sizes = [8, 32], strides = [1, 1]} : vector<8x128xf32> to vector<8x32xf32>
    %cst_129 = arith.constant 2.000000e+00 : f32
    %338 = vector.broadcast %cst_129 : f32 to vector<8x32xf32>
    %339 = arith.mulf %338, %337 : vector<8x32xf32>
    %cst_130 = arith.constant 1.000000e+00 : f32
    %340 = vector.broadcast %cst_130 : f32 to vector<8x32xf32>
    %341 = arith.subf %339, %340 : vector<8x32xf32>
    %342 = vector.extract_strided_slice %334 {offsets = [0, 96], sizes = [8, 32], strides = [1, 1]} : vector<8x128xf32> to vector<8x32xf32>
    %343 = arith.mulf %336, %240 : vector<8x32xf32>
    %344 = arith.mulf %335, %341 : vector<8x32xf32>
    %345 = arith.addf %343, %344 : vector<8x32xf32>
    %346 = math.tanh %345 : vector<8x32xf32>
    %347 = arith.mulf %342, %346 : vector<8x32xf32>
    %348 = tpu.concatenate %242, %268 in 1 : vector<8x32xf32>, vector<8x32xf32> -> vector<8x64xf32>
    %c3_131 = arith.constant 3 : index
    %c0_132 = arith.constant 0 : index
    %c0_133 = arith.constant 0 : index
    %349 = vector.load %arg1[%c3_131, %c0_132, %c0_133] : memref<4x65x128xf32, #tpu.memory_space<vmem>>, vector<1x64x128xf32>
    %350 = vector.shape_cast %349 : vector<1x64x128xf32> to vector<64x128xf32>
    %c3_134 = arith.constant 3 : index
    %c64_135 = arith.constant 64 : index
    %c0_136 = arith.constant 0 : index
    %351 = vector.load %arg1[%c3_134, %c64_135, %c0_136] : memref<4x65x128xf32, #tpu.memory_space<vmem>>, vector<1x1x128xf32>
    %352 = vector.shape_cast %351 : vector<1x1x128xf32> to vector<1x128xf32>
    %cst_137 = arith.constant dense<0.000000e+00> : vector<8x128xf32>
    %353 = tpu.matmul %348, %350, %cst_137 {dimension_numbers = #tpu.dot_dimension_numbers<[1], [0], [0], [1], [0, 0, 1, 1], [], []>} : vector<8x64xf32>, vector<64x128xf32>, vector<8x128xf32> -> vector<8x128xf32>
    %354 = vector.broadcast %352 : vector<1x128xf32> to vector<8x128xf32>
    %355 = arith.addf %353, %354 : vector<8x128xf32>
    %356 = arith.negf %355 : vector<8x128xf32>
    %357 = math.exp %356 : vector<8x128xf32>
    %cst_138 = arith.constant 1.000000e+00 : f32
    %358 = vector.broadcast %cst_138 : f32 to vector<8x128xf32>
    %359 = arith.addf %358, %357 : vector<8x128xf32>
    %360 = arith.divf %358, %359 : vector<8x128xf32>
    %361 = vector.extract_strided_slice %360 {offsets = [0, 0], sizes = [8, 32], strides = [1, 1]} : vector<8x128xf32> to vector<8x32xf32>
    %362 = vector.extract_strided_slice %360 {offsets = [0, 32], sizes = [8, 32], strides = [1, 1]} : vector<8x128xf32> to vector<8x32xf32>
    %363 = vector.extract_strided_slice %360 {offsets = [0, 64], sizes = [8, 32], strides = [1, 1]} : vector<8x128xf32> to vector<8x32xf32>
    %cst_139 = arith.constant 2.000000e+00 : f32
    %364 = vector.broadcast %cst_139 : f32 to vector<8x32xf32>
    %365 = arith.mulf %364, %363 : vector<8x32xf32>
    %cst_140 = arith.constant 1.000000e+00 : f32
    %366 = vector.broadcast %cst_140 : f32 to vector<8x32xf32>
    %367 = arith.subf %365, %366 : vector<8x32xf32>
    %368 = vector.extract_strided_slice %360 {offsets = [0, 96], sizes = [8, 32], strides = [1, 1]} : vector<8x128xf32> to vector<8x32xf32>
    %369 = arith.mulf %362, %266 : vector<8x32xf32>
    %370 = arith.mulf %361, %367 : vector<8x32xf32>
    %371 = arith.addf %369, %370 : vector<8x32xf32>
    %372 = math.tanh %371 : vector<8x32xf32>
    %373 = arith.mulf %368, %372 : vector<8x32xf32>
    %c40 = arith.constant 40 : index
    %c0_141 = arith.constant 0 : index
    %374 = vector.load %arg0[%c40, %c0_141] : memref<64x32xf32, #tpu.memory_space<vmem>>, vector<8x32xf32>
    %375 = tpu.concatenate %374, %295 in 1 : vector<8x32xf32>, vector<8x32xf32> -> vector<8x64xf32>
    %c0_142 = arith.constant 0 : index
    %c0_143 = arith.constant 0 : index
    %c0_144 = arith.constant 0 : index
    %376 = vector.load %arg1[%c0_142, %c0_143, %c0_144] : memref<4x65x128xf32, #tpu.memory_space<vmem>>, vector<1x64x128xf32>
    %377 = vector.shape_cast %376 : vector<1x64x128xf32> to vector<64x128xf32>
    %c0_145 = arith.constant 0 : index
    %c64_146 = arith.constant 64 : index
    %c0_147 = arith.constant 0 : index
    %378 = vector.load %arg1[%c0_145, %c64_146, %c0_147] : memref<4x65x128xf32, #tpu.memory_space<vmem>>, vector<1x1x128xf32>
    %379 = vector.shape_cast %378 : vector<1x1x128xf32> to vector<1x128xf32>
    %cst_148 = arith.constant dense<0.000000e+00> : vector<8x128xf32>
    %380 = tpu.matmul %375, %377, %cst_148 {dimension_numbers = #tpu.dot_dimension_numbers<[1], [0], [0], [1], [0, 0, 1, 1], [], []>} : vector<8x64xf32>, vector<64x128xf32>, vector<8x128xf32> -> vector<8x128xf32>
    %381 = vector.broadcast %379 : vector<1x128xf32> to vector<8x128xf32>
    %382 = arith.addf %380, %381 : vector<8x128xf32>
    %383 = arith.negf %382 : vector<8x128xf32>
    %384 = math.exp %383 : vector<8x128xf32>
    %cst_149 = arith.constant 1.000000e+00 : f32
    %385 = vector.broadcast %cst_149 : f32 to vector<8x128xf32>
    %386 = arith.addf %385, %384 : vector<8x128xf32>
    %387 = arith.divf %385, %386 : vector<8x128xf32>
    %388 = vector.extract_strided_slice %387 {offsets = [0, 0], sizes = [8, 32], strides = [1, 1]} : vector<8x128xf32> to vector<8x32xf32>
    %389 = vector.extract_strided_slice %387 {offsets = [0, 32], sizes = [8, 32], strides = [1, 1]} : vector<8x128xf32> to vector<8x32xf32>
    %390 = vector.extract_strided_slice %387 {offsets = [0, 64], sizes = [8, 32], strides = [1, 1]} : vector<8x128xf32> to vector<8x32xf32>
    %cst_150 = arith.constant 2.000000e+00 : f32
    %391 = vector.broadcast %cst_150 : f32 to vector<8x32xf32>
    %392 = arith.mulf %391, %390 : vector<8x32xf32>
    %cst_151 = arith.constant 1.000000e+00 : f32
    %393 = vector.broadcast %cst_151 : f32 to vector<8x32xf32>
    %394 = arith.subf %392, %393 : vector<8x32xf32>
    %395 = vector.extract_strided_slice %387 {offsets = [0, 96], sizes = [8, 32], strides = [1, 1]} : vector<8x128xf32> to vector<8x32xf32>
    %396 = arith.mulf %389, %293 : vector<8x32xf32>
    %397 = arith.mulf %388, %394 : vector<8x32xf32>
    %398 = arith.addf %396, %397 : vector<8x32xf32>
    %399 = math.tanh %398 : vector<8x32xf32>
    %400 = arith.mulf %395, %399 : vector<8x32xf32>
    %401 = tpu.concatenate %295, %321 in 1 : vector<8x32xf32>, vector<8x32xf32> -> vector<8x64xf32>
    %c1_152 = arith.constant 1 : index
    %c0_153 = arith.constant 0 : index
    %c0_154 = arith.constant 0 : index
    %402 = vector.load %arg1[%c1_152, %c0_153, %c0_154] : memref<4x65x128xf32, #tpu.memory_space<vmem>>, vector<1x64x128xf32>
    %403 = vector.shape_cast %402 : vector<1x64x128xf32> to vector<64x128xf32>
    %c1_155 = arith.constant 1 : index
    %c64_156 = arith.constant 64 : index
    %c0_157 = arith.constant 0 : index
    %404 = vector.load %arg1[%c1_155, %c64_156, %c0_157] : memref<4x65x128xf32, #tpu.memory_space<vmem>>, vector<1x1x128xf32>
    %405 = vector.shape_cast %404 : vector<1x1x128xf32> to vector<1x128xf32>
    %cst_158 = arith.constant dense<0.000000e+00> : vector<8x128xf32>
    %406 = tpu.matmul %401, %403, %cst_158 {dimension_numbers = #tpu.dot_dimension_numbers<[1], [0], [0], [1], [0, 0, 1, 1], [], []>} : vector<8x64xf32>, vector<64x128xf32>, vector<8x128xf32> -> vector<8x128xf32>
    %407 = vector.broadcast %405 : vector<1x128xf32> to vector<8x128xf32>
    %408 = arith.addf %406, %407 : vector<8x128xf32>
    %409 = arith.negf %408 : vector<8x128xf32>
    %410 = math.exp %409 : vector<8x128xf32>
    %cst_159 = arith.constant 1.000000e+00 : f32
    %411 = vector.broadcast %cst_159 : f32 to vector<8x128xf32>
    %412 = arith.addf %411, %410 : vector<8x128xf32>
    %413 = arith.divf %411, %412 : vector<8x128xf32>
    %414 = vector.extract_strided_slice %413 {offsets = [0, 0], sizes = [8, 32], strides = [1, 1]} : vector<8x128xf32> to vector<8x32xf32>
    %415 = vector.extract_strided_slice %413 {offsets = [0, 32], sizes = [8, 32], strides = [1, 1]} : vector<8x128xf32> to vector<8x32xf32>
    %416 = vector.extract_strided_slice %413 {offsets = [0, 64], sizes = [8, 32], strides = [1, 1]} : vector<8x128xf32> to vector<8x32xf32>
    %cst_160 = arith.constant 2.000000e+00 : f32
    %417 = vector.broadcast %cst_160 : f32 to vector<8x32xf32>
    %418 = arith.mulf %417, %416 : vector<8x32xf32>
    %cst_161 = arith.constant 1.000000e+00 : f32
    %419 = vector.broadcast %cst_161 : f32 to vector<8x32xf32>
    %420 = arith.subf %418, %419 : vector<8x32xf32>
    %421 = vector.extract_strided_slice %413 {offsets = [0, 96], sizes = [8, 32], strides = [1, 1]} : vector<8x128xf32> to vector<8x32xf32>
    %422 = arith.mulf %415, %319 : vector<8x32xf32>
    %423 = arith.mulf %414, %420 : vector<8x32xf32>
    %424 = arith.addf %422, %423 : vector<8x32xf32>
    %425 = math.tanh %424 : vector<8x32xf32>
    %426 = arith.mulf %421, %425 : vector<8x32xf32>
    %427 = tpu.concatenate %321, %347 in 1 : vector<8x32xf32>, vector<8x32xf32> -> vector<8x64xf32>
    %c2_162 = arith.constant 2 : index
    %c0_163 = arith.constant 0 : index
    %c0_164 = arith.constant 0 : index
    %428 = vector.load %arg1[%c2_162, %c0_163, %c0_164] : memref<4x65x128xf32, #tpu.memory_space<vmem>>, vector<1x64x128xf32>
    %429 = vector.shape_cast %428 : vector<1x64x128xf32> to vector<64x128xf32>
    %c2_165 = arith.constant 2 : index
    %c64_166 = arith.constant 64 : index
    %c0_167 = arith.constant 0 : index
    %430 = vector.load %arg1[%c2_165, %c64_166, %c0_167] : memref<4x65x128xf32, #tpu.memory_space<vmem>>, vector<1x1x128xf32>
    %431 = vector.shape_cast %430 : vector<1x1x128xf32> to vector<1x128xf32>
    %cst_168 = arith.constant dense<0.000000e+00> : vector<8x128xf32>
    %432 = tpu.matmul %427, %429, %cst_168 {dimension_numbers = #tpu.dot_dimension_numbers<[1], [0], [0], [1], [0, 0, 1, 1], [], []>} : vector<8x64xf32>, vector<64x128xf32>, vector<8x128xf32> -> vector<8x128xf32>
    %433 = vector.broadcast %431 : vector<1x128xf32> to vector<8x128xf32>
    %434 = arith.addf %432, %433 : vector<8x128xf32>
    %435 = arith.negf %434 : vector<8x128xf32>
    %436 = math.exp %435 : vector<8x128xf32>
    %cst_169 = arith.constant 1.000000e+00 : f32
    %437 = vector.broadcast %cst_169 : f32 to vector<8x128xf32>
    %438 = arith.addf %437, %436 : vector<8x128xf32>
    %439 = arith.divf %437, %438 : vector<8x128xf32>
    %440 = vector.extract_strided_slice %439 {offsets = [0, 0], sizes = [8, 32], strides = [1, 1]} : vector<8x128xf32> to vector<8x32xf32>
    %441 = vector.extract_strided_slice %439 {offsets = [0, 32], sizes = [8, 32], strides = [1, 1]} : vector<8x128xf32> to vector<8x32xf32>
    %442 = vector.extract_strided_slice %439 {offsets = [0, 64], sizes = [8, 32], strides = [1, 1]} : vector<8x128xf32> to vector<8x32xf32>
    %cst_170 = arith.constant 2.000000e+00 : f32
    %443 = vector.broadcast %cst_170 : f32 to vector<8x32xf32>
    %444 = arith.mulf %443, %442 : vector<8x32xf32>
    %cst_171 = arith.constant 1.000000e+00 : f32
    %445 = vector.broadcast %cst_171 : f32 to vector<8x32xf32>
    %446 = arith.subf %444, %445 : vector<8x32xf32>
    %447 = vector.extract_strided_slice %439 {offsets = [0, 96], sizes = [8, 32], strides = [1, 1]} : vector<8x128xf32> to vector<8x32xf32>
    %448 = arith.mulf %441, %345 : vector<8x32xf32>
    %449 = arith.mulf %440, %446 : vector<8x32xf32>
    %450 = arith.addf %448, %449 : vector<8x32xf32>
    %451 = math.tanh %450 : vector<8x32xf32>
    %452 = arith.mulf %447, %451 : vector<8x32xf32>
    %453 = tpu.concatenate %347, %373 in 1 : vector<8x32xf32>, vector<8x32xf32> -> vector<8x64xf32>
    %c3_172 = arith.constant 3 : index
    %c0_173 = arith.constant 0 : index
    %c0_174 = arith.constant 0 : index
    %454 = vector.load %arg1[%c3_172, %c0_173, %c0_174] : memref<4x65x128xf32, #tpu.memory_space<vmem>>, vector<1x64x128xf32>
    %455 = vector.shape_cast %454 : vector<1x64x128xf32> to vector<64x128xf32>
    %c3_175 = arith.constant 3 : index
    %c64_176 = arith.constant 64 : index
    %c0_177 = arith.constant 0 : index
    %456 = vector.load %arg1[%c3_175, %c64_176, %c0_177] : memref<4x65x128xf32, #tpu.memory_space<vmem>>, vector<1x1x128xf32>
    %457 = vector.shape_cast %456 : vector<1x1x128xf32> to vector<1x128xf32>
    %cst_178 = arith.constant dense<0.000000e+00> : vector<8x128xf32>
    %458 = tpu.matmul %453, %455, %cst_178 {dimension_numbers = #tpu.dot_dimension_numbers<[1], [0], [0], [1], [0, 0, 1, 1], [], []>} : vector<8x64xf32>, vector<64x128xf32>, vector<8x128xf32> -> vector<8x128xf32>
    %459 = vector.broadcast %457 : vector<1x128xf32> to vector<8x128xf32>
    %460 = arith.addf %458, %459 : vector<8x128xf32>
    %461 = arith.negf %460 : vector<8x128xf32>
    %462 = math.exp %461 : vector<8x128xf32>
    %cst_179 = arith.constant 1.000000e+00 : f32
    %463 = vector.broadcast %cst_179 : f32 to vector<8x128xf32>
    %464 = arith.addf %463, %462 : vector<8x128xf32>
    %465 = arith.divf %463, %464 : vector<8x128xf32>
    %466 = vector.extract_strided_slice %465 {offsets = [0, 0], sizes = [8, 32], strides = [1, 1]} : vector<8x128xf32> to vector<8x32xf32>
    %467 = vector.extract_strided_slice %465 {offsets = [0, 32], sizes = [8, 32], strides = [1, 1]} : vector<8x128xf32> to vector<8x32xf32>
    %468 = vector.extract_strided_slice %465 {offsets = [0, 64], sizes = [8, 32], strides = [1, 1]} : vector<8x128xf32> to vector<8x32xf32>
    %cst_180 = arith.constant 2.000000e+00 : f32
    %469 = vector.broadcast %cst_180 : f32 to vector<8x32xf32>
    %470 = arith.mulf %469, %468 : vector<8x32xf32>
    %cst_181 = arith.constant 1.000000e+00 : f32
    %471 = vector.broadcast %cst_181 : f32 to vector<8x32xf32>
    %472 = arith.subf %470, %471 : vector<8x32xf32>
    %473 = vector.extract_strided_slice %465 {offsets = [0, 96], sizes = [8, 32], strides = [1, 1]} : vector<8x128xf32> to vector<8x32xf32>
    %474 = arith.mulf %467, %371 : vector<8x32xf32>
    %475 = arith.mulf %466, %472 : vector<8x32xf32>
    %476 = arith.addf %474, %475 : vector<8x32xf32>
    %477 = math.tanh %476 : vector<8x32xf32>
    %478 = arith.mulf %473, %477 : vector<8x32xf32>
    %c48 = arith.constant 48 : index
    %c0_182 = arith.constant 0 : index
    %479 = vector.load %arg0[%c48, %c0_182] : memref<64x32xf32, #tpu.memory_space<vmem>>, vector<8x32xf32>
    %480 = tpu.concatenate %479, %400 in 1 : vector<8x32xf32>, vector<8x32xf32> -> vector<8x64xf32>
    %c0_183 = arith.constant 0 : index
    %c0_184 = arith.constant 0 : index
    %c0_185 = arith.constant 0 : index
    %481 = vector.load %arg1[%c0_183, %c0_184, %c0_185] : memref<4x65x128xf32, #tpu.memory_space<vmem>>, vector<1x64x128xf32>
    %482 = vector.shape_cast %481 : vector<1x64x128xf32> to vector<64x128xf32>
    %c0_186 = arith.constant 0 : index
    %c64_187 = arith.constant 64 : index
    %c0_188 = arith.constant 0 : index
    %483 = vector.load %arg1[%c0_186, %c64_187, %c0_188] : memref<4x65x128xf32, #tpu.memory_space<vmem>>, vector<1x1x128xf32>
    %484 = vector.shape_cast %483 : vector<1x1x128xf32> to vector<1x128xf32>
    %cst_189 = arith.constant dense<0.000000e+00> : vector<8x128xf32>
    %485 = tpu.matmul %480, %482, %cst_189 {dimension_numbers = #tpu.dot_dimension_numbers<[1], [0], [0], [1], [0, 0, 1, 1], [], []>} : vector<8x64xf32>, vector<64x128xf32>, vector<8x128xf32> -> vector<8x128xf32>
    %486 = vector.broadcast %484 : vector<1x128xf32> to vector<8x128xf32>
    %487 = arith.addf %485, %486 : vector<8x128xf32>
    %488 = arith.negf %487 : vector<8x128xf32>
    %489 = math.exp %488 : vector<8x128xf32>
    %cst_190 = arith.constant 1.000000e+00 : f32
    %490 = vector.broadcast %cst_190 : f32 to vector<8x128xf32>
    %491 = arith.addf %490, %489 : vector<8x128xf32>
    %492 = arith.divf %490, %491 : vector<8x128xf32>
    %493 = vector.extract_strided_slice %492 {offsets = [0, 0], sizes = [8, 32], strides = [1, 1]} : vector<8x128xf32> to vector<8x32xf32>
    %494 = vector.extract_strided_slice %492 {offsets = [0, 32], sizes = [8, 32], strides = [1, 1]} : vector<8x128xf32> to vector<8x32xf32>
    %495 = vector.extract_strided_slice %492 {offsets = [0, 64], sizes = [8, 32], strides = [1, 1]} : vector<8x128xf32> to vector<8x32xf32>
    %cst_191 = arith.constant 2.000000e+00 : f32
    %496 = vector.broadcast %cst_191 : f32 to vector<8x32xf32>
    %497 = arith.mulf %496, %495 : vector<8x32xf32>
    %cst_192 = arith.constant 1.000000e+00 : f32
    %498 = vector.broadcast %cst_192 : f32 to vector<8x32xf32>
    %499 = arith.subf %497, %498 : vector<8x32xf32>
    %500 = vector.extract_strided_slice %492 {offsets = [0, 96], sizes = [8, 32], strides = [1, 1]} : vector<8x128xf32> to vector<8x32xf32>
    %501 = arith.mulf %494, %398 : vector<8x32xf32>
    %502 = arith.mulf %493, %499 : vector<8x32xf32>
    %503 = arith.addf %501, %502 : vector<8x32xf32>
    %504 = math.tanh %503 : vector<8x32xf32>
    %505 = arith.mulf %500, %504 : vector<8x32xf32>
    %506 = tpu.concatenate %400, %426 in 1 : vector<8x32xf32>, vector<8x32xf32> -> vector<8x64xf32>
    %c1_193 = arith.constant 1 : index
    %c0_194 = arith.constant 0 : index
    %c0_195 = arith.constant 0 : index
    %507 = vector.load %arg1[%c1_193, %c0_194, %c0_195] : memref<4x65x128xf32, #tpu.memory_space<vmem>>, vector<1x64x128xf32>
    %508 = vector.shape_cast %507 : vector<1x64x128xf32> to vector<64x128xf32>
    %c1_196 = arith.constant 1 : index
    %c64_197 = arith.constant 64 : index
    %c0_198 = arith.constant 0 : index
    %509 = vector.load %arg1[%c1_196, %c64_197, %c0_198] : memref<4x65x128xf32, #tpu.memory_space<vmem>>, vector<1x1x128xf32>
    %510 = vector.shape_cast %509 : vector<1x1x128xf32> to vector<1x128xf32>
    %cst_199 = arith.constant dense<0.000000e+00> : vector<8x128xf32>
    %511 = tpu.matmul %506, %508, %cst_199 {dimension_numbers = #tpu.dot_dimension_numbers<[1], [0], [0], [1], [0, 0, 1, 1], [], []>} : vector<8x64xf32>, vector<64x128xf32>, vector<8x128xf32> -> vector<8x128xf32>
    %512 = vector.broadcast %510 : vector<1x128xf32> to vector<8x128xf32>
    %513 = arith.addf %511, %512 : vector<8x128xf32>
    %514 = arith.negf %513 : vector<8x128xf32>
    %515 = math.exp %514 : vector<8x128xf32>
    %cst_200 = arith.constant 1.000000e+00 : f32
    %516 = vector.broadcast %cst_200 : f32 to vector<8x128xf32>
    %517 = arith.addf %516, %515 : vector<8x128xf32>
    %518 = arith.divf %516, %517 : vector<8x128xf32>
    %519 = vector.extract_strided_slice %518 {offsets = [0, 0], sizes = [8, 32], strides = [1, 1]} : vector<8x128xf32> to vector<8x32xf32>
    %520 = vector.extract_strided_slice %518 {offsets = [0, 32], sizes = [8, 32], strides = [1, 1]} : vector<8x128xf32> to vector<8x32xf32>
    %521 = vector.extract_strided_slice %518 {offsets = [0, 64], sizes = [8, 32], strides = [1, 1]} : vector<8x128xf32> to vector<8x32xf32>
    %cst_201 = arith.constant 2.000000e+00 : f32
    %522 = vector.broadcast %cst_201 : f32 to vector<8x32xf32>
    %523 = arith.mulf %522, %521 : vector<8x32xf32>
    %cst_202 = arith.constant 1.000000e+00 : f32
    %524 = vector.broadcast %cst_202 : f32 to vector<8x32xf32>
    %525 = arith.subf %523, %524 : vector<8x32xf32>
    %526 = vector.extract_strided_slice %518 {offsets = [0, 96], sizes = [8, 32], strides = [1, 1]} : vector<8x128xf32> to vector<8x32xf32>
    %527 = arith.mulf %520, %424 : vector<8x32xf32>
    %528 = arith.mulf %519, %525 : vector<8x32xf32>
    %529 = arith.addf %527, %528 : vector<8x32xf32>
    %530 = math.tanh %529 : vector<8x32xf32>
    %531 = arith.mulf %526, %530 : vector<8x32xf32>
    %532 = tpu.concatenate %426, %452 in 1 : vector<8x32xf32>, vector<8x32xf32> -> vector<8x64xf32>
    %c2_203 = arith.constant 2 : index
    %c0_204 = arith.constant 0 : index
    %c0_205 = arith.constant 0 : index
    %533 = vector.load %arg1[%c2_203, %c0_204, %c0_205] : memref<4x65x128xf32, #tpu.memory_space<vmem>>, vector<1x64x128xf32>
    %534 = vector.shape_cast %533 : vector<1x64x128xf32> to vector<64x128xf32>
    %c2_206 = arith.constant 2 : index
    %c64_207 = arith.constant 64 : index
    %c0_208 = arith.constant 0 : index
    %535 = vector.load %arg1[%c2_206, %c64_207, %c0_208] : memref<4x65x128xf32, #tpu.memory_space<vmem>>, vector<1x1x128xf32>
    %536 = vector.shape_cast %535 : vector<1x1x128xf32> to vector<1x128xf32>
    %cst_209 = arith.constant dense<0.000000e+00> : vector<8x128xf32>
    %537 = tpu.matmul %532, %534, %cst_209 {dimension_numbers = #tpu.dot_dimension_numbers<[1], [0], [0], [1], [0, 0, 1, 1], [], []>} : vector<8x64xf32>, vector<64x128xf32>, vector<8x128xf32> -> vector<8x128xf32>
    %538 = vector.broadcast %536 : vector<1x128xf32> to vector<8x128xf32>
    %539 = arith.addf %537, %538 : vector<8x128xf32>
    %540 = arith.negf %539 : vector<8x128xf32>
    %541 = math.exp %540 : vector<8x128xf32>
    %cst_210 = arith.constant 1.000000e+00 : f32
    %542 = vector.broadcast %cst_210 : f32 to vector<8x128xf32>
    %543 = arith.addf %542, %541 : vector<8x128xf32>
    %544 = arith.divf %542, %543 : vector<8x128xf32>
    %545 = vector.extract_strided_slice %544 {offsets = [0, 0], sizes = [8, 32], strides = [1, 1]} : vector<8x128xf32> to vector<8x32xf32>
    %546 = vector.extract_strided_slice %544 {offsets = [0, 32], sizes = [8, 32], strides = [1, 1]} : vector<8x128xf32> to vector<8x32xf32>
    %547 = vector.extract_strided_slice %544 {offsets = [0, 64], sizes = [8, 32], strides = [1, 1]} : vector<8x128xf32> to vector<8x32xf32>
    %cst_211 = arith.constant 2.000000e+00 : f32
    %548 = vector.broadcast %cst_211 : f32 to vector<8x32xf32>
    %549 = arith.mulf %548, %547 : vector<8x32xf32>
    %cst_212 = arith.constant 1.000000e+00 : f32
    %550 = vector.broadcast %cst_212 : f32 to vector<8x32xf32>
    %551 = arith.subf %549, %550 : vector<8x32xf32>
    %552 = vector.extract_strided_slice %544 {offsets = [0, 96], sizes = [8, 32], strides = [1, 1]} : vector<8x128xf32> to vector<8x32xf32>
    %553 = arith.mulf %546, %450 : vector<8x32xf32>
    %554 = arith.mulf %545, %551 : vector<8x32xf32>
    %555 = arith.addf %553, %554 : vector<8x32xf32>
    %556 = math.tanh %555 : vector<8x32xf32>
    %557 = arith.mulf %552, %556 : vector<8x32xf32>
    %558 = tpu.concatenate %452, %478 in 1 : vector<8x32xf32>, vector<8x32xf32> -> vector<8x64xf32>
    %c3_213 = arith.constant 3 : index
    %c0_214 = arith.constant 0 : index
    %c0_215 = arith.constant 0 : index
    %559 = vector.load %arg1[%c3_213, %c0_214, %c0_215] : memref<4x65x128xf32, #tpu.memory_space<vmem>>, vector<1x64x128xf32>
    %560 = vector.shape_cast %559 : vector<1x64x128xf32> to vector<64x128xf32>
    %c3_216 = arith.constant 3 : index
    %c64_217 = arith.constant 64 : index
    %c0_218 = arith.constant 0 : index
    %561 = vector.load %arg1[%c3_216, %c64_217, %c0_218] : memref<4x65x128xf32, #tpu.memory_space<vmem>>, vector<1x1x128xf32>
    %562 = vector.shape_cast %561 : vector<1x1x128xf32> to vector<1x128xf32>
    %cst_219 = arith.constant dense<0.000000e+00> : vector<8x128xf32>
    %563 = tpu.matmul %558, %560, %cst_219 {dimension_numbers = #tpu.dot_dimension_numbers<[1], [0], [0], [1], [0, 0, 1, 1], [], []>} : vector<8x64xf32>, vector<64x128xf32>, vector<8x128xf32> -> vector<8x128xf32>
    %564 = vector.broadcast %562 : vector<1x128xf32> to vector<8x128xf32>
    %565 = arith.addf %563, %564 : vector<8x128xf32>
    %566 = arith.negf %565 : vector<8x128xf32>
    %567 = math.exp %566 : vector<8x128xf32>
    %cst_220 = arith.constant 1.000000e+00 : f32
    %568 = vector.broadcast %cst_220 : f32 to vector<8x128xf32>
    %569 = arith.addf %568, %567 : vector<8x128xf32>
    %570 = arith.divf %568, %569 : vector<8x128xf32>
    %571 = vector.extract_strided_slice %570 {offsets = [0, 0], sizes = [8, 32], strides = [1, 1]} : vector<8x128xf32> to vector<8x32xf32>
    %572 = vector.extract_strided_slice %570 {offsets = [0, 32], sizes = [8, 32], strides = [1, 1]} : vector<8x128xf32> to vector<8x32xf32>
    %573 = vector.extract_strided_slice %570 {offsets = [0, 64], sizes = [8, 32], strides = [1, 1]} : vector<8x128xf32> to vector<8x32xf32>
    %cst_221 = arith.constant 2.000000e+00 : f32
    %574 = vector.broadcast %cst_221 : f32 to vector<8x32xf32>
    %575 = arith.mulf %574, %573 : vector<8x32xf32>
    %cst_222 = arith.constant 1.000000e+00 : f32
    %576 = vector.broadcast %cst_222 : f32 to vector<8x32xf32>
    %577 = arith.subf %575, %576 : vector<8x32xf32>
    %578 = vector.extract_strided_slice %570 {offsets = [0, 96], sizes = [8, 32], strides = [1, 1]} : vector<8x128xf32> to vector<8x32xf32>
    %579 = arith.mulf %572, %476 : vector<8x32xf32>
    %580 = arith.mulf %571, %577 : vector<8x32xf32>
    %581 = arith.addf %579, %580 : vector<8x32xf32>
    %582 = math.tanh %581 : vector<8x32xf32>
    %583 = arith.mulf %578, %582 : vector<8x32xf32>
    %c56 = arith.constant 56 : index
    %c0_223 = arith.constant 0 : index
    %584 = vector.load %arg0[%c56, %c0_223] : memref<64x32xf32, #tpu.memory_space<vmem>>, vector<8x32xf32>
    %585 = tpu.concatenate %584, %505 in 1 : vector<8x32xf32>, vector<8x32xf32> -> vector<8x64xf32>
    %c0_224 = arith.constant 0 : index
    %c0_225 = arith.constant 0 : index
    %c0_226 = arith.constant 0 : index
    %586 = vector.load %arg1[%c0_224, %c0_225, %c0_226] : memref<4x65x128xf32, #tpu.memory_space<vmem>>, vector<1x64x128xf32>
    %587 = vector.shape_cast %586 : vector<1x64x128xf32> to vector<64x128xf32>
    %c0_227 = arith.constant 0 : index
    %c64_228 = arith.constant 64 : index
    %c0_229 = arith.constant 0 : index
    %588 = vector.load %arg1[%c0_227, %c64_228, %c0_229] : memref<4x65x128xf32, #tpu.memory_space<vmem>>, vector<1x1x128xf32>
    %589 = vector.shape_cast %588 : vector<1x1x128xf32> to vector<1x128xf32>
    %cst_230 = arith.constant dense<0.000000e+00> : vector<8x128xf32>
    %590 = tpu.matmul %585, %587, %cst_230 {dimension_numbers = #tpu.dot_dimension_numbers<[1], [0], [0], [1], [0, 0, 1, 1], [], []>} : vector<8x64xf32>, vector<64x128xf32>, vector<8x128xf32> -> vector<8x128xf32>
    %591 = vector.broadcast %589 : vector<1x128xf32> to vector<8x128xf32>
    %592 = arith.addf %590, %591 : vector<8x128xf32>
    %593 = arith.negf %592 : vector<8x128xf32>
    %594 = math.exp %593 : vector<8x128xf32>
    %cst_231 = arith.constant 1.000000e+00 : f32
    %595 = vector.broadcast %cst_231 : f32 to vector<8x128xf32>
    %596 = arith.addf %595, %594 : vector<8x128xf32>
    %597 = arith.divf %595, %596 : vector<8x128xf32>
    %598 = vector.extract_strided_slice %597 {offsets = [0, 0], sizes = [8, 32], strides = [1, 1]} : vector<8x128xf32> to vector<8x32xf32>
    %599 = vector.extract_strided_slice %597 {offsets = [0, 32], sizes = [8, 32], strides = [1, 1]} : vector<8x128xf32> to vector<8x32xf32>
    %600 = vector.extract_strided_slice %597 {offsets = [0, 64], sizes = [8, 32], strides = [1, 1]} : vector<8x128xf32> to vector<8x32xf32>
    %cst_232 = arith.constant 2.000000e+00 : f32
    %601 = vector.broadcast %cst_232 : f32 to vector<8x32xf32>
    %602 = arith.mulf %601, %600 : vector<8x32xf32>
    %cst_233 = arith.constant 1.000000e+00 : f32
    %603 = vector.broadcast %cst_233 : f32 to vector<8x32xf32>
    %604 = arith.subf %602, %603 : vector<8x32xf32>
    %605 = vector.extract_strided_slice %597 {offsets = [0, 96], sizes = [8, 32], strides = [1, 1]} : vector<8x128xf32> to vector<8x32xf32>
    %606 = arith.mulf %599, %503 : vector<8x32xf32>
    %607 = arith.mulf %598, %604 : vector<8x32xf32>
    %608 = arith.addf %606, %607 : vector<8x32xf32>
    %609 = math.tanh %608 : vector<8x32xf32>
    %610 = arith.mulf %605, %609 : vector<8x32xf32>
    %611 = tpu.concatenate %505, %531 in 1 : vector<8x32xf32>, vector<8x32xf32> -> vector<8x64xf32>
    %c1_234 = arith.constant 1 : index
    %c0_235 = arith.constant 0 : index
    %c0_236 = arith.constant 0 : index
    %612 = vector.load %arg1[%c1_234, %c0_235, %c0_236] : memref<4x65x128xf32, #tpu.memory_space<vmem>>, vector<1x64x128xf32>
    %613 = vector.shape_cast %612 : vector<1x64x128xf32> to vector<64x128xf32>
    %c1_237 = arith.constant 1 : index
    %c64_238 = arith.constant 64 : index
    %c0_239 = arith.constant 0 : index
    %614 = vector.load %arg1[%c1_237, %c64_238, %c0_239] : memref<4x65x128xf32, #tpu.memory_space<vmem>>, vector<1x1x128xf32>
    %615 = vector.shape_cast %614 : vector<1x1x128xf32> to vector<1x128xf32>
    %cst_240 = arith.constant dense<0.000000e+00> : vector<8x128xf32>
    %616 = tpu.matmul %611, %613, %cst_240 {dimension_numbers = #tpu.dot_dimension_numbers<[1], [0], [0], [1], [0, 0, 1, 1], [], []>} : vector<8x64xf32>, vector<64x128xf32>, vector<8x128xf32> -> vector<8x128xf32>
    %617 = vector.broadcast %615 : vector<1x128xf32> to vector<8x128xf32>
    %618 = arith.addf %616, %617 : vector<8x128xf32>
    %619 = arith.negf %618 : vector<8x128xf32>
    %620 = math.exp %619 : vector<8x128xf32>
    %cst_241 = arith.constant 1.000000e+00 : f32
    %621 = vector.broadcast %cst_241 : f32 to vector<8x128xf32>
    %622 = arith.addf %621, %620 : vector<8x128xf32>
    %623 = arith.divf %621, %622 : vector<8x128xf32>
    %624 = vector.extract_strided_slice %623 {offsets = [0, 0], sizes = [8, 32], strides = [1, 1]} : vector<8x128xf32> to vector<8x32xf32>
    %625 = vector.extract_strided_slice %623 {offsets = [0, 32], sizes = [8, 32], strides = [1, 1]} : vector<8x128xf32> to vector<8x32xf32>
    %626 = vector.extract_strided_slice %623 {offsets = [0, 64], sizes = [8, 32], strides = [1, 1]} : vector<8x128xf32> to vector<8x32xf32>
    %cst_242 = arith.constant 2.000000e+00 : f32
    %627 = vector.broadcast %cst_242 : f32 to vector<8x32xf32>
    %628 = arith.mulf %627, %626 : vector<8x32xf32>
    %cst_243 = arith.constant 1.000000e+00 : f32
    %629 = vector.broadcast %cst_243 : f32 to vector<8x32xf32>
    %630 = arith.subf %628, %629 : vector<8x32xf32>
    %631 = vector.extract_strided_slice %623 {offsets = [0, 96], sizes = [8, 32], strides = [1, 1]} : vector<8x128xf32> to vector<8x32xf32>
    %632 = arith.mulf %625, %529 : vector<8x32xf32>
    %633 = arith.mulf %624, %630 : vector<8x32xf32>
    %634 = arith.addf %632, %633 : vector<8x32xf32>
    %635 = math.tanh %634 : vector<8x32xf32>
    %636 = arith.mulf %631, %635 : vector<8x32xf32>
    %637 = tpu.concatenate %531, %557 in 1 : vector<8x32xf32>, vector<8x32xf32> -> vector<8x64xf32>
    %c2_244 = arith.constant 2 : index
    %c0_245 = arith.constant 0 : index
    %c0_246 = arith.constant 0 : index
    %638 = vector.load %arg1[%c2_244, %c0_245, %c0_246] : memref<4x65x128xf32, #tpu.memory_space<vmem>>, vector<1x64x128xf32>
    %639 = vector.shape_cast %638 : vector<1x64x128xf32> to vector<64x128xf32>
    %c2_247 = arith.constant 2 : index
    %c64_248 = arith.constant 64 : index
    %c0_249 = arith.constant 0 : index
    %640 = vector.load %arg1[%c2_247, %c64_248, %c0_249] : memref<4x65x128xf32, #tpu.memory_space<vmem>>, vector<1x1x128xf32>
    %641 = vector.shape_cast %640 : vector<1x1x128xf32> to vector<1x128xf32>
    %cst_250 = arith.constant dense<0.000000e+00> : vector<8x128xf32>
    %642 = tpu.matmul %637, %639, %cst_250 {dimension_numbers = #tpu.dot_dimension_numbers<[1], [0], [0], [1], [0, 0, 1, 1], [], []>} : vector<8x64xf32>, vector<64x128xf32>, vector<8x128xf32> -> vector<8x128xf32>
    %643 = vector.broadcast %641 : vector<1x128xf32> to vector<8x128xf32>
    %644 = arith.addf %642, %643 : vector<8x128xf32>
    %645 = arith.negf %644 : vector<8x128xf32>
    %646 = math.exp %645 : vector<8x128xf32>
    %cst_251 = arith.constant 1.000000e+00 : f32
    %647 = vector.broadcast %cst_251 : f32 to vector<8x128xf32>
    %648 = arith.addf %647, %646 : vector<8x128xf32>
    %649 = arith.divf %647, %648 : vector<8x128xf32>
    %650 = vector.extract_strided_slice %649 {offsets = [0, 0], sizes = [8, 32], strides = [1, 1]} : vector<8x128xf32> to vector<8x32xf32>
    %651 = vector.extract_strided_slice %649 {offsets = [0, 32], sizes = [8, 32], strides = [1, 1]} : vector<8x128xf32> to vector<8x32xf32>
    %652 = vector.extract_strided_slice %649 {offsets = [0, 64], sizes = [8, 32], strides = [1, 1]} : vector<8x128xf32> to vector<8x32xf32>
    %cst_252 = arith.constant 2.000000e+00 : f32
    %653 = vector.broadcast %cst_252 : f32 to vector<8x32xf32>
    %654 = arith.mulf %653, %652 : vector<8x32xf32>
    %cst_253 = arith.constant 1.000000e+00 : f32
    %655 = vector.broadcast %cst_253 : f32 to vector<8x32xf32>
    %656 = arith.subf %654, %655 : vector<8x32xf32>
    %657 = vector.extract_strided_slice %649 {offsets = [0, 96], sizes = [8, 32], strides = [1, 1]} : vector<8x128xf32> to vector<8x32xf32>
    %658 = arith.mulf %651, %555 : vector<8x32xf32>
    %659 = arith.mulf %650, %656 : vector<8x32xf32>
    %660 = arith.addf %658, %659 : vector<8x32xf32>
    %661 = math.tanh %660 : vector<8x32xf32>
    %662 = arith.mulf %657, %661 : vector<8x32xf32>
    %663 = tpu.concatenate %557, %583 in 1 : vector<8x32xf32>, vector<8x32xf32> -> vector<8x64xf32>
    %c3_254 = arith.constant 3 : index
    %c0_255 = arith.constant 0 : index
    %c0_256 = arith.constant 0 : index
    %664 = vector.load %arg1[%c3_254, %c0_255, %c0_256] : memref<4x65x128xf32, #tpu.memory_space<vmem>>, vector<1x64x128xf32>
    %665 = vector.shape_cast %664 : vector<1x64x128xf32> to vector<64x128xf32>
    %c3_257 = arith.constant 3 : index
    %c64_258 = arith.constant 64 : index
    %c0_259 = arith.constant 0 : index
    %666 = vector.load %arg1[%c3_257, %c64_258, %c0_259] : memref<4x65x128xf32, #tpu.memory_space<vmem>>, vector<1x1x128xf32>
    %667 = vector.shape_cast %666 : vector<1x1x128xf32> to vector<1x128xf32>
    %cst_260 = arith.constant dense<0.000000e+00> : vector<8x128xf32>
    %668 = tpu.matmul %663, %665, %cst_260 {dimension_numbers = #tpu.dot_dimension_numbers<[1], [0], [0], [1], [0, 0, 1, 1], [], []>} : vector<8x64xf32>, vector<64x128xf32>, vector<8x128xf32> -> vector<8x128xf32>
    %669 = vector.broadcast %667 : vector<1x128xf32> to vector<8x128xf32>
    %670 = arith.addf %668, %669 : vector<8x128xf32>
    %671 = arith.negf %670 : vector<8x128xf32>
    %672 = math.exp %671 : vector<8x128xf32>
    %cst_261 = arith.constant 1.000000e+00 : f32
    %673 = vector.broadcast %cst_261 : f32 to vector<8x128xf32>
    %674 = arith.addf %673, %672 : vector<8x128xf32>
    %675 = arith.divf %673, %674 : vector<8x128xf32>
    %676 = vector.extract_strided_slice %675 {offsets = [0, 0], sizes = [8, 32], strides = [1, 1]} : vector<8x128xf32> to vector<8x32xf32>
    %677 = vector.extract_strided_slice %675 {offsets = [0, 32], sizes = [8, 32], strides = [1, 1]} : vector<8x128xf32> to vector<8x32xf32>
    %678 = vector.extract_strided_slice %675 {offsets = [0, 64], sizes = [8, 32], strides = [1, 1]} : vector<8x128xf32> to vector<8x32xf32>
    %cst_262 = arith.constant 2.000000e+00 : f32
    %679 = vector.broadcast %cst_262 : f32 to vector<8x32xf32>
    %680 = arith.mulf %679, %678 : vector<8x32xf32>
    %cst_263 = arith.constant 1.000000e+00 : f32
    %681 = vector.broadcast %cst_263 : f32 to vector<8x32xf32>
    %682 = arith.subf %680, %681 : vector<8x32xf32>
    %683 = vector.extract_strided_slice %675 {offsets = [0, 96], sizes = [8, 32], strides = [1, 1]} : vector<8x128xf32> to vector<8x32xf32>
    %684 = arith.mulf %677, %581 : vector<8x32xf32>
    %685 = arith.mulf %676, %682 : vector<8x32xf32>
    %686 = arith.addf %684, %685 : vector<8x32xf32>
    %687 = math.tanh %686 : vector<8x32xf32>
    %688 = arith.mulf %683, %687 : vector<8x32xf32>
    %689 = tpu.concatenate %610, %636 in 1 : vector<8x32xf32>, vector<8x32xf32> -> vector<8x64xf32>
    %c1_264 = arith.constant 1 : index
    %c0_265 = arith.constant 0 : index
    %c0_266 = arith.constant 0 : index
    %690 = vector.load %arg1[%c1_264, %c0_265, %c0_266] : memref<4x65x128xf32, #tpu.memory_space<vmem>>, vector<1x64x128xf32>
    %691 = vector.shape_cast %690 : vector<1x64x128xf32> to vector<64x128xf32>
    %c1_267 = arith.constant 1 : index
    %c64_268 = arith.constant 64 : index
    %c0_269 = arith.constant 0 : index
    %692 = vector.load %arg1[%c1_267, %c64_268, %c0_269] : memref<4x65x128xf32, #tpu.memory_space<vmem>>, vector<1x1x128xf32>
    %693 = vector.shape_cast %692 : vector<1x1x128xf32> to vector<1x128xf32>
    %cst_270 = arith.constant dense<0.000000e+00> : vector<8x128xf32>
    %694 = tpu.matmul %689, %691, %cst_270 {dimension_numbers = #tpu.dot_dimension_numbers<[1], [0], [0], [1], [0, 0, 1, 1], [], []>} : vector<8x64xf32>, vector<64x128xf32>, vector<8x128xf32> -> vector<8x128xf32>
    %695 = vector.broadcast %693 : vector<1x128xf32> to vector<8x128xf32>
    %696 = arith.addf %694, %695 : vector<8x128xf32>
    %697 = arith.negf %696 : vector<8x128xf32>
    %698 = math.exp %697 : vector<8x128xf32>
    %cst_271 = arith.constant 1.000000e+00 : f32
    %699 = vector.broadcast %cst_271 : f32 to vector<8x128xf32>
    %700 = arith.addf %699, %698 : vector<8x128xf32>
    %701 = arith.divf %699, %700 : vector<8x128xf32>
    %702 = vector.extract_strided_slice %701 {offsets = [0, 0], sizes = [8, 32], strides = [1, 1]} : vector<8x128xf32> to vector<8x32xf32>
    %703 = vector.extract_strided_slice %701 {offsets = [0, 32], sizes = [8, 32], strides = [1, 1]} : vector<8x128xf32> to vector<8x32xf32>
    %704 = vector.extract_strided_slice %701 {offsets = [0, 64], sizes = [8, 32], strides = [1, 1]} : vector<8x128xf32> to vector<8x32xf32>
    %cst_272 = arith.constant 2.000000e+00 : f32
    %705 = vector.broadcast %cst_272 : f32 to vector<8x32xf32>
    %706 = arith.mulf %705, %704 : vector<8x32xf32>
    %cst_273 = arith.constant 1.000000e+00 : f32
    %707 = vector.broadcast %cst_273 : f32 to vector<8x32xf32>
    %708 = arith.subf %706, %707 : vector<8x32xf32>
    %709 = vector.extract_strided_slice %701 {offsets = [0, 96], sizes = [8, 32], strides = [1, 1]} : vector<8x128xf32> to vector<8x32xf32>
    %710 = arith.mulf %703, %634 : vector<8x32xf32>
    %711 = arith.mulf %702, %708 : vector<8x32xf32>
    %712 = arith.addf %710, %711 : vector<8x32xf32>
    %713 = math.tanh %712 : vector<8x32xf32>
    %714 = arith.mulf %709, %713 : vector<8x32xf32>
    %715 = tpu.concatenate %636, %662 in 1 : vector<8x32xf32>, vector<8x32xf32> -> vector<8x64xf32>
    %c2_274 = arith.constant 2 : index
    %c0_275 = arith.constant 0 : index
    %c0_276 = arith.constant 0 : index
    %716 = vector.load %arg1[%c2_274, %c0_275, %c0_276] : memref<4x65x128xf32, #tpu.memory_space<vmem>>, vector<1x64x128xf32>
    %717 = vector.shape_cast %716 : vector<1x64x128xf32> to vector<64x128xf32>
    %c2_277 = arith.constant 2 : index
    %c64_278 = arith.constant 64 : index
    %c0_279 = arith.constant 0 : index
    %718 = vector.load %arg1[%c2_277, %c64_278, %c0_279] : memref<4x65x128xf32, #tpu.memory_space<vmem>>, vector<1x1x128xf32>
    %719 = vector.shape_cast %718 : vector<1x1x128xf32> to vector<1x128xf32>
    %cst_280 = arith.constant dense<0.000000e+00> : vector<8x128xf32>
    %720 = tpu.matmul %715, %717, %cst_280 {dimension_numbers = #tpu.dot_dimension_numbers<[1], [0], [0], [1], [0, 0, 1, 1], [], []>} : vector<8x64xf32>, vector<64x128xf32>, vector<8x128xf32> -> vector<8x128xf32>
    %721 = vector.broadcast %719 : vector<1x128xf32> to vector<8x128xf32>
    %722 = arith.addf %720, %721 : vector<8x128xf32>
    %723 = arith.negf %722 : vector<8x128xf32>
    %724 = math.exp %723 : vector<8x128xf32>
    %cst_281 = arith.constant 1.000000e+00 : f32
    %725 = vector.broadcast %cst_281 : f32 to vector<8x128xf32>
    %726 = arith.addf %725, %724 : vector<8x128xf32>
    %727 = arith.divf %725, %726 : vector<8x128xf32>
    %728 = vector.extract_strided_slice %727 {offsets = [0, 0], sizes = [8, 32], strides = [1, 1]} : vector<8x128xf32> to vector<8x32xf32>
    %729 = vector.extract_strided_slice %727 {offsets = [0, 32], sizes = [8, 32], strides = [1, 1]} : vector<8x128xf32> to vector<8x32xf32>
    %730 = vector.extract_strided_slice %727 {offsets = [0, 64], sizes = [8, 32], strides = [1, 1]} : vector<8x128xf32> to vector<8x32xf32>
    %cst_282 = arith.constant 2.000000e+00 : f32
    %731 = vector.broadcast %cst_282 : f32 to vector<8x32xf32>
    %732 = arith.mulf %731, %730 : vector<8x32xf32>
    %cst_283 = arith.constant 1.000000e+00 : f32
    %733 = vector.broadcast %cst_283 : f32 to vector<8x32xf32>
    %734 = arith.subf %732, %733 : vector<8x32xf32>
    %735 = vector.extract_strided_slice %727 {offsets = [0, 96], sizes = [8, 32], strides = [1, 1]} : vector<8x128xf32> to vector<8x32xf32>
    %736 = arith.mulf %729, %660 : vector<8x32xf32>
    %737 = arith.mulf %728, %734 : vector<8x32xf32>
    %738 = arith.addf %736, %737 : vector<8x32xf32>
    %739 = math.tanh %738 : vector<8x32xf32>
    %740 = arith.mulf %735, %739 : vector<8x32xf32>
    %741 = tpu.concatenate %662, %688 in 1 : vector<8x32xf32>, vector<8x32xf32> -> vector<8x64xf32>
    %c3_284 = arith.constant 3 : index
    %c0_285 = arith.constant 0 : index
    %c0_286 = arith.constant 0 : index
    %742 = vector.load %arg1[%c3_284, %c0_285, %c0_286] : memref<4x65x128xf32, #tpu.memory_space<vmem>>, vector<1x64x128xf32>
    %743 = vector.shape_cast %742 : vector<1x64x128xf32> to vector<64x128xf32>
    %c3_287 = arith.constant 3 : index
    %c64_288 = arith.constant 64 : index
    %c0_289 = arith.constant 0 : index
    %744 = vector.load %arg1[%c3_287, %c64_288, %c0_289] : memref<4x65x128xf32, #tpu.memory_space<vmem>>, vector<1x1x128xf32>
    %745 = vector.shape_cast %744 : vector<1x1x128xf32> to vector<1x128xf32>
    %cst_290 = arith.constant dense<0.000000e+00> : vector<8x128xf32>
    %746 = tpu.matmul %741, %743, %cst_290 {dimension_numbers = #tpu.dot_dimension_numbers<[1], [0], [0], [1], [0, 0, 1, 1], [], []>} : vector<8x64xf32>, vector<64x128xf32>, vector<8x128xf32> -> vector<8x128xf32>
    %747 = vector.broadcast %745 : vector<1x128xf32> to vector<8x128xf32>
    %748 = arith.addf %746, %747 : vector<8x128xf32>
    %749 = arith.negf %748 : vector<8x128xf32>
    %750 = math.exp %749 : vector<8x128xf32>
    %cst_291 = arith.constant 1.000000e+00 : f32
    %751 = vector.broadcast %cst_291 : f32 to vector<8x128xf32>
    %752 = arith.addf %751, %750 : vector<8x128xf32>
    %753 = arith.divf %751, %752 : vector<8x128xf32>
    %754 = vector.extract_strided_slice %753 {offsets = [0, 0], sizes = [8, 32], strides = [1, 1]} : vector<8x128xf32> to vector<8x32xf32>
    %755 = vector.extract_strided_slice %753 {offsets = [0, 32], sizes = [8, 32], strides = [1, 1]} : vector<8x128xf32> to vector<8x32xf32>
    %756 = vector.extract_strided_slice %753 {offsets = [0, 64], sizes = [8, 32], strides = [1, 1]} : vector<8x128xf32> to vector<8x32xf32>
    %cst_292 = arith.constant 2.000000e+00 : f32
    %757 = vector.broadcast %cst_292 : f32 to vector<8x32xf32>
    %758 = arith.mulf %757, %756 : vector<8x32xf32>
    %cst_293 = arith.constant 1.000000e+00 : f32
    %759 = vector.broadcast %cst_293 : f32 to vector<8x32xf32>
    %760 = arith.subf %758, %759 : vector<8x32xf32>
    %761 = vector.extract_strided_slice %753 {offsets = [0, 96], sizes = [8, 32], strides = [1, 1]} : vector<8x128xf32> to vector<8x32xf32>
    %762 = arith.mulf %755, %686 : vector<8x32xf32>
    %763 = arith.mulf %754, %760 : vector<8x32xf32>
    %764 = arith.addf %762, %763 : vector<8x32xf32>
    %765 = math.tanh %764 : vector<8x32xf32>
    %766 = arith.mulf %761, %765 : vector<8x32xf32>
    %767 = tpu.concatenate %714, %740 in 1 : vector<8x32xf32>, vector<8x32xf32> -> vector<8x64xf32>
    %c2_294 = arith.constant 2 : index
    %c0_295 = arith.constant 0 : index
    %c0_296 = arith.constant 0 : index
    %768 = vector.load %arg1[%c2_294, %c0_295, %c0_296] : memref<4x65x128xf32, #tpu.memory_space<vmem>>, vector<1x64x128xf32>
    %769 = vector.shape_cast %768 : vector<1x64x128xf32> to vector<64x128xf32>
    %c2_297 = arith.constant 2 : index
    %c64_298 = arith.constant 64 : index
    %c0_299 = arith.constant 0 : index
    %770 = vector.load %arg1[%c2_297, %c64_298, %c0_299] : memref<4x65x128xf32, #tpu.memory_space<vmem>>, vector<1x1x128xf32>
    %771 = vector.shape_cast %770 : vector<1x1x128xf32> to vector<1x128xf32>
    %cst_300 = arith.constant dense<0.000000e+00> : vector<8x128xf32>
    %772 = tpu.matmul %767, %769, %cst_300 {dimension_numbers = #tpu.dot_dimension_numbers<[1], [0], [0], [1], [0, 0, 1, 1], [], []>} : vector<8x64xf32>, vector<64x128xf32>, vector<8x128xf32> -> vector<8x128xf32>
    %773 = vector.broadcast %771 : vector<1x128xf32> to vector<8x128xf32>
    %774 = arith.addf %772, %773 : vector<8x128xf32>
    %775 = arith.negf %774 : vector<8x128xf32>
    %776 = math.exp %775 : vector<8x128xf32>
    %cst_301 = arith.constant 1.000000e+00 : f32
    %777 = vector.broadcast %cst_301 : f32 to vector<8x128xf32>
    %778 = arith.addf %777, %776 : vector<8x128xf32>
    %779 = arith.divf %777, %778 : vector<8x128xf32>
    %780 = vector.extract_strided_slice %779 {offsets = [0, 0], sizes = [8, 32], strides = [1, 1]} : vector<8x128xf32> to vector<8x32xf32>
    %781 = vector.extract_strided_slice %779 {offsets = [0, 32], sizes = [8, 32], strides = [1, 1]} : vector<8x128xf32> to vector<8x32xf32>
    %782 = vector.extract_strided_slice %779 {offsets = [0, 64], sizes = [8, 32], strides = [1, 1]} : vector<8x128xf32> to vector<8x32xf32>
    %cst_302 = arith.constant 2.000000e+00 : f32
    %783 = vector.broadcast %cst_302 : f32 to vector<8x32xf32>
    %784 = arith.mulf %783, %782 : vector<8x32xf32>
    %cst_303 = arith.constant 1.000000e+00 : f32
    %785 = vector.broadcast %cst_303 : f32 to vector<8x32xf32>
    %786 = arith.subf %784, %785 : vector<8x32xf32>
    %787 = vector.extract_strided_slice %779 {offsets = [0, 96], sizes = [8, 32], strides = [1, 1]} : vector<8x128xf32> to vector<8x32xf32>
    %788 = arith.mulf %781, %738 : vector<8x32xf32>
    %789 = arith.mulf %780, %786 : vector<8x32xf32>
    %790 = arith.addf %788, %789 : vector<8x32xf32>
    %791 = math.tanh %790 : vector<8x32xf32>
    %792 = arith.mulf %787, %791 : vector<8x32xf32>
    %793 = tpu.concatenate %740, %766 in 1 : vector<8x32xf32>, vector<8x32xf32> -> vector<8x64xf32>
    %c3_304 = arith.constant 3 : index
    %c0_305 = arith.constant 0 : index
    %c0_306 = arith.constant 0 : index
    %794 = vector.load %arg1[%c3_304, %c0_305, %c0_306] : memref<4x65x128xf32, #tpu.memory_space<vmem>>, vector<1x64x128xf32>
    %795 = vector.shape_cast %794 : vector<1x64x128xf32> to vector<64x128xf32>
    %c3_307 = arith.constant 3 : index
    %c64_308 = arith.constant 64 : index
    %c0_309 = arith.constant 0 : index
    %796 = vector.load %arg1[%c3_307, %c64_308, %c0_309] : memref<4x65x128xf32, #tpu.memory_space<vmem>>, vector<1x1x128xf32>
    %797 = vector.shape_cast %796 : vector<1x1x128xf32> to vector<1x128xf32>
    %cst_310 = arith.constant dense<0.000000e+00> : vector<8x128xf32>
    %798 = tpu.matmul %793, %795, %cst_310 {dimension_numbers = #tpu.dot_dimension_numbers<[1], [0], [0], [1], [0, 0, 1, 1], [], []>} : vector<8x64xf32>, vector<64x128xf32>, vector<8x128xf32> -> vector<8x128xf32>
    %799 = vector.broadcast %797 : vector<1x128xf32> to vector<8x128xf32>
    %800 = arith.addf %798, %799 : vector<8x128xf32>
    %801 = arith.negf %800 : vector<8x128xf32>
    %802 = math.exp %801 : vector<8x128xf32>
    %cst_311 = arith.constant 1.000000e+00 : f32
    %803 = vector.broadcast %cst_311 : f32 to vector<8x128xf32>
    %804 = arith.addf %803, %802 : vector<8x128xf32>
    %805 = arith.divf %803, %804 : vector<8x128xf32>
    %806 = vector.extract_strided_slice %805 {offsets = [0, 0], sizes = [8, 32], strides = [1, 1]} : vector<8x128xf32> to vector<8x32xf32>
    %807 = vector.extract_strided_slice %805 {offsets = [0, 32], sizes = [8, 32], strides = [1, 1]} : vector<8x128xf32> to vector<8x32xf32>
    %808 = vector.extract_strided_slice %805 {offsets = [0, 64], sizes = [8, 32], strides = [1, 1]} : vector<8x128xf32> to vector<8x32xf32>
    %cst_312 = arith.constant 2.000000e+00 : f32
    %809 = vector.broadcast %cst_312 : f32 to vector<8x32xf32>
    %810 = arith.mulf %809, %808 : vector<8x32xf32>
    %cst_313 = arith.constant 1.000000e+00 : f32
    %811 = vector.broadcast %cst_313 : f32 to vector<8x32xf32>
    %812 = arith.subf %810, %811 : vector<8x32xf32>
    %813 = vector.extract_strided_slice %805 {offsets = [0, 96], sizes = [8, 32], strides = [1, 1]} : vector<8x128xf32> to vector<8x32xf32>
    %814 = arith.mulf %807, %764 : vector<8x32xf32>
    %815 = arith.mulf %806, %812 : vector<8x32xf32>
    %816 = arith.addf %814, %815 : vector<8x32xf32>
    %817 = math.tanh %816 : vector<8x32xf32>
    %818 = arith.mulf %813, %817 : vector<8x32xf32>
    %819 = tpu.concatenate %792, %818 in 1 : vector<8x32xf32>, vector<8x32xf32> -> vector<8x64xf32>
    %c3_314 = arith.constant 3 : index
    %c0_315 = arith.constant 0 : index
    %c0_316 = arith.constant 0 : index
    %820 = vector.load %arg1[%c3_314, %c0_315, %c0_316] : memref<4x65x128xf32, #tpu.memory_space<vmem>>, vector<1x64x128xf32>
    %821 = vector.shape_cast %820 : vector<1x64x128xf32> to vector<64x128xf32>
    %c3_317 = arith.constant 3 : index
    %c64_318 = arith.constant 64 : index
    %c0_319 = arith.constant 0 : index
    %822 = vector.load %arg1[%c3_317, %c64_318, %c0_319] : memref<4x65x128xf32, #tpu.memory_space<vmem>>, vector<1x1x128xf32>
    %823 = vector.shape_cast %822 : vector<1x1x128xf32> to vector<1x128xf32>
    %cst_320 = arith.constant dense<0.000000e+00> : vector<8x128xf32>
    %824 = tpu.matmul %819, %821, %cst_320 {dimension_numbers = #tpu.dot_dimension_numbers<[1], [0], [0], [1], [0, 0, 1, 1], [], []>} : vector<8x64xf32>, vector<64x128xf32>, vector<8x128xf32> -> vector<8x128xf32>
    %825 = vector.broadcast %823 : vector<1x128xf32> to vector<8x128xf32>
    %826 = arith.addf %824, %825 : vector<8x128xf32>
    %827 = arith.negf %826 : vector<8x128xf32>
    %828 = math.exp %827 : vector<8x128xf32>
    %cst_321 = arith.constant 1.000000e+00 : f32
    %829 = vector.broadcast %cst_321 : f32 to vector<8x128xf32>
    %830 = arith.addf %829, %828 : vector<8x128xf32>
    %831 = arith.divf %829, %830 : vector<8x128xf32>
    %832 = vector.extract_strided_slice %831 {offsets = [0, 0], sizes = [8, 32], strides = [1, 1]} : vector<8x128xf32> to vector<8x32xf32>
    %833 = vector.extract_strided_slice %831 {offsets = [0, 32], sizes = [8, 32], strides = [1, 1]} : vector<8x128xf32> to vector<8x32xf32>
    %834 = vector.extract_strided_slice %831 {offsets = [0, 64], sizes = [8, 32], strides = [1, 1]} : vector<8x128xf32> to vector<8x32xf32>
    %cst_322 = arith.constant 2.000000e+00 : f32
    %835 = vector.broadcast %cst_322 : f32 to vector<8x32xf32>
    %836 = arith.mulf %835, %834 : vector<8x32xf32>
    %cst_323 = arith.constant 1.000000e+00 : f32
    %837 = vector.broadcast %cst_323 : f32 to vector<8x32xf32>
    %838 = arith.subf %836, %837 : vector<8x32xf32>
    %839 = vector.extract_strided_slice %831 {offsets = [0, 96], sizes = [8, 32], strides = [1, 1]} : vector<8x128xf32> to vector<8x32xf32>
    %840 = arith.mulf %833, %816 : vector<8x32xf32>
    %841 = arith.mulf %832, %838 : vector<8x32xf32>
    %842 = arith.addf %840, %841 : vector<8x32xf32>
    %843 = math.tanh %842 : vector<8x32xf32>
    %844 = arith.mulf %839, %843 : vector<8x32xf32>
    %c0_i32_324 = arith.constant 0 : i32
    %845 = tpu.memref_slice %arg7[%c0_i32_324] : memref<2x!tpu.dma_semaphore, #tpu.memory_space<semaphore_mem>> -> memref<1x!tpu.dma_semaphore, #tpu.memory_space<semaphore_mem>>
    %846 = tpu.memref_squeeze %845 : memref<1x!tpu.dma_semaphore, #tpu.memory_space<semaphore_mem>> -> memref<!tpu.dma_semaphore, #tpu.memory_space<semaphore_mem>>
    tpu.wait_dma2 semaphore(%846 : memref<!tpu.dma_semaphore, #tpu.memory_space<semaphore_mem>>) src(%arg2 : memref<576x128xf32, #tpu.memory_space<any>>) dst(%arg5 : memref<576x128xf32, #tpu.memory_space<vmem>>)
    %c1_i32_325 = arith.constant 1 : i32
    %847 = tpu.memref_slice %arg7[%c1_i32_325] : memref<2x!tpu.dma_semaphore, #tpu.memory_space<semaphore_mem>> -> memref<1x!tpu.dma_semaphore, #tpu.memory_space<semaphore_mem>>
    %848 = tpu.memref_squeeze %847 : memref<1x!tpu.dma_semaphore, #tpu.memory_space<semaphore_mem>> -> memref<!tpu.dma_semaphore, #tpu.memory_space<semaphore_mem>>
    tpu.wait_dma2 semaphore(%848 : memref<!tpu.dma_semaphore, #tpu.memory_space<semaphore_mem>>) src(%arg3 : memref<136x256xf32, #tpu.memory_space<any>>) dst(%arg6 : memref<136x256xf32, #tpu.memory_space<vmem>>)
    %c0_326 = arith.constant 0 : index
    %c0_327 = arith.constant 0 : index
    %849 = vector.load %arg5[%c0_326, %c0_327] : memref<576x128xf32, #tpu.memory_space<vmem>>, vector<32x128xf32>
    %c32_328 = arith.constant 32 : index
    %c0_329 = arith.constant 0 : index
    %850 = vector.load %arg5[%c32_328, %c0_329] : memref<576x128xf32, #tpu.memory_space<vmem>>, vector<1x128xf32>
    %cst_330 = arith.constant dense<0.000000e+00> : vector<8x128xf32>
    %851 = tpu.matmul %844, %849, %cst_330 {dimension_numbers = #tpu.dot_dimension_numbers<[1], [0], [0], [1], [0, 0, 1, 1], [], []>} : vector<8x32xf32>, vector<32x128xf32>, vector<8x128xf32> -> vector<8x128xf32>
    %852 = vector.broadcast %850 : vector<1x128xf32> to vector<8x128xf32>
    %853 = arith.addf %851, %852 : vector<8x128xf32>
    %cst_331 = arith.constant 0.000000e+00 : f32
    %854 = vector.broadcast %cst_331 : f32 to vector<8x128xf32>
    %855 = arith.maximumf %853, %854 : vector<8x128xf32>
    %c0_332 = arith.constant 0 : index
    %c0_333 = arith.constant 0 : index
    %856 = vector.load %arg6[%c0_332, %c0_333] : memref<136x256xf32, #tpu.memory_space<vmem>>, vector<128x256xf32>
    %c128 = arith.constant 128 : index
    %c0_334 = arith.constant 0 : index
    %857 = vector.load %arg6[%c128, %c0_334] : memref<136x256xf32, #tpu.memory_space<vmem>>, vector<1x256xf32>
    %cst_335 = arith.constant dense<0.000000e+00> : vector<8x256xf32>
    %858 = tpu.matmul %855, %856, %cst_335 {dimension_numbers = #tpu.dot_dimension_numbers<[1], [0], [0], [1], [0, 0, 1, 1], [], []>} : vector<8x128xf32>, vector<128x256xf32>, vector<8x256xf32> -> vector<8x256xf32>
    %859 = vector.broadcast %857 : vector<1x256xf32> to vector<8x256xf32>
    %860 = arith.addf %858, %859 : vector<8x256xf32>
    %cst_336 = arith.constant 0.000000e+00 : f32
    %861 = vector.broadcast %cst_336 : f32 to vector<8x256xf32>
    %862 = arith.maximumf %860, %861 : vector<8x256xf32>
    %c40_337 = arith.constant 40 : index
    %c0_338 = arith.constant 0 : index
    %863 = vector.load %arg5[%c40_337, %c0_338] : memref<576x128xf32, #tpu.memory_space<vmem>>, vector<256x128xf32>
    %c296 = arith.constant 296 : index
    %c0_339 = arith.constant 0 : index
    %864 = vector.load %arg5[%c296, %c0_339] : memref<576x128xf32, #tpu.memory_space<vmem>>, vector<1x128xf32>
    %cst_340 = arith.constant dense<0.000000e+00> : vector<8x128xf32>
    %865 = tpu.matmul %862, %863, %cst_340 {dimension_numbers = #tpu.dot_dimension_numbers<[1], [0], [0], [1], [0, 0, 1, 1], [], []>} : vector<8x256xf32>, vector<256x128xf32>, vector<8x128xf32> -> vector<8x128xf32>
    %866 = vector.broadcast %864 : vector<1x128xf32> to vector<8x128xf32>
    %867 = arith.addf %865, %866 : vector<8x128xf32>
    %cst_341 = arith.constant 0.000000e+00 : f32
    %868 = vector.broadcast %cst_341 : f32 to vector<8x128xf32>
    %869 = arith.maximumf %867, %868 : vector<8x128xf32>
    %c304 = arith.constant 304 : index
    %c0_342 = arith.constant 0 : index
    %870 = vector.load %arg5[%c304, %c0_342] : memref<576x128xf32, #tpu.memory_space<vmem>>, vector<128x128xf32>
    %c432 = arith.constant 432 : index
    %c0_343 = arith.constant 0 : index
    %871 = vector.load %arg5[%c432, %c0_343] : memref<576x128xf32, #tpu.memory_space<vmem>>, vector<1x128xf32>
    %cst_344 = arith.constant dense<0.000000e+00> : vector<8x128xf32>
    %872 = tpu.matmul %869, %870, %cst_344 {dimension_numbers = #tpu.dot_dimension_numbers<[1], [0], [0], [1], [0, 0, 1, 1], [], []>} : vector<8x128xf32>, vector<128x128xf32>, vector<8x128xf32> -> vector<8x128xf32>
    %873 = vector.broadcast %871 : vector<1x128xf32> to vector<8x128xf32>
    %874 = arith.addf %872, %873 : vector<8x128xf32>
    %cst_345 = arith.constant 0.000000e+00 : f32
    %875 = vector.broadcast %cst_345 : f32 to vector<8x128xf32>
    %876 = arith.maximumf %874, %875 : vector<8x128xf32>
    %c440 = arith.constant 440 : index
    %c0_346 = arith.constant 0 : index
    %877 = vector.load %arg5[%c440, %c0_346] : memref<576x128xf32, #tpu.memory_space<vmem>>, vector<128x128xf32>
    %c568 = arith.constant 568 : index
    %c0_347 = arith.constant 0 : index
    %878 = vector.load %arg5[%c568, %c0_347] : memref<576x128xf32, #tpu.memory_space<vmem>>, vector<1x128xf32>
    %cst_348 = arith.constant dense<0.000000e+00> : vector<8x128xf32>
    %879 = tpu.matmul %876, %877, %cst_348 {dimension_numbers = #tpu.dot_dimension_numbers<[1], [0], [0], [1], [0, 0, 1, 1], [], []>} : vector<8x128xf32>, vector<128x128xf32>, vector<8x128xf32> -> vector<8x128xf32>
    %880 = vector.broadcast %878 : vector<1x128xf32> to vector<8x128xf32>
    %881 = arith.addf %879, %880 : vector<8x128xf32>
    %c0_349 = arith.constant 0 : index
    %c0_350 = arith.constant 0 : index
    %882 = vector.load %arg4[%c0_349, %c0_350] : memref<8x128xf32, #tpu.memory_space<vmem>>, vector<8x128xf32>
    tpu.vector_store %arg4[%c0_349, %c0_350], %881 {strides = array<i32>} : memref<8x128xf32, #tpu.memory_space<vmem>>, vector<8x128xf32>,
    return
  }
}

</mosaic_0001>

<bundles_post_ra>
// kernel: tpu_custom_call.1
= control target key start
LH: loop header
LB: loop body
LE: loop exit
PB: predicated region body
PF: predicated region fallthrough
CT: control target
= control target key end

     0   :  { %9 = vsyncpa [#allocation6], 0  ;;  %vm5653_vm0 = vmmov 0   ;;  %s7303_s0 = inlined_call_operand.vmem [shape: f32[64,32], index: 0, kind: input, shape index: {}]   ;;  %s7304_s1 = inlined_call_operand.vmem [shape: f32[4,65,128], index: 1, kind: input, shape index: {}]   ;;  %s7305_s2 = inlined_call_operand.vmem [shape: f32[576,128], index: 2, kind: input, shape index: {}]   ;;  %s7306_s3 = inlined_call_operand.hbm [shape: f32[136,256], index: 3, kind: input, shape index: {}]   ;;  %s7307_s4 = inlined_call_operand.hbm [shape: f32[8,128], index: 4, kind: output, shape index: {}]  }
   0x1   :  { %v47_v0 = vld [vmem:[%s7305_s2] sm:$0xff]  ;;  %v49_v1 = vld [vmem:[%s7305_s2 + $0x8] sm:$0xff]  ;;  %v51_v2 = vld [vmem:[%s7305_s2 + $0x10] sm:$0xff] }
   0x2   :  { %48 = vst [vmem:[#allocation2] sm:$0xff] %v47_v0  ;;  %50 = vst [vmem:[#allocation2 + $0x8] sm:$0xff] %v49_v1  ;;  %v53_v3 = vld [vmem:[%s7305_s2 + $0x18] sm:$0xff]  ;;  %v55_v4 = vld [vmem:[%s7305_s2 + $0x20] sm:$0xff] }
   0x3   :  { %52 = vst [vmem:[#allocation2 + $0x10] sm:$0xff] %v51_v2  ;;  %54 = vst [vmem:[#allocation2 + $0x18] sm:$0xff] %v53_v3  ;;  %v57_v5 = vld [vmem:[%s7305_s2 + $0x28] sm:$0xff]  ;;  %v59_v6 = vld [vmem:[%s7305_s2 + $0x30] sm:$0xff] }
   0x4   :  { %56 = vst [vmem:[#allocation2 + $0x20] sm:$0xff] %v55_v4  ;;  %v61_v7 = vld [vmem:[%s7305_s2 + $0x38] sm:$0xff]  ;;  %58 = vst [vmem:[#allocation2 + $0x28] sm:$0xff] %v57_v5  ;;  %v63_v8 = vld [vmem:[%s7305_s2 + $0x40] sm:$0xff] }
   0x5   :  { %60 = vst [vmem:[#allocation2 + $0x30] sm:$0xff] %v59_v6  ;;  %62 = vst [vmem:[#allocation2 + $0x38] sm:$0xff] %v61_v7  ;;  %v65_v9 = vld [vmem:[%s7305_s2 + $0x48] sm:$0xff]  ;;  %v67_v10 = vld [vmem:[%s7305_s2 + $0x50] sm:$0xff] }
   0x6   :  { %64 = vst [vmem:[#allocation2 + $0x40] sm:$0xff] %v63_v8  ;;  %66 = vst [vmem:[#allocation2 + $0x48] sm:$0xff] %v65_v9  ;;  %v69_v11 = vld [vmem:[%s7305_s2 + $0x58] sm:$0xff]  ;;  %v71_v12 = vld [vmem:[%s7305_s2 + $0x60] sm:$0xff]  ;;  %v5652_v9 = vmov 0.0  }
   0x7   :  { %68 = vst [vmem:[#allocation2 + $0x50] sm:$0xff] %v67_v10  ;;  %v73_v13 = vld [vmem:[%s7305_s2 + $0x68] sm:$0xff]  ;;  %70 = vst [vmem:[#allocation2 + $0x58] sm:$0xff] %v69_v11  ;;  %v75_v14 = vld [vmem:[%s7305_s2 + $0x70] sm:$0xff]  ;;  %4664 = vmatprep.subr.mxu0 %v5652_v9  ;;  %4680 = vmatprep.mubr.msk.f32.mxu0 %vm5653_vm0, %v5652_v9 }
   0x8   :  { %72 = vst [vmem:[#allocation2 + $0x60] sm:$0xff] %v71_v12  ;;  %74 = vst [vmem:[#allocation2 + $0x68] sm:$0xff] %v73_v13  ;;  %v77_v15 = vld [vmem:[%s7305_s2 + $0x78] sm:$0xff]  ;;  %v79_v16 = vld [vmem:[%s7305_s2 + $0x80] sm:$0xff]  ;;  %4683 = vmatprep.subr.mxu1 %v5652_v9 }
   0x9   :  { %76 = vst [vmem:[#allocation2 + $0x70] sm:$0xff] %v75_v14  ;;  %78 = vst [vmem:[#allocation2 + $0x78] sm:$0xff] %v77_v15  ;;  %v81_v17 = vld [vmem:[%s7305_s2 + $0x88] sm:$0xff]  ;;  %v83_v18 = vld [vmem:[%s7305_s2 + $0x90] sm:$0xff] }
   0xa   :  { %80 = vst [vmem:[#allocation2 + $0x80] sm:$0xff] %v79_v16  ;;  %v85_v19 = vld [vmem:[%s7305_s2 + $0x98] sm:$0xff]  ;;  %82 = vst [vmem:[#allocation2 + $0x88] sm:$0xff] %v81_v17  ;;  %v87_v20 = vld [vmem:[%s7305_s2 + $0xa0] sm:$0xff] }
   0xb   :  { %84 = vst [vmem:[#allocation2 + $0x90] sm:$0xff] %v83_v18  ;;  %86 = vst [vmem:[#allocation2 + $0x98] sm:$0xff] %v85_v19  ;;  %v89_v21 = vld [vmem:[%s7305_s2 + $0xa8] sm:$0xff]  ;;  %v91_v22 = vld [vmem:[%s7305_s2 + $0xb0] sm:$0xff] }
   0xc   :  { %88 = vst [vmem:[#allocation2 + $0xa0] sm:$0xff] %v87_v20  ;;  %90 = vst [vmem:[#allocation2 + $0xa8] sm:$0xff] %v89_v21  ;;  %v93_v23 = vld [vmem:[%s7305_s2 + $0xb8] sm:$0xff]  ;;  %v95_v24 = vld [vmem:[%s7305_s2 + $0xc0] sm:$0xff] }
   0xd   :  { %92 = vst [vmem:[#allocation2 + $0xb0] sm:$0xff] %v91_v22  ;;  %v97_v25 = vld [vmem:[%s7305_s2 + $0xc8] sm:$0xff]  ;;  %94 = vst [vmem:[#allocation2 + $0xb8] sm:$0xff] %v93_v23  ;;  %v99_v26 = vld [vmem:[%s7305_s2 + $0xd0] sm:$0xff] }
   0xe   :  { %96 = vst [vmem:[#allocation2 + $0xc0] sm:$0xff] %v95_v24  ;;  %98 = vst [vmem:[#allocation2 + $0xc8] sm:$0xff] %v97_v25  ;;  %v101_v27 = vld [vmem:[%s7305_s2 + $0xd8] sm:$0xff]  ;;  %v103_v28 = vld [vmem:[%s7305_s2 + $0xe0] sm:$0xff] }
   0xf   :  { %100 = vst [vmem:[#allocation2 + $0xd0] sm:$0xff] %v99_v26  ;;  %102 = vst [vmem:[#allocation2 + $0xd8] sm:$0xff] %v101_v27  ;;  %v105_v29 = vld [vmem:[%s7305_s2 + $0xe8] sm:$0xff]  ;;  %v107_v30 = vld [vmem:[%s7305_s2 + $0xf0] sm:$0xff] }
  0x10   :  { %104 = vst [vmem:[#allocation2 + $0xe0] sm:$0xff] %v103_v28  ;;  %v109_v31 = vld [vmem:[%s7305_s2 + $0xf8] sm:$0xff]  ;;  %106 = vst [vmem:[#allocation2 + $0xe8] sm:$0xff] %v105_v29  ;;  %v111_v32 = vld [vmem:[%s7305_s2 + $0x100] sm:$0xff] }
  0x11   :  { %108 = vst [vmem:[#allocation2 + $0xf0] sm:$0xff] %v107_v30  ;;  %110 = vst [vmem:[#allocation2 + $0xf8] sm:$0xff] %v109_v31  ;;  %v113_v33 = vld [vmem:[%s7305_s2 + $0x108] sm:$0xff]  ;;  %v115_v34 = vld [vmem:[%s7305_s2 + $0x110] sm:$0xff] }
  0x12   :  { %112 = vst [vmem:[#allocation2 + $0x100] sm:$0xff] %v111_v32  ;;  %114 = vst [vmem:[#allocation2 + $0x108] sm:$0xff] %v113_v33  ;;  %v117_v35 = vld [vmem:[%s7305_s2 + $0x118] sm:$0xff]  ;;  %v119_v36 = vld [vmem:[%s7305_s2 + $0x120] sm:$0xff] }
  0x13   :  { %116 = vst [vmem:[#allocation2 + $0x110] sm:$0xff] %v115_v34  ;;  %v121_v37 = vld [vmem:[%s7305_s2 + $0x128] sm:$0xff]  ;;  %118 = vst [vmem:[#allocation2 + $0x118] sm:$0xff] %v117_v35  ;;  %v123_v38 = vld [vmem:[%s7305_s2 + $0x130] sm:$0xff] }
  0x14   :  { %120 = vst [vmem:[#allocation2 + $0x120] sm:$0xff] %v119_v36  ;;  %122 = vst [vmem:[#allocation2 + $0x128] sm:$0xff] %v121_v37  ;;  %v125_v39 = vld [vmem:[%s7305_s2 + $0x138] sm:$0xff]  ;;  %v127_v40 = vld [vmem:[%s7305_s2 + $0x140] sm:$0xff] }
  0x15   :  { %124 = vst [vmem:[#allocation2 + $0x130] sm:$0xff] %v123_v38  ;;  %126 = vst [vmem:[#allocation2 + $0x138] sm:$0xff] %v125_v39  ;;  %v129_v41 = vld [vmem:[%s7305_s2 + $0x148] sm:$0xff]  ;;  %v131_v42 = vld [vmem:[%s7305_s2 + $0x150] sm:$0xff] }
  0x16   :  { %128 = vst [vmem:[#allocation2 + $0x140] sm:$0xff] %v127_v40  ;;  %v133_v43 = vld [vmem:[%s7305_s2 + $0x158] sm:$0xff]  ;;  %130 = vst [vmem:[#allocation2 + $0x148] sm:$0xff] %v129_v41  ;;  %v135_v44 = vld [vmem:[%s7305_s2 + $0x160] sm:$0xff] }
  0x17   :  { %132 = vst [vmem:[#allocation2 + $0x150] sm:$0xff] %v131_v42  ;;  %134 = vst [vmem:[#allocation2 + $0x158] sm:$0xff] %v133_v43  ;;  %v137_v45 = vld [vmem:[%s7305_s2 + $0x168] sm:$0xff]  ;;  %v139_v46 = vld [vmem:[%s7305_s2 + $0x170] sm:$0xff] }
  0x18   :  { %136 = vst [vmem:[#allocation2 + $0x160] sm:$0xff] %v135_v44  ;;  %138 = vst [vmem:[#allocation2 + $0x168] sm:$0xff] %v137_v45  ;;  %v141_v47 = vld [vmem:[%s7305_s2 + $0x178] sm:$0xff]  ;;  %v143_v48 = vld [vmem:[%s7305_s2 + $0x180] sm:$0xff] }
  0x19   :  { %140 = vst [vmem:[#allocation2 + $0x170] sm:$0xff] %v139_v46  ;;  %v145_v49 = vld [vmem:[%s7305_s2 + $0x188] sm:$0xff]  ;;  %142 = vst [vmem:[#allocation2 + $0x178] sm:$0xff] %v141_v47  ;;  %v147_v50 = vld [vmem:[%s7305_s2 + $0x190] sm:$0xff] }
  0x1a   :  { %144 = vst [vmem:[#allocation2 + $0x180] sm:$0xff] %v143_v48  ;;  %146 = vst [vmem:[#allocation2 + $0x188] sm:$0xff] %v145_v49  ;;  %v149_v51 = vld [vmem:[%s7305_s2 + $0x198] sm:$0xff]  ;;  %v151_v52 = vld [vmem:[%s7305_s2 + $0x1a0] sm:$0xff] }
  0x1b   :  { %148 = vst [vmem:[#allocation2 + $0x190] sm:$0xff] %v147_v50  ;;  %150 = vst [vmem:[#allocation2 + $0x198] sm:$0xff] %v149_v51  ;;  %v153_v53 = vld [vmem:[%s7305_s2 + $0x1a8] sm:$0xff]  ;;  %v155_v54 = vld [vmem:[%s7305_s2 + $0x1b0] sm:$0xff] }
  0x1c   :  { %152 = vst [vmem:[#allocation2 + $0x1a0] sm:$0xff] %v151_v52  ;;  %v157_v55 = vld [vmem:[%s7305_s2 + $0x1b8] sm:$0xff]  ;;  %154 = vst [vmem:[#allocation2 + $0x1a8] sm:$0xff] %v153_v53  ;;  %v159_v56 = vld [vmem:[%s7305_s2 + $0x1c0] sm:$0xff] }
  0x1d   :  { %156 = vst [vmem:[#allocation2 + $0x1b0] sm:$0xff] %v155_v54  ;;  %158 = vst [vmem:[#allocation2 + $0x1b8] sm:$0xff] %v157_v55  ;;  %v161_v57 = vld [vmem:[%s7305_s2 + $0x1c8] sm:$0xff]  ;;  %v163_v58 = vld [vmem:[%s7305_s2 + $0x1d0] sm:$0xff] }
  0x1e   :  { %160 = vst [vmem:[#allocation2 + $0x1c0] sm:$0xff] %v159_v56  ;;  %162 = vst [vmem:[#allocation2 + $0x1c8] sm:$0xff] %v161_v57  ;;  %v165_v59 = vld [vmem:[%s7305_s2 + $0x1d8] sm:$0xff]  ;;  %v167_v60 = vld [vmem:[%s7305_s2 + $0x1e0] sm:$0xff] }
  0x1f   :  { %164 = vst [vmem:[#allocation2 + $0x1d0] sm:$0xff] %v163_v58  ;;  %v169_v61 = vld [vmem:[%s7305_s2 + $0x1e8] sm:$0xff]  ;;  %166 = vst [vmem:[#allocation2 + $0x1d8] sm:$0xff] %v165_v59  ;;  %v171_v62 = vld [vmem:[%s7305_s2 + $0x1f0] sm:$0xff] }
  0x20   :  { %168 = vst [vmem:[#allocation2 + $0x1e0] sm:$0xff] %v167_v60  ;;  %170 = vst [vmem:[#allocation2 + $0x1e8] sm:$0xff] %v169_v61  ;;  %v173_v63 = vld [vmem:[%s7305_s2 + $0x1f8] sm:$0xff]  ;;  %v175_v0 = vld [vmem:[%s7305_s2 + $0x200] sm:$0xff] }
  0x21   :  { %172 = vst [vmem:[#allocation2 + $0x1f0] sm:$0xff] %v171_v62  ;;  %174 = vst [vmem:[#allocation2 + $0x1f8] sm:$0xff] %v173_v63  ;;  %v177_v1 = vld [vmem:[%s7305_s2 + $0x208] sm:$0xff]  ;;  %v179_v2 = vld [vmem:[%s7305_s2 + $0x210] sm:$0xff] }
  0x22   :  { %176 = vst [vmem:[#allocation2 + $0x200] sm:$0xff] %v175_v0  ;;  %v181_v3 = vld [vmem:[%s7305_s2 + $0x218] sm:$0xff]  ;;  %178 = vst [vmem:[#allocation2 + $0x208] sm:$0xff] %v177_v1  ;;  %v183_v4 = vld [vmem:[%s7305_s2 + $0x220] sm:$0xff] }
  0x23   :  { %180 = vst [vmem:[#allocation2 + $0x210] sm:$0xff] %v179_v2  ;;  %182 = vst [vmem:[#allocation2 + $0x218] sm:$0xff] %v181_v3  ;;  %v185_v5 = vld [vmem:[%s7305_s2 + $0x228] sm:$0xff]  ;;  %v187_v6 = vld [vmem:[%s7305_s2 + $0x230] sm:$0xff] }
  0x24   :  { %184 = vst [vmem:[#allocation2 + $0x220] sm:$0xff] %v183_v4  ;;  %186 = vst [vmem:[#allocation2 + $0x228] sm:$0xff] %v185_v5  ;;  %v189_v7 = vld [vmem:[%s7305_s2 + $0x238] sm:$0xff]  ;;  %v5908_v10 = vld [vmem:[%s7304_s1 + $0x30] sm:$0xff] }
  0x25   :  { %188 = vst [vmem:[#allocation2 + $0x230] sm:$0xff] %v187_v6  ;;  %190 = vst [vmem:[#allocation2 + $0x238] sm:$0xff] %v189_v7  ;;  %v5902_v8 = vld [vmem:[%s7304_s1 + $0x38] sm:$0xff]  ;;  %v5918_v11 = vld [vmem:[%s7304_s1 + $0x28] sm:$0xff] }
  0x26   :  { %4665 = vmatpush3.msra.mxu0 %v5902_v8  ;;  %4684 = vmatpush3.msra.mxu1 %v5902_v8 }
  0x27   :  { %4666 = vmatprep.subr.mxu0 %v5652_v9 }
  0x28   :  { %198 = vsyncadd [#allocation4], 9216  ;;  %4667 = vmatpush3.msra.mxu0 %v5908_v10  ;;  %4685 = vmatprep.subr.mxu1 %v5652_v9  ;;  %v5927_v12 = vld [vmem:[%s7304_s1 + $0x20] sm:$0xff]  ;;  %v5936_v13 = vld [vmem:[%s7304_s1 + $0x18] sm:$0xff]  ;;  %vm212_vm1 = vcmask 261120   ;;  %vm227_vm2 = vcmask 523264  }
  0x29   :  { %4668 = vmatprep.subr.mxu0 %v5652_v9  ;;  %4686 = vmatpush3.msra.mxu1 %v5908_v10  ;;  %v5945_v14 = vld [vmem:[%s7304_s1 + $0x10] sm:$0xff]  ;;  %v5954_v15 = vld [vmem:[%s7304_s1 + $0x8] sm:$0xff]  ;;  %v211_v16 = vld [vmem:[%s7303_s0] sm:$0xff]  ;;  %s5654_s22 = smov 64   ;;  %s5655_s23 = smov 32  }
  0x2a   :  { %4669 = vmatpush3.msra.mxu0 %v5918_v11  ;;  %4687 = vmatprep.subr.mxu1 %v5652_v9  ;;  %v5966_v17 = vld [vmem:[%s7304_s1] sm:$0xff]  ;;  %v213_v18 = vsel %vm212_vm1, %v211_v16, 0.0  ;;  %v6003_v35 = vld [vmem:[%s7304_s1 + $0x78] sm:$0xff]  ;;  %v6010_v36 = vld [vmem:[%s7304_s1 + $0x70] sm:$0xff] }
  0x2b   :  { %4670 = vmatprep.subr.mxu0 %v5652_v9  ;;  %4688 = vmatpush3.msra.mxu1 %v5918_v11  ;;  %v5987_v19 = vld [vmem:[%s7304_s1 + $0x40] ss:$0 sm:$0xff]  ;;  %v6017_v37 = vld [vmem:[%s7304_s1 + $0x68] sm:$0xff]  ;;  %v6031_v39 = vld [vmem:[%s7304_s1 + $0x58] sm:$0xff] }
  0x2c   :  { %4671 = vmatpush3.msra.mxu0 %v5927_v12  ;;  %4689 = vmatprep.subr.mxu1 %v5652_v9  ;;  %v5998_v34 = vld [vmem:[%s7304_s1 + $0x80] sm:$0xff]  ;;  %v6038_v41 = vld [vmem:[%s7304_s1 + $0x50] sm:$0xff]  ;;  %v6048_v42 = vld [vmem:[%s7304_s1 + $0x48] sm:$0xff] }
  0x2d   :  { %4672 = vmatprep.subr.mxu0 %v5652_v9  ;;  %4690 = vmatpush3.msra.mxu1 %v5927_v12  ;;  %v6024_v38 = vld [vmem:[%s7304_s1 + $0x60] sm:$0xff]  ;;  %v326_v45 = vld [vmem:[%s7303_s0 + $0x8] sm:$0xff] }
  0x2e   :  { %4673 = vmatpush3.msra.mxu0 %v5936_v13  ;;  %4691 = vmatprep.subr.mxu1 %v5652_v9  ;;  %v6100_v50 = vld [vmem:[%s7304_s1 + $0x88] ss:$0 sm:$0xff] }
  0x2f   :  { %4674 = vmatprep.subr.mxu0 %v5652_v9  ;;  %4692 = vmatpush3.msra.mxu1 %v5936_v13 }
  0x30   :  { %4675 = vmatpush3.msra.mxu0 %v5945_v14  ;;  %4693 = vmatprep.subr.mxu1 %v5652_v9 }
  0x31   :  { %4676 = vmatprep.subr.mxu0 %v5652_v9  ;;  %4694 = vmatpush3.msra.mxu1 %v5945_v14 }
  0x32   :  { %4677 = vmatpush3.msra.mxu0 %v5954_v15  ;;  %4695 = vmatprep.subr.mxu1 %v5652_v9 }
  0x33   :  { %4678 = vmatprep.subr.mxu0 %v5652_v9  ;;  %4696 = vmatpush3.msra.mxu1 %v5954_v15 }
  0x34   :  { %4679 = vmatpush3.msra.mxu0 %v5966_v17  ;;  %4697 = vmatprep.subr.mxu1 %v5652_v9 }
  0x35   :  { %4681 = vmatmul.mubr.msk.f32.vlgmr.msra.gmra.mxu0 %vm227_vm2, %v213_v18  ;;  %4702 = vmatprep.subr.mxu0 %v5652_v9 }
  0x36   :  { %4698 = vmatpush3.msra.mxu1 %v5966_v17  ;;  %4699 = vmatprep.mubr.msk.f32.mxu1 %vm5653_vm0, %v5652_v9 }
  0x37   :  { %4718 = vmatprep.mubr.msk.f32.mxu0 %vm5653_vm0, %v5652_v9  ;;  %4721 = vmatprep.subr.mxu1 %v5652_v9 }
  0x38   :  { %4703 = vmatpush3.msra.mxu0 %v5998_v34 }
  0x39   :  { %4704 = vmatprep.subr.mxu0 %v5652_v9 }
  0x3a   :  { %4705 = vmatpush3.msra.mxu0 %v6003_v35 }
  0x3b   :  { %4706 = vmatprep.subr.mxu0 %v5652_v9 }
  0x3c   :  { %4707 = vmatpush3.msra.mxu0 %v6010_v36 }
  0x3d   :  { %4708 = vmatprep.subr.mxu0 %v5652_v9 }
  0x3e   :  { %4709 = vmatpush3.msra.mxu0 %v6017_v37 }
  0x3f   :  { %4710 = vmatprep.subr.mxu0 %v5652_v9 }
  0x40   :  { %4711 = vmatpush3.msra.mxu0 %v6024_v38 }
  0x41   :  { %4712 = vmatprep.subr.mxu0 %v5652_v9 }
  0x42   :  { %4713 = vmatpush3.msra.mxu0 %v6031_v39 }
  0x43   :  { %4714 = vmatprep.subr.mxu0 %v5652_v9 }
  0x44   :  { %4715 = vmatpush3.msra.mxu0 %v6038_v41 }
  0x45   :  { %4716 = vmatprep.subr.mxu0 %v5652_v9 }
  0x46   :  { %4717 = vmatpush3.msra.mxu0 %v6048_v42 }
  0x47   :  { %4740 = vmatprep.subr.mxu0 %v5652_v9 }
  0xf5   :  { %v297_v20 = vpop.f32.mrf.mxu0 }
  0xf6   :  { %v298_v21 = vadd.f32 %v5987_v19, %v297_v20 }
  0xf7   :  { %v4682_v22 = vpop.f32.mrf.mxu0 }
  0xf8   :  { %v4170_v23 = vmul.f32 -1.442695, %v298_v21 }
  0xfa   :  { %5359 = vpow2.f32 %v4170_v23 }
 0x107   :  { %v5360_v24 = vpop.eup %5359 }
 0x108   :  { %v304_v25 = vadd.f32 1.0, %v5360_v24 }
 0x10a   :  { %5361 = vrcp.f32 %v304_v25 }
 0x117   :  { %v5362_v26 = vpop.eup %5361 }
 0x118   :  { %v307_v27 = vmul.f32 2.0, %v5362_v26  ;;  %v309_v31 = vmul.f32 0.0, %v5362_v26 }
 0x11a   :  { %v4171_v28 = vadd.f32 -1.0, %v307_v27 }
 0x11c   :  { %311 = vrot.lane.b32.xlu0 %v4171_v28, %s5654_s22 }
 0x18e   :  { %v312_v29 = vpop.permute.xlu0 %311 }
 0x18f   :  { %v314_v30 = vmul.f32 %v5362_v26, %v312_v29 }
 0x191   :  { %316 = vrot.lane.b32.xlu0 %v314_v30, %s5655_s23 }
 0x203   :  { %v317_v32 = vpop.permute.xlu0 %316 }
 0x204   :  { %v5992_v33 = vadd.f32 %v317_v32, %v309_v31  ;;  %v546_v31 = vld [vmem:[%s7303_s0 + $0x10] sm:$0xff] }
 0x206   :  { %5363 = vtanh.f32 %v5992_v33 }
 0x213   :  { %v5364_v40 = vpop.eup %5363 }
 0x214   :  { %322 = vrot.lane.b32.xlu1 %v5364_v40, %s5654_s22 }
 0x286   :  { %v323_v43 = vpop.permute.xlu1 %322 }
 0x287   :  { %v325_v44 = vmul.f32 %v5362_v26, %v323_v43  ;;  %v6134_v43 = vld [vmem:[%s7304_s1 + $0xc0] sm:$0xff] }
 0x289   :  { %430 = vrot.lane.b32.xlu0 %v325_v44, %s5655_s23  ;;  %328 = vrot.lane.b32.xlu1 %v325_v44, %s5654_s22 }
 0x2fb   :  { %v431_v46 = vpop.permute.xlu0 %430  ;;  %v329_v47 = vpop.permute.xlu1 %328 }
 0x2fc   :  { %v433_v48 = vsel %vm212_vm1, %v431_v46, 0.0  ;;  %v331_v49 = vsel %vm212_vm1, %v326_v45, %v329_v47  ;;  %v6143_v46 = vld [vmem:[%s7304_s1 + $0xb8] sm:$0xff] }
 0x2fd   :  { %4700 = vmatmul.mubr.msk.f32.vlgmr.msra.gmra.mxu1 %vm227_vm2, %v331_v49  ;;  %4719 = vmatmul.mubr.msk.f32.vlgmr.msra.gmra.mxu0 %vm227_vm2, %v433_v48  ;;  %v6152_v48 = vld [vmem:[%s7304_s1 + $0xb0] sm:$0xff]  ;;  %v6160_v49 = vld [vmem:[%s7304_s1 + $0xa8] sm:$0xff] }
 0x2fe   :  { %4722 = vmatpush3.msra.mxu1 %v5902_v8  ;;  %4741 = vmatpush3.msra.mxu0 %v5998_v34 }
 0x2ff   :  { %4723 = vmatprep.subr.mxu1 %v5652_v9  ;;  %4742 = vmatprep.subr.mxu0 %v5652_v9 }
 0x300   :  { %4724 = vmatpush3.msra.mxu1 %v5908_v10  ;;  %4743 = vmatpush3.msra.mxu0 %v6003_v35 }
 0x301   :  { %4725 = vmatprep.subr.mxu1 %v5652_v9  ;;  %4744 = vmatprep.subr.mxu0 %v5652_v9 }
 0x302   :  { %4726 = vmatpush3.msra.mxu1 %v5918_v11  ;;  %4745 = vmatpush3.msra.mxu0 %v6010_v36 }
 0x303   :  { %4727 = vmatprep.subr.mxu1 %v5652_v9  ;;  %4746 = vmatprep.subr.mxu0 %v5652_v9 }
 0x304   :  { %4728 = vmatpush3.msra.mxu1 %v5927_v12  ;;  %4747 = vmatpush3.msra.mxu0 %v6017_v37 }
 0x305   :  { %4729 = vmatprep.subr.mxu1 %v5652_v9  ;;  %4748 = vmatprep.subr.mxu0 %v5652_v9 }
 0x306   :  { %4730 = vmatpush3.msra.mxu1 %v5936_v13  ;;  %4749 = vmatpush3.msra.mxu0 %v6024_v38 }
 0x307   :  { %4731 = vmatprep.subr.mxu1 %v5652_v9  ;;  %4750 = vmatprep.subr.mxu0 %v5652_v9 }
 0x308   :  { %4732 = vmatpush3.msra.mxu1 %v5945_v14  ;;  %4737 = vmatprep.mubr.msk.f32.mxu1 %vm5653_vm0, %v5652_v9 }
 0x309   :  { %4733 = vmatprep.subr.mxu1 %v5652_v9  ;;  %4751 = vmatpush3.msra.mxu0 %v6031_v39 }
 0x30a   :  { %4734 = vmatpush3.msra.mxu1 %v5954_v15  ;;  %4752 = vmatprep.subr.mxu0 %v5652_v9 }
 0x30b   :  { %4735 = vmatprep.subr.mxu1 %v5652_v9  ;;  %4753 = vmatpush3.msra.mxu0 %v6038_v41 }
 0x30c   :  { %4736 = vmatpush3.msra.mxu1 %v5966_v17  ;;  %4754 = vmatprep.subr.mxu0 %v5652_v9 }
 0x30d   :  { %4759 = vmatprep.subr.mxu1 %v5652_v9  ;;  %4755 = vmatpush3.msra.mxu0 %v6048_v42 }
 0x30e   :  { %4756 = vmatprep.mubr.msk.f32.mxu0 %vm5653_vm0, %v5652_v9  ;;  %4778 = vmatprep.subr.mxu0 %v5652_v9 }
 0x3bd   :  { %v401_v51 = vpop.f32.mrf.mxu1  ;;  %v517_v52 = vpop.f32.mrf.mxu0 }
 0x3be   :  { %v402_v53 = vadd.f32 %v5987_v19, %v401_v51  ;;  %v518_v54 = vadd.f32 %v6100_v50, %v517_v52  ;;  %v6169_v51 = vld [vmem:[%s7304_s1 + $0xa0] sm:$0xff]  ;;  %v6178_v52 = vld [vmem:[%s7304_s1 + $0x98] sm:$0xff] }
 0x3bf   :  { %v4701_v55 = vpop.f32.mrf.mxu1  ;;  %v4720_v56 = vpop.f32.mrf.mxu0 }
 0x3c0   :  { %v4173_v57 = vmul.f32 -1.442695, %v402_v53  ;;  %v4186_v58 = vmul.f32 -1.442695, %v518_v54  ;;  %v6187_v54 = vld [vmem:[%s7304_s1 + $0x90] sm:$0xff] }
 0x3c2   :  { %5365 = vpow2.f32 %v4173_v57 }
 0x3c3   :  { %5367 = vpow2.f32 %v4186_v58 }
 0x3cf   :  { %v5366_v59 = vpop.eup %5365 }
 0x3d0   :  { %v5368_v60 = vpop.eup %5367  ;;  %v408_v61 = vadd.f32 1.0, %v5366_v59 }
 0x3d1   :  { %v524_v62 = vadd.f32 1.0, %v5368_v60 }
 0x3d2   :  { %5369 = vrcp.f32 %v408_v61 }
 0x3d3   :  { %5371 = vrcp.f32 %v524_v62 }
 0x3df   :  { %v5370_v63 = vpop.eup %5369 }
 0x3e0   :  { %v5372_v0 = vpop.eup %5371  ;;  %v411_v1 = vmul.f32 2.0, %v5370_v63  ;;  %v413_v18 = vmul.f32 %v5370_v63, %v5992_v33  ;;  %v6127_v33 = vld [vmem:[%s7304_s1 + $0xc8] sm:$0xff] }
 0x3e1   :  { %v527_v2 = vmul.f32 2.0, %v5372_v0  ;;  %v529_v21 = vmul.f32 0.0, %v5372_v0 }
 0x3e2   :  { %v4174_v3 = vadd.f32 -1.0, %v411_v1 }
 0x3e3   :  { %v4187_v4 = vadd.f32 -1.0, %v527_v2 }
 0x3e4   :  { %415 = vrot.lane.b32.xlu1 %v4174_v3, %s5654_s22 }
 0x3e5   :  { %531 = vrot.lane.b32.xlu0 %v4187_v4, %s5654_s22 }
 0x456   :  { %v416_v5 = vpop.permute.xlu1 %415 }
 0x457   :  { %v418_v6 = vmul.f32 %v5370_v63, %v416_v5  ;;  %v532_v7 = vpop.permute.xlu0 %531 }
 0x458   :  { %v534_v16 = vmul.f32 %v5372_v0, %v532_v7 }
 0x459   :  { %420 = vrot.lane.b32.xlu1 %v418_v6, %s5655_s23 }
 0x45a   :  { %536 = vrot.lane.b32.xlu0 %v534_v16, %s5655_s23 }
 0x4cb   :  { %v421_v20 = vpop.permute.xlu1 %420 }
 0x4cc   :  { %v6109_v22 = vadd.f32 %v421_v20, %v413_v18  ;;  %v537_v23 = vpop.permute.xlu0 %536 }
 0x4cd   :  { %v6111_v24 = vadd.f32 %v537_v23, %v529_v21 }
 0x4ce   :  { %5373 = vtanh.f32 %v6109_v22 }
 0x4cf   :  { %5375 = vtanh.f32 %v6111_v24 }
 0x4db   :  { %v5374_v25 = vpop.eup %5373 }
 0x4dc   :  { %v5376_v26 = vpop.eup %5375  ;;  %426 = vrot.lane.b32.xlu1 %v5374_v25, %s5654_s22 }
 0x4dd   :  { %542 = vrot.lane.b32.xlu0 %v5376_v26, %s5654_s22 }
 0x54e   :  { %v427_v27 = vpop.permute.xlu1 %426 }
 0x54f   :  { %v429_v28 = vmul.f32 %v5370_v63, %v427_v27  ;;  %v543_v29 = vpop.permute.xlu0 %542 }
 0x550   :  { %v545_v30 = vmul.f32 %v5372_v0, %v543_v29  ;;  %v6229_v0 = vld [vmem:[%s7304_s1 + $0xd0] ss:$0 sm:$0xff] }
 0x551   :  { %548 = vrot.lane.b32.xlu1 %v429_v28, %s5654_s22  ;;  %650 = vrot.lane.b32.xlu0 %v429_v28, %s5655_s23 }
 0x555   :  { %756 = vrot.lane.b32.xlu0 %v545_v30, %s5655_s23  ;;  %654 = vrot.lane.b32.xlu1 %v545_v30, %s5654_s22 }
 0x5c3   :  { %v549_v32 = vpop.permute.xlu1 %548  ;;  %v651_v44 = vpop.permute.xlu0 %650 }
 0x5c4   :  { %v551_v40 = vsel %vm212_vm1, %v546_v31, %v549_v32 }
 0x5c5   :  { %4738 = vmatmul.mubr.msk.f32.vlgmr.msra.gmra.mxu1 %vm227_vm2, %v551_v40 }
 0x5c6   :  { %4760 = vmatpush3.msra.mxu1 %v6127_v33  ;;  %4775 = vmatprep.mubr.msk.f32.mxu1 %vm5653_vm0, %v5652_v9 }
 0x5c7   :  { %4761 = vmatprep.subr.mxu1 %v5652_v9  ;;  %v655_v45 = vpop.permute.xlu1 %654  ;;  %v757_v53 = vpop.permute.xlu0 %756 }
 0x5c8   :  { %4762 = vmatpush3.msra.mxu1 %v6134_v43  ;;  %v657_v47 = vsel %vm212_vm1, %v651_v44, %v655_v45  ;;  %v759_v55 = vsel %vm212_vm1, %v757_v53, 0.0 }
 0x5c9   :  { %4763 = vmatprep.subr.mxu1 %v5652_v9  ;;  %4757 = vmatmul.mubr.msk.f32.vlgmr.msra.gmra.mxu0 %vm227_vm2, %v657_v47 }
 0x5ca   :  { %4764 = vmatpush3.msra.mxu1 %v6143_v46  ;;  %4779 = vmatpush3.msra.mxu0 %v5902_v8 }
 0x5cb   :  { %4765 = vmatprep.subr.mxu1 %v5652_v9  ;;  %4780 = vmatprep.subr.mxu0 %v5652_v9 }
 0x5cc   :  { %4766 = vmatpush3.msra.mxu1 %v6152_v48  ;;  %4781 = vmatpush3.msra.mxu0 %v5908_v10 }
 0x5cd   :  { %4767 = vmatprep.subr.mxu1 %v5652_v9  ;;  %4782 = vmatprep.subr.mxu0 %v5652_v9 }
 0x5ce   :  { %4768 = vmatpush3.msra.mxu1 %v6160_v49  ;;  %4783 = vmatpush3.msra.mxu0 %v5918_v11 }
 0x5cf   :  { %4769 = vmatprep.subr.mxu1 %v5652_v9  ;;  %4784 = vmatprep.subr.mxu0 %v5652_v9 }
 0x5d0   :  { %4770 = vmatpush3.msra.mxu1 %v6169_v51  ;;  %4785 = vmatpush3.msra.mxu0 %v5927_v12 }
 0x5d1   :  { %4771 = vmatprep.subr.mxu1 %v5652_v9  ;;  %4786 = vmatprep.subr.mxu0 %v5652_v9 }
 0x5d2   :  { %4772 = vmatpush3.msra.mxu1 %v6178_v52  ;;  %4787 = vmatpush3.msra.mxu0 %v5936_v13 }
 0x5d3   :  { %4773 = vmatprep.subr.mxu1 %v5652_v9  ;;  %4788 = vmatprep.subr.mxu0 %v5652_v9 }
 0x5d4   :  { %4774 = vmatpush3.msra.mxu1 %v6187_v54  ;;  %4789 = vmatpush3.msra.mxu0 %v5945_v14 }
 0x5d5   :  { %4776 = vmatmul.mubr.msk.f32.vlgmr.msra.gmra.mxu1 %vm227_vm2, %v759_v55  ;;  %4797 = vmatprep.subr.mxu1 %v5652_v9 }
 0x5d6   :  { %4798 = vmatpush3.msra.mxu1 %v5998_v34  ;;  %4790 = vmatprep.subr.mxu0 %v5652_v9 }
 0x5d7   :  { %4799 = vmatprep.subr.mxu1 %v5652_v9  ;;  %4791 = vmatpush3.msra.mxu0 %v5954_v15 }
 0x5d8   :  { %4800 = vmatpush3.msra.mxu1 %v6003_v35  ;;  %4792 = vmatprep.subr.mxu0 %v5652_v9 }
 0x5d9   :  { %4801 = vmatprep.subr.mxu1 %v5652_v9  ;;  %4793 = vmatpush3.msra.mxu0 %v5966_v17 }
 0x5da   :  { %4802 = vmatpush3.msra.mxu1 %v6010_v36  ;;  %4794 = vmatprep.mubr.msk.f32.mxu0 %vm5653_vm0, %v5652_v9 }
 0x5db   :  { %4803 = vmatprep.subr.mxu1 %v5652_v9  ;;  %4816 = vmatprep.subr.mxu0 %v5652_v9 }
 0x5dc   :  { %4804 = vmatpush3.msra.mxu1 %v6017_v37  ;;  %4813 = vmatprep.mubr.msk.f32.mxu1 %vm5653_vm0, %v5652_v9 }
 0x5dd   :  { %4805 = vmatprep.subr.mxu1 %v5652_v9 }
 0x5de   :  { %4806 = vmatpush3.msra.mxu1 %v6024_v38 }
 0x5df   :  { %4807 = vmatprep.subr.mxu1 %v5652_v9 }
 0x5e0   :  { %4808 = vmatpush3.msra.mxu1 %v6031_v39 }
 0x5e1   :  { %4809 = vmatprep.subr.mxu1 %v5652_v9 }
 0x5e2   :  { %4810 = vmatpush3.msra.mxu1 %v6038_v41 }
 0x5e3   :  { %4811 = vmatprep.subr.mxu1 %v5652_v9 }
 0x5e4   :  { %4812 = vmatpush3.msra.mxu1 %v6048_v42 }
 0x5e5   :  { %4835 = vmatprep.subr.mxu1 %v5652_v9 }
 0x685   :  { %v621_v56 = vpop.f32.mrf.mxu1 }
 0x686   :  { %v622_v57 = vadd.f32 %v5987_v19, %v621_v56 }
 0x687   :  { %v4739_v58 = vpop.f32.mrf.mxu1 }
 0x688   :  { %v4189_v59 = vmul.f32 -1.442695, %v622_v57 }
 0x689   :  { %v727_v60 = vpop.f32.mrf.mxu0 }
 0x68a   :  { %5377 = vpow2.f32 %v4189_v59  ;;  %v728_v61 = vadd.f32 %v6100_v50, %v727_v60 }
 0x68b   :  { %v4758_v62 = vpop.f32.mrf.mxu0 }
 0x68c   :  { %v4192_v63 = vmul.f32 -1.442695, %v728_v61 }
 0x68e   :  { %5379 = vpow2.f32 %v4192_v63 }
 0x695   :  { %v843_v1 = vpop.f32.mrf.mxu1 }
 0x696   :  { %v844_v2 = vadd.f32 %v6229_v0, %v843_v1 }
 0x697   :  { %v5378_v3 = vpop.eup %5377  ;;  %v4777_v4 = vpop.f32.mrf.mxu1 }
 0x698   :  { %v628_v5 = vadd.f32 1.0, %v5378_v3  ;;  %v4205_v6 = vmul.f32 -1.442695, %v844_v2 }
 0x69a   :  { %5381 = vrcp.f32 %v628_v5 }
 0x69b   :  { %v5380_v7 = vpop.eup %5379  ;;  %5383 = vpow2.f32 %v4205_v6 }
 0x69c   :  { %v734_v16 = vadd.f32 1.0, %v5380_v7 }
 0x69e   :  { %5385 = vrcp.f32 %v734_v16  ;;  %v872_v16 = vld [vmem:[%s7303_s0 + $0x18] sm:$0xff] }
 0x6a7   :  { %v5382_v18 = vpop.eup %5381 }
 0x6a8   :  { %v5384_v20 = vpop.eup %5383  ;;  %v631_v21 = vmul.f32 2.0, %v5382_v18  ;;  %v633_v55 = vmul.f32 %v5382_v18, %v6109_v22 }
 0x6a9   :  { %v850_v23 = vadd.f32 1.0, %v5384_v20 }
 0x6aa   :  { %v4190_v25 = vadd.f32 -1.0, %v631_v21 }
 0x6ab   :  { %v5386_v26 = vpop.eup %5385  ;;  %5387 = vrcp.f32 %v850_v23 }
 0x6ac   :  { %635 = vrot.lane.b32.xlu1 %v4190_v25, %s5654_s22  ;;  %v737_v27 = vmul.f32 2.0, %v5386_v26  ;;  %v739_v58 = vmul.f32 %v5386_v26, %v6111_v24  ;;  %v6270_v25 = vld [vmem:[%s7304_s1 + $0x110] sm:$0xff] }
 0x6ae   :  { %v4193_v28 = vadd.f32 -1.0, %v737_v27  ;;  %v6279_v27 = vld [vmem:[%s7304_s1 + $0x108] sm:$0xff] }
 0x6b0   :  { %741 = vrot.lane.b32.xlu0 %v4193_v28, %s5654_s22  ;;  %v6288_v28 = vld [vmem:[%s7304_s1 + $0x100] sm:$0xff] }
 0x6b8   :  { %v5388_v29 = vpop.eup %5387 }
 0x6b9   :  { %v853_v30 = vmul.f32 2.0, %v5388_v29  ;;  %v855_v62 = vmul.f32 0.0, %v5388_v29 }
 0x6bb   :  { %v4206_v31 = vadd.f32 -1.0, %v853_v30  ;;  %v6306_v30 = vld [vmem:[%s7304_s1 + $0xf0] sm:$0xff] }
 0x6bd   :  { %857 = vrot.lane.b32.xlu1 %v4206_v31, %s5654_s22 }
 0x71e   :  { %v636_v32 = vpop.permute.xlu1 %635 }
 0x71f   :  { %v638_v40 = vmul.f32 %v5382_v18, %v636_v32  ;;  %v6315_v32 = vld [vmem:[%s7304_s1 + $0xe8] sm:$0xff] }
 0x721   :  { %640 = vrot.lane.b32.xlu0 %v638_v40, %s5655_s23  ;;  %v6324_v40 = vld [vmem:[%s7304_s1 + $0xe0] sm:$0xff] }
 0x722   :  { %v742_v44 = vpop.permute.xlu0 %741 }
 0x723   :  { %v744_v45 = vmul.f32 %v5386_v26, %v742_v44 }
 0x725   :  { %746 = vrot.lane.b32.xlu1 %v744_v45, %s5655_s23 }
 0x72f   :  { %v858_v47 = vpop.permute.xlu1 %857 }
 0x730   :  { %v860_v53 = vmul.f32 %v5388_v29, %v858_v47 }
 0x732   :  { %862 = vrot.lane.b32.xlu0 %v860_v53, %s5655_s23  ;;  %v6333_v53 = vld [vmem:[%s7304_s1 + $0xd8] sm:$0xff] }
 0x793   :  { %v641_v56 = vpop.permute.xlu0 %640 }
 0x794   :  { %v6239_v57 = vadd.f32 %v641_v56, %v633_v55 }
 0x796   :  { %5389 = vtanh.f32 %v6239_v57 }
 0x797   :  { %v747_v59 = vpop.permute.xlu1 %746 }
 0x798   :  { %v6243_v60 = vadd.f32 %v747_v59, %v739_v58 }
 0x79a   :  { %5391 = vtanh.f32 %v6243_v60 }
 0x7a3   :  { %v5390_v61 = vpop.eup %5389 }
 0x7a4   :  { %v863_v63 = vpop.permute.xlu0 %862  ;;  %646 = vrot.lane.b32.xlu1 %v5390_v61, %s5654_s22 }
 0x7a5   :  { %v6247_v1 = vadd.f32 %v863_v63, %v855_v62 }
 0x7a7   :  { %v5392_v22 = vpop.eup %5391  ;;  %5393 = vtanh.f32 %v6247_v1 }
 0x7a8   :  { %752 = vrot.lane.b32.xlu0 %v5392_v22, %s5654_s22 }
 0x7b4   :  { %v5394_v2 = vpop.eup %5393 }
 0x7b5   :  { %868 = vrot.lane.b32.xlu1 %v5394_v2, %s5654_s22 }
 0x816   :  { %v647_v24 = vpop.permute.xlu1 %646 }
 0x817   :  { %v649_v3 = vmul.f32 %v5382_v18, %v647_v24 }
 0x819   :  { %874 = vrot.lane.b32.xlu0 %v649_v3, %s5654_s22  ;;  %976 = vrot.lane.b32.xlu1 %v649_v3, %s5655_s23 }
 0x81a   :  { %v753_v4 = vpop.permute.xlu0 %752 }
 0x81b   :  { %v755_v5 = vmul.f32 %v5386_v26, %v753_v4 }
 0x81d   :  { %1082 = vrot.lane.b32.xlu1 %v755_v5, %s5655_s23  ;;  %980 = vrot.lane.b32.xlu0 %v755_v5, %s5654_s22 }
 0x827   :  { %v869_v6 = vpop.permute.xlu1 %868 }
 0x828   :  { %v871_v7 = vmul.f32 %v5388_v29, %v869_v6  ;;  %v6297_v29 = vld [vmem:[%s7304_s1 + $0xf8] sm:$0xff] }
 0x82a   :  { %1188 = vrot.lane.b32.xlu1 %v871_v7, %s5655_s23  ;;  %1086 = vrot.lane.b32.xlu0 %v871_v7, %s5654_s22 }
 0x88b   :  { %v875_v18 = vpop.permute.xlu0 %874  ;;  %v977_v21 = vpop.permute.xlu1 %976 }
 0x88c   :  { %v877_v20 = vsel %vm212_vm1, %v872_v16, %v875_v18 }
 0x88d   :  { %4795 = vmatmul.mubr.msk.f32.vlgmr.msra.gmra.mxu0 %vm227_vm2, %v877_v20 }
 0x88e   :  { %4817 = vmatpush3.msra.mxu0 %v6127_v33  ;;  %4832 = vmatprep.mubr.msk.f32.mxu0 %vm5653_vm0, %v5652_v9 }
 0x88f   :  { %4818 = vmatprep.subr.mxu0 %v5652_v9  ;;  %v981_v23 = vpop.permute.xlu0 %980  ;;  %v1083_v31 = vpop.permute.xlu1 %1082 }
 0x890   :  { %4819 = vmatpush3.msra.mxu0 %v6134_v43  ;;  %v983_v26 = vsel %vm212_vm1, %v977_v21, %v981_v23 }
 0x891   :  { %4820 = vmatprep.subr.mxu0 %v5652_v9  ;;  %4814 = vmatmul.mubr.msk.f32.vlgmr.msra.gmra.mxu1 %vm227_vm2, %v983_v26 }
 0x892   :  { %4821 = vmatpush3.msra.mxu0 %v6143_v46  ;;  %4836 = vmatpush3.msra.mxu1 %v6270_v25 }
 0x893   :  { %4822 = vmatprep.subr.mxu0 %v5652_v9  ;;  %4837 = vmatprep.subr.mxu1 %v5652_v9 }
 0x894   :  { %4823 = vmatpush3.msra.mxu0 %v6152_v48  ;;  %4838 = vmatpush3.msra.mxu1 %v6279_v27 }
 0x895   :  { %4824 = vmatprep.subr.mxu0 %v5652_v9  ;;  %4839 = vmatprep.subr.mxu1 %v5652_v9 }
 0x896   :  { %4825 = vmatpush3.msra.mxu0 %v6160_v49  ;;  %4840 = vmatpush3.msra.mxu1 %v6288_v28 }
 0x897   :  { %4826 = vmatprep.subr.mxu0 %v5652_v9  ;;  %4841 = vmatprep.subr.mxu1 %v5652_v9 }
 0x898   :  { %4827 = vmatpush3.msra.mxu0 %v6169_v51  ;;  %4842 = vmatpush3.msra.mxu1 %v6297_v29 }
 0x899   :  { %4828 = vmatprep.subr.mxu0 %v5652_v9  ;;  %4843 = vmatprep.subr.mxu1 %v5652_v9 }
 0x89a   :  { %4829 = vmatpush3.msra.mxu0 %v6178_v52  ;;  %4844 = vmatpush3.msra.mxu1 %v6306_v30 }
 0x89b   :  { %4830 = vmatprep.subr.mxu0 %v5652_v9  ;;  %4845 = vmatprep.subr.mxu1 %v5652_v9 }
 0x89c   :  { %v1087_v44 = vpop.permute.xlu0 %1086  ;;  %4831 = vmatpush3.msra.mxu0 %v6187_v54  ;;  %4846 = vmatpush3.msra.mxu1 %v6315_v32  ;;  %v1189_v45 = vpop.permute.xlu1 %1188 }
 0x89d   :  { %v1089_v47 = vsel %vm212_vm1, %v1083_v31, %v1087_v44  ;;  %4847 = vmatprep.subr.mxu1 %v5652_v9  ;;  %4851 = vmatprep.mubr.msk.f32.mxu1 %vm5653_vm0, %v5652_v9  ;;  %v1191_v55 = vsel %vm212_vm1, %v1189_v45, 0.0 }
 0x89e   :  { %4833 = vmatmul.mubr.msk.f32.vlgmr.msra.gmra.mxu0 %vm227_vm2, %v1089_v47  ;;  %4848 = vmatpush3.msra.mxu1 %v6324_v40 }
 0x89f   :  { %4849 = vmatprep.subr.mxu1 %v5652_v9  ;;  %4854 = vmatprep.subr.mxu0 %v5652_v9 }
 0x8a0   :  { %4850 = vmatpush3.msra.mxu1 %v6333_v53  ;;  %4855 = vmatpush3.msra.mxu0 %v5902_v8 }
 0x8a1   :  { %4852 = vmatmul.mubr.msk.f32.vlgmr.msra.gmra.mxu1 %vm227_vm2, %v1191_v55  ;;  %4856 = vmatprep.subr.mxu0 %v5652_v9 }
 0x8a2   :  { %4857 = vmatpush3.msra.mxu0 %v5908_v10  ;;  %4873 = vmatprep.subr.mxu1 %v5652_v9 }
 0x8a3   :  { %4858 = vmatprep.subr.mxu0 %v5652_v9  ;;  %4874 = vmatpush3.msra.mxu1 %v5998_v34 }
 0x8a4   :  { %4859 = vmatpush3.msra.mxu0 %v5918_v11  ;;  %4875 = vmatprep.subr.mxu1 %v5652_v9 }
 0x8a5   :  { %4860 = vmatprep.subr.mxu0 %v5652_v9  ;;  %4876 = vmatpush3.msra.mxu1 %v6003_v35 }
 0x8a6   :  { %4861 = vmatpush3.msra.mxu0 %v5927_v12  ;;  %4877 = vmatprep.subr.mxu1 %v5652_v9 }
 0x8a7   :  { %4862 = vmatprep.subr.mxu0 %v5652_v9  ;;  %4878 = vmatpush3.msra.mxu1 %v6010_v36 }
 0x8a8   :  { %4863 = vmatpush3.msra.mxu0 %v5936_v13  ;;  %4879 = vmatprep.subr.mxu1 %v5652_v9 }
 0x8a9   :  { %4864 = vmatprep.subr.mxu0 %v5652_v9  ;;  %4880 = vmatpush3.msra.mxu1 %v6017_v37  ;;  %v6387_v37 = vld [vmem:[%s7304_s1 + $0x118] ss:$0 sm:$0xff] }
 0x8aa   :  { %4865 = vmatpush3.msra.mxu0 %v5945_v14  ;;  %4881 = vmatprep.subr.mxu1 %v5652_v9 }
 0x8ab   :  { %4866 = vmatprep.subr.mxu0 %v5652_v9  ;;  %4882 = vmatpush3.msra.mxu1 %v6024_v38 }
 0x8ac   :  { %4867 = vmatpush3.msra.mxu0 %v5954_v15  ;;  %4883 = vmatprep.subr.mxu1 %v5652_v9 }
 0x8ad   :  { %4868 = vmatprep.subr.mxu0 %v5652_v9  ;;  %4884 = vmatpush3.msra.mxu1 %v6031_v39 }
 0x8ae   :  { %4869 = vmatpush3.msra.mxu0 %v5966_v17  ;;  %4870 = vmatprep.mubr.msk.f32.mxu0 %vm5653_vm0, %v5652_v9 }
 0x8af   :  { %4885 = vmatprep.subr.mxu1 %v5652_v9  ;;  %4892 = vmatprep.subr.mxu0 %v5652_v9 }
 0x8b0   :  { %4886 = vmatpush3.msra.mxu1 %v6038_v41  ;;  %4889 = vmatprep.mubr.msk.f32.mxu1 %vm5653_vm0, %v5652_v9 }
 0x8b1   :  { %4887 = vmatprep.subr.mxu1 %v5652_v9 }
 0x8b2   :  { %4888 = vmatpush3.msra.mxu1 %v6048_v42 }
 0x8b3   :  { %4911 = vmatprep.subr.mxu1 %v5652_v9 }
 0x94d   :  { %v947_v8 = vpop.f32.mrf.mxu0 }
 0x94e   :  { %v948_v10 = vadd.f32 %v5987_v19, %v947_v8 }
 0x94f   :  { %v4796_v11 = vpop.f32.mrf.mxu0 }
 0x950   :  { %v4208_v12 = vmul.f32 -1.442695, %v948_v10 }
 0x951   :  { %v1053_v13 = vpop.f32.mrf.mxu1 }
 0x952   :  { %5395 = vpow2.f32 %v4208_v12  ;;  %v1054_v14 = vadd.f32 %v6100_v50, %v1053_v13 }
 0x953   :  { %v4815_v15 = vpop.f32.mrf.mxu1 }
 0x954   :  { %v4211_v17 = vmul.f32 -1.442695, %v1054_v14 }
 0x956   :  { %5397 = vpow2.f32 %v4211_v17 }
 0x95e   :  { %v1159_v34 = vpop.f32.mrf.mxu0 }
 0x95f   :  { %v5396_v35 = vpop.eup %5395  ;;  %v1160_v36 = vadd.f32 %v6229_v0, %v1159_v34 }
 0x960   :  { %v954_v38 = vadd.f32 1.0, %v5396_v35  ;;  %v4834_v19 = vpop.f32.mrf.mxu0 }
 0x961   :  { %v4214_v39 = vmul.f32 -1.442695, %v1160_v36  ;;  %v1275_v41 = vpop.f32.mrf.mxu1 }
 0x962   :  { %5399 = vrcp.f32 %v954_v38  ;;  %v1276_v42 = vadd.f32 %v6387_v37, %v1275_v41 }
 0x963   :  { %v5398_v56 = vpop.eup %5397  ;;  %5401 = vpow2.f32 %v4214_v39  ;;  %v4853_v58 = vpop.f32.mrf.mxu1 }
 0x964   :  { %v1060_v59 = vadd.f32 1.0, %v5398_v56  ;;  %v4227_v61 = vmul.f32 -1.442695, %v1276_v42 }
 0x966   :  { %5403 = vrcp.f32 %v1060_v59 }
 0x967   :  { %5405 = vpow2.f32 %v4227_v61 }
 0x96f   :  { %v5400_v62 = vpop.eup %5399 }
 0x970   :  { %v5402_v63 = vpop.eup %5401  ;;  %v957_v22 = vmul.f32 2.0, %v5400_v62  ;;  %v959_v12 = vmul.f32 %v5400_v62, %v6239_v57 }
 0x971   :  { %v1166_v2 = vadd.f32 1.0, %v5402_v63 }
 0x972   :  { %v4209_v24 = vadd.f32 -1.0, %v957_v22 }
 0x973   :  { %v5404_v3 = vpop.eup %5403  ;;  %5407 = vrcp.f32 %v1166_v2 }
 0x974   :  { %v5406_v4 = vpop.eup %5405  ;;  %961 = vrot.lane.b32.xlu0 %v4209_v24, %s5654_s22  ;;  %v1063_v5 = vmul.f32 2.0, %v5404_v3  ;;  %v1065_v15 = vmul.f32 %v5404_v3, %v6243_v60 }
 0x975   :  { %v1282_v6 = vadd.f32 1.0, %v5406_v4 }
 0x976   :  { %v4212_v7 = vadd.f32 -1.0, %v1063_v5 }
 0x977   :  { %5409 = vrcp.f32 %v1282_v6 }
 0x978   :  { %1067 = vrot.lane.b32.xlu1 %v4212_v7, %s5654_s22 }
 0x980   :  { %v5408_v16 = vpop.eup %5407 }
 0x981   :  { %v1169_v18 = vmul.f32 2.0, %v5408_v16  ;;  %v1171_v36 = vmul.f32 %v5408_v16, %v6247_v1 }
 0x983   :  { %v4215_v20 = vadd.f32 -1.0, %v1169_v18  ;;  %v6494_v18 = vld [vmem:[%s7304_s1 + $0x28] sm:$0xff] }
 0x984   :  { %v5410_v21 = vpop.eup %5409 }
 0x985   :  { %1173 = vrot.lane.b32.xlu0 %v4215_v20, %s5654_s22  ;;  %v1285_v23 = vmul.f32 2.0, %v5410_v21  ;;  %v1287_v39 = vmul.f32 0.0, %v5410_v21  ;;  %v6502_v20 = vld [vmem:[%s7304_s1 + $0x78] sm:$0xff] }
 0x987   :  { %v4228_v26 = vadd.f32 -1.0, %v1285_v23  ;;  %v6516_v23 = vld [vmem:[%s7304_s1 + $0x70] sm:$0xff] }
 0x989   :  { %1289 = vrot.lane.b32.xlu1 %v4228_v26, %s5654_s22  ;;  %v6522_v26 = vld [vmem:[%s7304_s1 + $0x18] sm:$0xff] }
 0x9e6   :  { %v962_v31 = vpop.permute.xlu0 %961 }
 0x9e7   :  { %v964_v44 = vmul.f32 %v5400_v62, %v962_v31  ;;  %v6530_v31 = vld [vmem:[%s7304_s1 + $0x68] sm:$0xff] }
 0x9e9   :  { %966 = vrot.lane.b32.xlu0 %v964_v44, %s5655_s23  ;;  %v6536_v44 = vld [vmem:[%s7304_s1 + $0x10] sm:$0xff] }
 0x9ea   :  { %v1068_v45 = vpop.permute.xlu1 %1067 }
 0x9eb   :  { %v1070_v47 = vmul.f32 %v5404_v3, %v1068_v45  ;;  %v6544_v45 = vld [vmem:[%s7304_s1 + $0x60] sm:$0xff] }
 0x9ed   :  { %1072 = vrot.lane.b32.xlu1 %v1070_v47, %s5655_s23  ;;  %v6550_v47 = vld [vmem:[%s7304_s1 + $0x8] sm:$0xff] }
 0x9f7   :  { %v1174_v55 = vpop.permute.xlu0 %1173 }
 0x9f8   :  { %v1176_v8 = vmul.f32 %v5408_v16, %v1174_v55  ;;  %v6558_v55 = vld [vmem:[%s7304_s1 + $0x58] sm:$0xff] }
 0x9fa   :  { %1178 = vrot.lane.b32.xlu0 %v1176_v8, %s5655_s23  ;;  %v6564_v8 = vld [vmem:[%s7304_s1] sm:$0xff] }
 0x9fb   :  { %v1290_v10 = vpop.permute.xlu1 %1289 }
 0x9fc   :  { %v1292_v11 = vmul.f32 %v5410_v21, %v1290_v10  ;;  %v6574_v10 = vld [vmem:[%s7304_s1 + $0x50] sm:$0xff] }
 0x9fe   :  { %1294 = vrot.lane.b32.xlu1 %v1292_v11, %s5655_s23  ;;  %v6583_v11 = vld [vmem:[%s7304_s1 + $0x48] sm:$0xff] }
 0xa5b   :  { %v967_v13 = vpop.permute.xlu0 %966 }
 0xa5c   :  { %v6399_v14 = vadd.f32 %v967_v13, %v959_v12  ;;  %v6590_v13 = vld [vmem:[%s7304_s1 + $0x40] ss:$0 sm:$0xff] }
 0xa5e   :  { %5411 = vtanh.f32 %v6399_v14 }
 0xa5f   :  { %v1073_v17 = vpop.permute.xlu1 %1072 }
 0xa60   :  { %v6403_v34 = vadd.f32 %v1073_v17, %v1065_v15 }
 0xa62   :  { %5413 = vtanh.f32 %v6403_v34 }
 0xa6b   :  { %v5412_v35 = vpop.eup %5411 }
 0xa6c   :  { %v1179_v38 = vpop.permute.xlu0 %1178  ;;  %972 = vrot.lane.b32.xlu0 %v5412_v35, %s5654_s22 }
 0xa6d   :  { %v6408_v19 = vadd.f32 %v1179_v38, %v1171_v36 }
 0xa6f   :  { %v5414_v57 = vpop.eup %5413  ;;  %5415 = vtanh.f32 %v6408_v19 }
 0xa70   :  { %v1295_v41 = vpop.permute.xlu1 %1294  ;;  %1078 = vrot.lane.b32.xlu1 %v5414_v57, %s5654_s22 }
 0xa71   :  { %v6412_v60 = vadd.f32 %v1295_v41, %v1287_v39 }
 0xa73   :  { %5417 = vtanh.f32 %v6412_v60 }
 0xa7c   :  { %v5416_v42 = vpop.eup %5415 }
 0xa7d   :  { %1184 = vrot.lane.b32.xlu0 %v5416_v42, %s5654_s22 }
 0xa80   :  { %v5418_v1 = vpop.eup %5417 }
 0xa81   :  { %1300 = vrot.lane.b32.xlu1 %v5418_v1, %s5654_s22 }
 0xade   :  { %v973_v56 = vpop.permute.xlu0 %972 }
 0xadf   :  { %v975_v58 = vmul.f32 %v5400_v62, %v973_v56  ;;  %v1304_v62 = vld [vmem:[%s7303_s0 + $0x20] sm:$0xff] }
 0xae1   :  { %1408 = vrot.lane.b32.xlu1 %v975_v58, %s5655_s23  ;;  %1306 = vrot.lane.b32.xlu0 %v975_v58, %s5654_s22 }
 0xae2   :  { %v1079_v59 = vpop.permute.xlu1 %1078 }
 0xae3   :  { %v1081_v61 = vmul.f32 %v5404_v3, %v1079_v59 }
 0xae5   :  { %1514 = vrot.lane.b32.xlu1 %v1081_v61, %s5655_s23  ;;  %1412 = vrot.lane.b32.xlu0 %v1081_v61, %s5654_s22 }
 0xaef   :  { %v1185_v63 = vpop.permute.xlu0 %1184 }
 0xaf0   :  { %v1187_v22 = vmul.f32 %v5408_v16, %v1185_v63  ;;  %v6488_v16 = vld [vmem:[%s7304_s1 + $0x80] sm:$0xff] }
 0xaf2   :  { %1620 = vrot.lane.b32.xlu1 %v1187_v22, %s5655_s23  ;;  %1518 = vrot.lane.b32.xlu0 %v1187_v22, %s5654_s22 }
 0xaf3   :  { %v1301_v2 = vpop.permute.xlu1 %1300 }
 0xaf4   :  { %v1303_v24 = vmul.f32 %v5410_v21, %v1301_v2  ;;  %v6508_v21 = vld [vmem:[%s7304_s1 + $0x20] sm:$0xff] }
 0xaf6   :  { %1624 = vrot.lane.b32.xlu0 %v1303_v24, %s5654_s22 }
 0xb53   :  { %v1307_v4 = vpop.permute.xlu0 %1306  ;;  %v1409_v5 = vpop.permute.xlu1 %1408 }
 0xb54   :  { %v1309_v3 = vsel %vm212_vm1, %v1304_v62, %v1307_v4 }
 0xb55   :  { %4871 = vmatmul.mubr.msk.f32.vlgmr.msra.gmra.mxu0 %vm227_vm2, %v1309_v3 }
 0xb56   :  { %4893 = vmatpush3.msra.mxu0 %v6127_v33  ;;  %4908 = vmatprep.mubr.msk.f32.mxu0 %vm5653_vm0, %v5652_v9 }
 0xb57   :  { %4894 = vmatprep.subr.mxu0 %v5652_v9  ;;  %v1413_v6 = vpop.permute.xlu0 %1412  ;;  %v1515_v33 = vpop.permute.xlu1 %1514 }
 0xb58   :  { %4895 = vmatpush3.msra.mxu0 %v6134_v43  ;;  %v1415_v7 = vsel %vm212_vm1, %v1409_v5, %v1413_v6 }
 0xb59   :  { %4896 = vmatprep.subr.mxu0 %v5652_v9  ;;  %4890 = vmatmul.mubr.msk.f32.vlgmr.msra.gmra.mxu1 %vm227_vm2, %v1415_v7 }
 0xb5a   :  { %4897 = vmatpush3.msra.mxu0 %v6143_v46  ;;  %4912 = vmatpush3.msra.mxu1 %v6270_v25 }
 0xb5b   :  { %4898 = vmatprep.subr.mxu0 %v5652_v9  ;;  %4913 = vmatprep.subr.mxu1 %v5652_v9 }
 0xb5c   :  { %4899 = vmatpush3.msra.mxu0 %v6152_v48  ;;  %4914 = vmatpush3.msra.mxu1 %v6279_v27 }
 0xb5d   :  { %4900 = vmatprep.subr.mxu0 %v5652_v9  ;;  %4915 = vmatprep.subr.mxu1 %v5652_v9 }
 0xb5e   :  { %4901 = vmatpush3.msra.mxu0 %v6160_v49  ;;  %4916 = vmatpush3.msra.mxu1 %v6288_v28 }
 0xb5f   :  { %4902 = vmatprep.subr.mxu0 %v5652_v9  ;;  %4917 = vmatprep.subr.mxu1 %v5652_v9 }
 0xb60   :  { %4903 = vmatpush3.msra.mxu0 %v6169_v51  ;;  %4918 = vmatpush3.msra.mxu1 %v6297_v29  ;;  %v6471_v51 = vld [vmem:[%s7304_s1 + $0x38] sm:$0xff] }
 0xb61   :  { %4904 = vmatprep.subr.mxu0 %v5652_v9  ;;  %4919 = vmatprep.subr.mxu1 %v5652_v9 }
 0xb62   :  { %4905 = vmatpush3.msra.mxu0 %v6178_v52  ;;  %4920 = vmatpush3.msra.mxu1 %v6306_v30 }
 0xb63   :  { %4906 = vmatprep.subr.mxu0 %v5652_v9  ;;  %4921 = vmatprep.subr.mxu1 %v5652_v9 }
 0xb64   :  { %v1519_v43 = vpop.permute.xlu0 %1518  ;;  %4907 = vmatpush3.msra.mxu0 %v6187_v54  ;;  %4922 = vmatpush3.msra.mxu1 %v6315_v32  ;;  %v1621_v48 = vpop.permute.xlu1 %1620  ;;  %v6481_v54 = vld [vmem:[%s7304_s1 + $0x30] sm:$0xff] }
 0xb65   :  { %v1521_v46 = vsel %vm212_vm1, %v1515_v33, %v1519_v43  ;;  %4923 = vmatprep.subr.mxu1 %v5652_v9  ;;  %4927 = vmatprep.mubr.msk.f32.mxu1 %vm5653_vm0, %v5652_v9 }
 0xb66   :  { %4909 = vmatmul.mubr.msk.f32.vlgmr.msra.gmra.mxu0 %vm227_vm2, %v1521_v46  ;;  %4924 = vmatpush3.msra.mxu1 %v6324_v40 }
 0xb67   :  { %4925 = vmatprep.subr.mxu1 %v5652_v9  ;;  %4930 = vmatprep.subr.mxu0 %v5652_v9 }
 0xb68   :  { %v1625_v49 = vpop.permute.xlu0 %1624  ;;  %4926 = vmatpush3.msra.mxu1 %v6333_v53  ;;  %4931 = vmatpush3.msra.mxu0 %v6471_v51 }
 0xb69   :  { %v1627_v52 = vsel %vm212_vm1, %v1621_v48, %v1625_v49  ;;  %4932 = vmatprep.subr.mxu0 %v5652_v9  ;;  %4949 = vmatprep.subr.mxu1 %v5652_v9 }
 0xb6a   :  { %4928 = vmatmul.mubr.msk.f32.vlgmr.msra.gmra.mxu1 %vm227_vm2, %v1627_v52  ;;  %4933 = vmatpush3.msra.mxu0 %v6481_v54 }
 0xb6b   :  { %4934 = vmatprep.subr.mxu0 %v5652_v9  ;;  %4950 = vmatpush3.msra.mxu1 %v6488_v16 }
 0xb6c   :  { %4935 = vmatpush3.msra.mxu0 %v6494_v18  ;;  %4951 = vmatprep.subr.mxu1 %v5652_v9 }
 0xb6d   :  { %4936 = vmatprep.subr.mxu0 %v5652_v9  ;;  %4952 = vmatpush3.msra.mxu1 %v6502_v20 }
 0xb6e   :  { %4937 = vmatpush3.msra.mxu0 %v6508_v21  ;;  %4953 = vmatprep.subr.mxu1 %v5652_v9 }
 0xb6f   :  { %4938 = vmatprep.subr.mxu0 %v5652_v9  ;;  %4954 = vmatpush3.msra.mxu1 %v6516_v23 }
 0xb70   :  { %4939 = vmatpush3.msra.mxu0 %v6522_v26  ;;  %4955 = vmatprep.subr.mxu1 %v5652_v9 }
 0xb71   :  { %4940 = vmatprep.subr.mxu0 %v5652_v9  ;;  %4956 = vmatpush3.msra.mxu1 %v6530_v31 }
 0xb72   :  { %4941 = vmatpush3.msra.mxu0 %v6536_v44  ;;  %4957 = vmatprep.subr.mxu1 %v5652_v9 }
 0xb73   :  { %4942 = vmatprep.subr.mxu0 %v5652_v9  ;;  %4958 = vmatpush3.msra.mxu1 %v6544_v45 }
 0xb74   :  { %4943 = vmatpush3.msra.mxu0 %v6550_v47  ;;  %4959 = vmatprep.subr.mxu1 %v5652_v9 }
 0xb75   :  { %4944 = vmatprep.subr.mxu0 %v5652_v9  ;;  %4960 = vmatpush3.msra.mxu1 %v6558_v55 }
 0xb76   :  { %4945 = vmatpush3.msra.mxu0 %v6564_v8  ;;  %4946 = vmatprep.mubr.msk.f32.mxu0 %vm5653_vm0, %v5652_v9 }
 0xb77   :  { %4961 = vmatprep.subr.mxu1 %v5652_v9  ;;  %4968 = vmatprep.subr.mxu0 %v5652_v9 }
 0xb78   :  { %4962 = vmatpush3.msra.mxu1 %v6574_v10  ;;  %4965 = vmatprep.mubr.msk.f32.mxu1 %vm5653_vm0, %v5652_v9 }
 0xb79   :  { %4963 = vmatprep.subr.mxu1 %v5652_v9 }
 0xb7a   :  { %4964 = vmatpush3.msra.mxu1 %v6583_v11 }
 0xb7b   :  { %4987 = vmatprep.subr.mxu1 %v5652_v9 }
 0xc15   :  { %v1379_v12 = vpop.f32.mrf.mxu0 }
 0xc16   :  { %v1380_v15 = vadd.f32 %v6590_v13, %v1379_v12 }
 0xc17   :  { %v4872_v17 = vpop.f32.mrf.mxu0 }
 0xc18   :  { %v4230_v35 = vmul.f32 -1.442695, %v1380_v15 }
 0xc19   :  { %v1485_v36 = vpop.f32.mrf.mxu1 }
 0xc1a   :  { %5419 = vpow2.f32 %v4230_v35  ;;  %v1486_v38 = vadd.f32 %v6100_v50, %v1485_v36 }
 0xc1b   :  { %v4891_v57 = vpop.f32.mrf.mxu1 }
 0xc1c   :  { %v4233_v39 = vmul.f32 -1.442695, %v1486_v38 }
 0xc1e   :  { %5421 = vpow2.f32 %v4233_v39 }
 0xc26   :  { %v1591_v41 = vpop.f32.mrf.mxu0 }
 0xc27   :  { %v5420_v42 = vpop.eup %5419  ;;  %v1592_v1 = vadd.f32 %v6229_v0, %v1591_v41 }
 0xc28   :  { %v1386_v56 = vadd.f32 1.0, %v5420_v42  ;;  %v4910_v58 = vpop.f32.mrf.mxu0 }
 0xc29   :  { %v4236_v59 = vmul.f32 -1.442695, %v1592_v1 }
 0xc2a   :  { %5423 = vrcp.f32 %v1386_v56  ;;  %v1697_v61 = vpop.f32.mrf.mxu1 }
 0xc2b   :  { %v5422_v63 = vpop.eup %5421  ;;  %5425 = vpow2.f32 %v4236_v59  ;;  %v1698_v22 = vadd.f32 %v6387_v37, %v1697_v61 }
 0xc2c   :  { %v1492_v2 = vadd.f32 1.0, %v5422_v63  ;;  %v4929_v24 = vpop.f32.mrf.mxu1 }
 0xc2d   :  { %v4239_v62 = vmul.f32 -1.442695, %v1698_v22 }
 0xc2e   :  { %5427 = vrcp.f32 %v1492_v2 }
 0xc2f   :  { %5429 = vpow2.f32 %v4239_v62 }
 0xc37   :  { %v5424_v50 = vpop.eup %5423 }
 0xc38   :  { %v5426_v4 = vpop.eup %5425  ;;  %v1389_v3 = vmul.f32 2.0, %v5424_v50  ;;  %v1391_v56 = vmul.f32 %v5424_v50, %v6399_v14 }
 0xc39   :  { %v1598_v5 = vadd.f32 1.0, %v5426_v4 }
 0xc3a   :  { %v4231_v6 = vadd.f32 -1.0, %v1389_v3 }
 0xc3b   :  { %v5428_v0 = vpop.eup %5427  ;;  %5431 = vrcp.f32 %v1598_v5 }
 0xc3c   :  { %v5430_v7 = vpop.eup %5429  ;;  %1393 = vrot.lane.b32.xlu1 %v4231_v6, %s5654_s22  ;;  %v1495_v33 = vmul.f32 2.0, %v5428_v0  ;;  %v1497_v61 = vmul.f32 %v5428_v0, %v6403_v34 }
 0xc3d   :  { %v1704_v43 = vadd.f32 1.0, %v5430_v7 }
 0xc3e   :  { %v4234_v46 = vadd.f32 -1.0, %v1495_v33 }
 0xc3f   :  { %5433 = vrcp.f32 %v1704_v43 }
 0xc40   :  { %1499 = vrot.lane.b32.xlu0 %v4234_v46, %s5654_s22 }
 0xc48   :  { %v5432_v48 = vpop.eup %5431 }
 0xc49   :  { %v1601_v49 = vmul.f32 2.0, %v5432_v48  ;;  %v1603_v24 = vmul.f32 %v5432_v48, %v6408_v19 }
 0xc4b   :  { %v4237_v52 = vadd.f32 -1.0, %v1601_v49 }
 0xc4c   :  { %v5434_v12 = vpop.eup %5433 }
 0xc4d   :  { %1605 = vrot.lane.b32.xlu1 %v4237_v52, %s5654_s22  ;;  %v1707_v15 = vmul.f32 2.0, %v5434_v12  ;;  %v1709_v3 = vmul.f32 %v5434_v12, %v6412_v60 }
 0xc4f   :  { %v4240_v17 = vadd.f32 -1.0, %v1707_v15 }
 0xc51   :  { %1711 = vrot.lane.b32.xlu0 %v4240_v17, %s5654_s22 }
 0xcae   :  { %v1394_v35 = vpop.permute.xlu1 %1393 }
 0xcaf   :  { %v1396_v36 = vmul.f32 %v5424_v50, %v1394_v35 }
 0xcb1   :  { %1398 = vrot.lane.b32.xlu1 %v1396_v36, %s5655_s23  ;;  %v6648_v36 = vld [vmem:[%s7304_s1 + $0xc0] sm:$0xff] }
 0xcb2   :  { %v1500_v38 = vpop.permute.xlu0 %1499 }
 0xcb3   :  { %v1502_v57 = vmul.f32 %v5428_v0, %v1500_v38 }
 0xcb5   :  { %1504 = vrot.lane.b32.xlu0 %v1502_v57, %s5655_s23  ;;  %v6657_v57 = vld [vmem:[%s7304_s1 + $0xb8] sm:$0xff] }
 0xcbf   :  { %v1606_v39 = vpop.permute.xlu1 %1605 }
 0xcc0   :  { %v1608_v41 = vmul.f32 %v5432_v48, %v1606_v39  ;;  %v6666_v39 = vld [vmem:[%s7304_s1 + $0xb0] sm:$0xff] }
 0xcc2   :  { %1610 = vrot.lane.b32.xlu1 %v1608_v41, %s5655_s23 }
 0xcc3   :  { %v1712_v42 = vpop.permute.xlu0 %1711 }
 0xcc4   :  { %v1714_v1 = vmul.f32 %v5434_v12, %v1712_v42 }
 0xcc6   :  { %1716 = vrot.lane.b32.xlu0 %v1714_v1, %s5655_s23 }
 0xd23   :  { %v1399_v58 = vpop.permute.xlu1 %1398 }
 0xd24   :  { %v6605_v59 = vadd.f32 %v1399_v58, %v1391_v56 }
 0xd26   :  { %5435 = vtanh.f32 %v6605_v59 }
 0xd27   :  { %v1505_v63 = vpop.permute.xlu0 %1504 }
 0xd28   :  { %v6609_v22 = vadd.f32 %v1505_v63, %v1497_v61 }
 0xd2a   :  { %5437 = vtanh.f32 %v6609_v22 }
 0xd33   :  { %v5436_v2 = vpop.eup %5435 }
 0xd34   :  { %v1611_v62 = vpop.permute.xlu1 %1610  ;;  %1404 = vrot.lane.b32.xlu1 %v5436_v2, %s5654_s22  ;;  %v6758_v2 = vld [vmem:[%s7304_s1 + $0x88] ss:$0 sm:$0xff] }
 0xd35   :  { %v6614_v4 = vadd.f32 %v1611_v62, %v1603_v24 }
 0xd37   :  { %v5438_v14 = vpop.eup %5437  ;;  %5439 = vtanh.f32 %v6614_v4 }
 0xd38   :  { %v1717_v5 = vpop.permute.xlu0 %1716  ;;  %1510 = vrot.lane.b32.xlu0 %v5438_v14, %s5654_s22 }
 0xd39   :  { %v6619_v34 = vadd.f32 %v1717_v5, %v1709_v3 }
 0xd3b   :  { %5441 = vtanh.f32 %v6619_v34 }
 0xd44   :  { %v5440_v6 = vpop.eup %5439 }
 0xd45   :  { %1616 = vrot.lane.b32.xlu1 %v5440_v6, %s5654_s22  ;;  %v6764_v6 = vld [vmem:[%s7304_s1 + $0xd0] ss:$0 sm:$0xff] }
 0xd48   :  { %v5442_v19 = vpop.eup %5441 }
 0xd49   :  { %1722 = vrot.lane.b32.xlu0 %v5442_v19, %s5654_s22 }
 0xda6   :  { %v1405_v7 = vpop.permute.xlu1 %1404 }
 0xda7   :  { %v1407_v33 = vmul.f32 %v5424_v50, %v1405_v7  ;;  %v1726_v50 = vld [vmem:[%s7303_s0 + $0x28] sm:$0xff] }
 0xda9   :  { %1830 = vrot.lane.b32.xlu0 %v1407_v33, %s5655_s23  ;;  %1728 = vrot.lane.b32.xlu1 %v1407_v33, %s5654_s22 }
 0xdaa   :  { %v1511_v60 = vpop.permute.xlu0 %1510 }
 0xdab   :  { %v1513_v43 = vmul.f32 %v5428_v0, %v1511_v60 }
 0xdad   :  { %1936 = vrot.lane.b32.xlu0 %v1513_v43, %s5655_s23  ;;  %1834 = vrot.lane.b32.xlu1 %v1513_v43, %s5654_s22 }
 0xdb7   :  { %v1617_v46 = vpop.permute.xlu1 %1616 }
 0xdb8   :  { %v1619_v49 = vmul.f32 %v5432_v48, %v1617_v46  ;;  %v6639_v48 = vld [vmem:[%s7304_s1 + $0xc8] sm:$0xff] }
 0xdba   :  { %2042 = vrot.lane.b32.xlu0 %v1619_v49, %s5655_s23  ;;  %1940 = vrot.lane.b32.xlu1 %v1619_v49, %s5654_s22 }
 0xdbb   :  { %v1723_v52 = vpop.permute.xlu0 %1722 }
 0xdbc   :  { %v1725_v15 = vmul.f32 %v5434_v12, %v1723_v52 }
 0xdbe   :  { %2046 = vrot.lane.b32.xlu1 %v1725_v15, %s5654_s22 }
 0xe1b   :  { %v1729_v17 = vpop.permute.xlu1 %1728  ;;  %v1831_v12 = vpop.permute.xlu0 %1830 }
 0xe1c   :  { %v1731_v0 = vsel %vm212_vm1, %v1726_v50, %v1729_v17 }
 0xe1d   :  { %4947 = vmatmul.mubr.msk.f32.vlgmr.msra.gmra.mxu0 %vm227_vm2, %v1731_v0 }
 0xe1e   :  { %4969 = vmatpush3.msra.mxu0 %v6639_v48  ;;  %4984 = vmatprep.mubr.msk.f32.mxu0 %vm5653_vm0, %v5652_v9 }
 0xe1f   :  { %4970 = vmatprep.subr.mxu0 %v5652_v9  ;;  %v1835_v35 = vpop.permute.xlu1 %1834  ;;  %v1937_v41 = vpop.permute.xlu0 %1936 }
 0xe20   :  { %4971 = vmatpush3.msra.mxu0 %v6648_v36  ;;  %v1837_v38 = vsel %vm212_vm1, %v1831_v12, %v1835_v35 }
 0xe21   :  { %4972 = vmatprep.subr.mxu0 %v5652_v9  ;;  %4966 = vmatmul.mubr.msk.f32.vlgmr.msra.gmra.mxu1 %vm227_vm2, %v1837_v38 }
 0xe22   :  { %4973 = vmatpush3.msra.mxu0 %v6657_v57  ;;  %4988 = vmatpush3.msra.mxu1 %v6270_v25  ;;  %v6675_v25 = vld [vmem:[%s7304_s1 + $0xa8] sm:$0xff] }
 0xe23   :  { %4974 = vmatprep.subr.mxu0 %v5652_v9  ;;  %4989 = vmatprep.subr.mxu1 %v5652_v9 }
 0xe24   :  { %4975 = vmatpush3.msra.mxu0 %v6666_v39  ;;  %4990 = vmatpush3.msra.mxu1 %v6279_v27  ;;  %v6684_v27 = vld [vmem:[%s7304_s1 + $0xa0] sm:$0xff] }
 0xe25   :  { %4976 = vmatprep.subr.mxu0 %v5652_v9  ;;  %4991 = vmatprep.subr.mxu1 %v5652_v9 }
 0xe26   :  { %4977 = vmatpush3.msra.mxu0 %v6675_v25  ;;  %4992 = vmatpush3.msra.mxu1 %v6288_v28  ;;  %v6693_v28 = vld [vmem:[%s7304_s1 + $0x98] sm:$0xff] }
 0xe27   :  { %4978 = vmatprep.subr.mxu0 %v5652_v9  ;;  %4993 = vmatprep.subr.mxu1 %v5652_v9 }
 0xe28   :  { %4979 = vmatpush3.msra.mxu0 %v6684_v27  ;;  %4994 = vmatpush3.msra.mxu1 %v6297_v29  ;;  %v6702_v29 = vld [vmem:[%s7304_s1 + $0x90] sm:$0xff] }
 0xe29   :  { %4980 = vmatprep.subr.mxu0 %v5652_v9  ;;  %4995 = vmatprep.subr.mxu1 %v5652_v9 }
 0xe2a   :  { %4981 = vmatpush3.msra.mxu0 %v6693_v28  ;;  %4996 = vmatpush3.msra.mxu1 %v6306_v30 }
 0xe2b   :  { %4982 = vmatprep.subr.mxu0 %v5652_v9  ;;  %4997 = vmatprep.subr.mxu1 %v5652_v9 }
 0xe2c   :  { %v1941_v42 = vpop.permute.xlu1 %1940  ;;  %4983 = vmatpush3.msra.mxu0 %v6702_v29  ;;  %4998 = vmatpush3.msra.mxu1 %v6315_v32  ;;  %v2043_v30 = vpop.permute.xlu0 %2042 }
 0xe2d   :  { %v1943_v1 = vsel %vm212_vm1, %v1937_v41, %v1941_v42  ;;  %4999 = vmatprep.subr.mxu1 %v5652_v9  ;;  %5003 = vmatprep.mubr.msk.f32.mxu1 %vm5653_vm0, %v5652_v9 }
 0xe2e   :  { %4985 = vmatmul.mubr.msk.f32.vlgmr.msra.gmra.mxu0 %vm227_vm2, %v1943_v1  ;;  %5000 = vmatpush3.msra.mxu1 %v6324_v40 }
 0xe2f   :  { %5001 = vmatprep.subr.mxu1 %v5652_v9  ;;  %5006 = vmatprep.subr.mxu0 %v5652_v9 }
 0xe30   :  { %v2047_v56 = vpop.permute.xlu1 %2046  ;;  %5002 = vmatpush3.msra.mxu1 %v6333_v53  ;;  %5007 = vmatpush3.msra.mxu0 %v6471_v51 }
 0xe31   :  { %v2049_v32 = vsel %vm212_vm1, %v2043_v30, %v2047_v56  ;;  %5008 = vmatprep.subr.mxu0 %v5652_v9  ;;  %5025 = vmatprep.subr.mxu1 %v5652_v9 }
 0xe32   :  { %5004 = vmatmul.mubr.msk.f32.vlgmr.msra.gmra.mxu1 %vm227_vm2, %v2049_v32  ;;  %5009 = vmatpush3.msra.mxu0 %v6481_v54 }
 0xe33   :  { %5010 = vmatprep.subr.mxu0 %v5652_v9  ;;  %5026 = vmatpush3.msra.mxu1 %v6488_v16 }
 0xe34   :  { %5011 = vmatpush3.msra.mxu0 %v6494_v18  ;;  %5027 = vmatprep.subr.mxu1 %v5652_v9 }
 0xe35   :  { %5012 = vmatprep.subr.mxu0 %v5652_v9  ;;  %5028 = vmatpush3.msra.mxu1 %v6502_v20 }
 0xe36   :  { %5013 = vmatpush3.msra.mxu0 %v6508_v21  ;;  %5029 = vmatprep.subr.mxu1 %v5652_v9 }
 0xe37   :  { %5014 = vmatprep.subr.mxu0 %v5652_v9  ;;  %5030 = vmatpush3.msra.mxu1 %v6516_v23 }
 0xe38   :  { %5015 = vmatpush3.msra.mxu0 %v6522_v26  ;;  %5031 = vmatprep.subr.mxu1 %v5652_v9 }
 0xe39   :  { %5016 = vmatprep.subr.mxu0 %v5652_v9  ;;  %5032 = vmatpush3.msra.mxu1 %v6530_v31 }
 0xe3a   :  { %5017 = vmatpush3.msra.mxu0 %v6536_v44  ;;  %5033 = vmatprep.subr.mxu1 %v5652_v9 }
 0xe3b   :  { %5018 = vmatprep.subr.mxu0 %v5652_v9  ;;  %5034 = vmatpush3.msra.mxu1 %v6544_v45 }
 0xe3c   :  { %5019 = vmatpush3.msra.mxu0 %v6550_v47  ;;  %5035 = vmatprep.subr.mxu1 %v5652_v9 }
 0xe3d   :  { %5020 = vmatprep.subr.mxu0 %v5652_v9  ;;  %5036 = vmatpush3.msra.mxu1 %v6558_v55 }
 0xe3e   :  { %5021 = vmatpush3.msra.mxu0 %v6564_v8  ;;  %5022 = vmatprep.mubr.msk.f32.mxu0 %vm5653_vm0, %v5652_v9 }
 0xe3f   :  { %5037 = vmatprep.subr.mxu1 %v5652_v9  ;;  %5044 = vmatprep.subr.mxu0 %v5652_v9 }
 0xe40   :  { %5038 = vmatpush3.msra.mxu1 %v6574_v10  ;;  %5041 = vmatprep.mubr.msk.f32.mxu1 %vm5653_vm0, %v5652_v9 }
 0xe41   :  { %5039 = vmatprep.subr.mxu1 %v5652_v9 }
 0xe42   :  { %5040 = vmatpush3.msra.mxu1 %v6583_v11 }
 0xe43   :  { %5063 = vmatprep.subr.mxu1 %v5652_v9 }
 0xedd   :  { %v1801_v40 = vpop.f32.mrf.mxu0 }
 0xede   :  { %v1802_v53 = vadd.f32 %v6590_v13, %v1801_v40 }
 0xedf   :  { %v4948_v58 = vpop.f32.mrf.mxu0 }
 0xee0   :  { %v4242_v61 = vmul.f32 -1.442695, %v1802_v53 }
 0xee1   :  { %v1907_v63 = vpop.f32.mrf.mxu1 }
 0xee2   :  { %5443 = vpow2.f32 %v4242_v61  ;;  %v1908_v24 = vadd.f32 %v6758_v2, %v1907_v63 }
 0xee3   :  { %v4967_v62 = vpop.f32.mrf.mxu1 }
 0xee4   :  { %v4245_v14 = vmul.f32 -1.442695, %v1908_v24 }
 0xee6   :  { %5445 = vpow2.f32 %v4245_v14 }
 0xeee   :  { %v2013_v3 = vpop.f32.mrf.mxu0 }
 0xeef   :  { %v5444_v5 = vpop.eup %5443  ;;  %v2014_v19 = vadd.f32 %v6764_v6, %v2013_v3 }
 0xef0   :  { %v1808_v7 = vadd.f32 1.0, %v5444_v5  ;;  %v4986_v33 = vpop.f32.mrf.mxu0 }
 0xef1   :  { %v4248_v60 = vmul.f32 -1.442695, %v2014_v19 }
 0xef2   :  { %5447 = vrcp.f32 %v1808_v7  ;;  %v2119_v43 = vpop.f32.mrf.mxu1 }
 0xef3   :  { %v5446_v46 = vpop.eup %5445  ;;  %5449 = vpow2.f32 %v4248_v60  ;;  %v2120_v49 = vadd.f32 %v6387_v37, %v2119_v43 }
 0xef4   :  { %v1914_v52 = vadd.f32 1.0, %v5446_v46  ;;  %v5005_v15 = vpop.f32.mrf.mxu1 }
 0xef5   :  { %v4251_v50 = vmul.f32 -1.442695, %v2120_v49 }
 0xef6   :  { %5451 = vrcp.f32 %v1914_v52 }
 0xef7   :  { %5453 = vpow2.f32 %v4251_v50 }
 0xeff   :  { %v5448_v17 = vpop.eup %5447 }
 0xf00   :  { %v5450_v0 = vpop.eup %5449  ;;  %v1811_v12 = vmul.f32 2.0, %v5448_v17  ;;  %v1813_v33 = vmul.f32 %v5448_v17, %v6605_v59 }
 0xf01   :  { %v2020_v35 = vadd.f32 1.0, %v5450_v0 }
 0xf02   :  { %v4243_v38 = vadd.f32 -1.0, %v1811_v12 }
 0xf03   :  { %v5452_v41 = vpop.eup %5451  ;;  %5455 = vrcp.f32 %v2020_v35 }
 0xf04   :  { %v5454_v42 = vpop.eup %5453  ;;  %1815 = vrot.lane.b32.xlu0 %v4243_v38, %s5654_s22  ;;  %v1917_v1 = vmul.f32 2.0, %v5452_v41  ;;  %v1919_v46 = vmul.f32 %v5452_v41, %v6609_v22 }
 0xf05   :  { %v2126_v30 = vadd.f32 1.0, %v5454_v42 }
 0xf06   :  { %v4246_v56 = vadd.f32 -1.0, %v1917_v1 }
 0xf07   :  { %5457 = vrcp.f32 %v2126_v30 }
 0xf08   :  { %1921 = vrot.lane.b32.xlu1 %v4246_v56, %s5654_s22 }
 0xf10   :  { %v5456_v37 = vpop.eup %5455 }
 0xf11   :  { %v2023_v32 = vmul.f32 2.0, %v5456_v37  ;;  %v2025_v50 = vmul.f32 %v5456_v37, %v6614_v4 }
 0xf13   :  { %v4249_v40 = vadd.f32 -1.0, %v2023_v32 }
 0xf14   :  { %v5458_v53 = vpop.eup %5457 }
 0xf15   :  { %2027 = vrot.lane.b32.xlu0 %v4249_v40, %s5654_s22  ;;  %v2129_v58 = vmul.f32 2.0, %v5458_v53  ;;  %v2131_v35 = vmul.f32 %v5458_v53, %v6619_v34 }
 0xf17   :  { %v4252_v61 = vadd.f32 -1.0, %v2129_v58 }
 0xf19   :  { %2133 = vrot.lane.b32.xlu1 %v4252_v61, %s5654_s22 }
 0xf76   :  { %v1816_v63 = vpop.permute.xlu0 %1815 }
 0xf77   :  { %v1818_v24 = vmul.f32 %v5448_v17, %v1816_v63 }
 0xf79   :  { %1820 = vrot.lane.b32.xlu0 %v1818_v24, %s5655_s23 }
 0xf7a   :  { %v1922_v62 = vpop.permute.xlu1 %1921 }
 0xf7b   :  { %v1924_v14 = vmul.f32 %v5452_v41, %v1922_v62  ;;  %v6820_v62 = vld [vmem:[%s7304_s1 + $0x110] sm:$0xff] }
 0xf7d   :  { %1926 = vrot.lane.b32.xlu1 %v1924_v14, %s5655_s23  ;;  %v6829_v14 = vld [vmem:[%s7304_s1 + $0x108] sm:$0xff] }
 0xf87   :  { %v2028_v3 = vpop.permute.xlu0 %2027 }
 0xf88   :  { %v2030_v5 = vmul.f32 %v5456_v37, %v2028_v3  ;;  %v6838_v3 = vld [vmem:[%s7304_s1 + $0x100] sm:$0xff] }
 0xf8a   :  { %2032 = vrot.lane.b32.xlu0 %v2030_v5, %s5655_s23  ;;  %v6847_v5 = vld [vmem:[%s7304_s1 + $0xf8] sm:$0xff] }
 0xf8b   :  { %v2134_v19 = vpop.permute.xlu1 %2133 }
 0xf8c   :  { %v2136_v7 = vmul.f32 %v5458_v53, %v2134_v19  ;;  %v6856_v19 = vld [vmem:[%s7304_s1 + $0xf0] sm:$0xff] }
 0xf8e   :  { %2138 = vrot.lane.b32.xlu1 %v2136_v7, %s5655_s23 }
 0xfeb   :  { %v1821_v60 = vpop.permute.xlu0 %1820 }
 0xfec   :  { %v6777_v43 = vadd.f32 %v1821_v60, %v1813_v33  ;;  %v6865_v60 = vld [vmem:[%s7304_s1 + $0xe8] sm:$0xff] }
 0xfee   :  { %5459 = vtanh.f32 %v6777_v43 }
 0xfef   :  { %v1927_v49 = vpop.permute.xlu1 %1926 }
 0xff0   :  { %v6781_v52 = vadd.f32 %v1927_v49, %v1919_v46  ;;  %v6876_v49 = vld [vmem:[%s7304_s1 + $0xe0] sm:$0xff] }
 0xff2   :  { %5461 = vtanh.f32 %v6781_v52 }
 0xffb   :  { %v5460_v15 = vpop.eup %5459 }
 0xffc   :  { %v2033_v0 = vpop.permute.xlu0 %2032  ;;  %1826 = vrot.lane.b32.xlu0 %v5460_v15, %s5654_s22 }
 0xffd   :  { %v6786_v12 = vadd.f32 %v2033_v0, %v2025_v50  ;;  %v6884_v0 = vld [vmem:[%s7304_s1 + $0xd8] sm:$0xff] }
 0xfff   :  { %v5462_v59 = vpop.eup %5461  ;;  %5463 = vtanh.f32 %v6786_v12 }
0x1000   :  { %v2139_v38 = vpop.permute.xlu1 %2138  ;;  %1932 = vrot.lane.b32.xlu1 %v5462_v59, %s5654_s22 }
0x1001   :  { %v6791_v22 = vadd.f32 %v2139_v38, %v2131_v35 }
0x1003   :  { %5465 = vtanh.f32 %v6791_v22 }
0x100c   :  { %v5464_v42 = vpop.eup %5463 }
0x100d   :  { %2038 = vrot.lane.b32.xlu0 %v5464_v42, %s5654_s22 }
0x1010   :  { %v5466_v4 = vpop.eup %5465 }
0x1011   :  { %2144 = vrot.lane.b32.xlu1 %v5466_v4, %s5654_s22 }
0x106e   :  { %v1827_v1 = vpop.permute.xlu0 %1826 }
0x106f   :  { %v1829_v30 = vmul.f32 %v5448_v17, %v1827_v1  ;;  %v2148_v17 = vld [vmem:[%s7303_s0 + $0x30] sm:$0xff] }
0x1071   :  { %2252 = vrot.lane.b32.xlu1 %v1829_v30, %s5655_s23  ;;  %2150 = vrot.lane.b32.xlu0 %v1829_v30, %s5654_s22 }
0x1072   :  { %v1933_v34 = vpop.permute.xlu1 %1932 }
0x1073   :  { %v1935_v56 = vmul.f32 %v5452_v41, %v1933_v34 }
0x1075   :  { %2358 = vrot.lane.b32.xlu1 %v1935_v56, %s5655_s23  ;;  %2256 = vrot.lane.b32.xlu0 %v1935_v56, %s5654_s22 }
0x107f   :  { %v2039_v32 = vpop.permute.xlu0 %2038 }
0x1080   :  { %v2041_v40 = vmul.f32 %v5456_v37, %v2039_v32 }
0x1082   :  { %2464 = vrot.lane.b32.xlu1 %v2041_v40, %s5655_s23  ;;  %2362 = vrot.lane.b32.xlu0 %v2041_v40, %s5654_s22 }
0x1083   :  { %v2145_v58 = vpop.permute.xlu1 %2144 }
0x1084   :  { %v2147_v61 = vmul.f32 %v5458_v53, %v2145_v58 }
0x1086   :  { %2468 = vrot.lane.b32.xlu0 %v2147_v61, %s5654_s22 }
0x10e3   :  { %v2151_v63 = vpop.permute.xlu0 %2150  ;;  %v2253_v37 = vpop.permute.xlu1 %2252 }
0x10e4   :  { %v2153_v41 = vsel %vm212_vm1, %v2148_v17, %v2151_v63 }
0x10e5   :  { %5023 = vmatmul.mubr.msk.f32.vlgmr.msra.gmra.mxu0 %vm227_vm2, %v2153_v41 }
0x10e6   :  { %5045 = vmatpush3.msra.mxu0 %v6639_v48  ;;  %5060 = vmatprep.mubr.msk.f32.mxu0 %vm5653_vm0, %v5652_v9 }
0x10e7   :  { %5046 = vmatprep.subr.mxu0 %v5652_v9  ;;  %v2257_v53 = vpop.permute.xlu0 %2256  ;;  %v2359_v7 = vpop.permute.xlu1 %2358 }
0x10e8   :  { %5047 = vmatpush3.msra.mxu0 %v6648_v36  ;;  %v2259_v24 = vsel %vm212_vm1, %v2253_v37, %v2257_v53 }
0x10e9   :  { %5048 = vmatprep.subr.mxu0 %v5652_v9  ;;  %5042 = vmatmul.mubr.msk.f32.vlgmr.msra.gmra.mxu1 %vm227_vm2, %v2259_v24 }
0x10ea   :  { %5049 = vmatpush3.msra.mxu0 %v6657_v57  ;;  %5064 = vmatpush3.msra.mxu1 %v6820_v62 }
0x10eb   :  { %5050 = vmatprep.subr.mxu0 %v5652_v9  ;;  %5065 = vmatprep.subr.mxu1 %v5652_v9 }
0x10ec   :  { %5051 = vmatpush3.msra.mxu0 %v6666_v39  ;;  %5066 = vmatpush3.msra.mxu1 %v6829_v14 }
0x10ed   :  { %5052 = vmatprep.subr.mxu0 %v5652_v9  ;;  %5067 = vmatprep.subr.mxu1 %v5652_v9 }
0x10ee   :  { %5053 = vmatpush3.msra.mxu0 %v6675_v25  ;;  %5068 = vmatpush3.msra.mxu1 %v6838_v3 }
0x10ef   :  { %5054 = vmatprep.subr.mxu0 %v5652_v9  ;;  %5069 = vmatprep.subr.mxu1 %v5652_v9 }
0x10f0   :  { %5055 = vmatpush3.msra.mxu0 %v6684_v27  ;;  %5070 = vmatpush3.msra.mxu1 %v6847_v5 }
0x10f1   :  { %5056 = vmatprep.subr.mxu0 %v5652_v9  ;;  %5071 = vmatprep.subr.mxu1 %v5652_v9 }
0x10f2   :  { %5057 = vmatpush3.msra.mxu0 %v6693_v28  ;;  %5072 = vmatpush3.msra.mxu1 %v6856_v19 }
0x10f3   :  { %5058 = vmatprep.subr.mxu0 %v5652_v9  ;;  %5073 = vmatprep.subr.mxu1 %v5652_v9 }
0x10f4   :  { %v2363_v33 = vpop.permute.xlu0 %2362  ;;  %5059 = vmatpush3.msra.mxu0 %v6702_v29  ;;  %5074 = vmatpush3.msra.mxu1 %v6865_v60  ;;  %v2465_v15 = vpop.permute.xlu1 %2464 }
0x10f5   :  { %v2365_v46 = vsel %vm212_vm1, %v2359_v7, %v2363_v33  ;;  %5075 = vmatprep.subr.mxu1 %v5652_v9  ;;  %5079 = vmatprep.mubr.msk.f32.mxu1 %vm5653_vm0, %v5652_v9 }
0x10f6   :  { %5061 = vmatmul.mubr.msk.f32.vlgmr.msra.gmra.mxu0 %vm227_vm2, %v2365_v46  ;;  %5076 = vmatpush3.msra.mxu1 %v6876_v49 }
0x10f7   :  { %5077 = vmatprep.subr.mxu1 %v5652_v9  ;;  %5082 = vmatprep.subr.mxu0 %v5652_v9 }
0x10f8   :  { %v2469_v50 = vpop.permute.xlu0 %2468  ;;  %5078 = vmatpush3.msra.mxu1 %v6884_v0  ;;  %5083 = vmatpush3.msra.mxu0 %v6471_v51 }
0x10f9   :  { %v2471_v59 = vsel %vm212_vm1, %v2465_v15, %v2469_v50  ;;  %5084 = vmatprep.subr.mxu0 %v5652_v9  ;;  %5101 = vmatprep.subr.mxu1 %v5652_v9 }
0x10fa   :  { %5080 = vmatmul.mubr.msk.f32.vlgmr.msra.gmra.mxu1 %vm227_vm2, %v2471_v59  ;;  %5085 = vmatpush3.msra.mxu0 %v6481_v54 }
0x10fb   :  { %5086 = vmatprep.subr.mxu0 %v5652_v9  ;;  %5102 = vmatpush3.msra.mxu1 %v6488_v16 }
0x10fc   :  { %5087 = vmatpush3.msra.mxu0 %v6494_v18  ;;  %5103 = vmatprep.subr.mxu1 %v5652_v9 }
0x10fd   :  { %5088 = vmatprep.subr.mxu0 %v5652_v9  ;;  %5104 = vmatpush3.msra.mxu1 %v6502_v20 }
0x10fe   :  { %5089 = vmatpush3.msra.mxu0 %v6508_v21  ;;  %5105 = vmatprep.subr.mxu1 %v5652_v9 }
0x10ff   :  { %5090 = vmatprep.subr.mxu0 %v5652_v9  ;;  %5106 = vmatpush3.msra.mxu1 %v6516_v23 }
0x1100   :  { %5091 = vmatpush3.msra.mxu0 %v6522_v26  ;;  %5107 = vmatprep.subr.mxu1 %v5652_v9 }
0x1101   :  { %5092 = vmatprep.subr.mxu0 %v5652_v9  ;;  %5108 = vmatpush3.msra.mxu1 %v6530_v31 }
0x1102   :  { %5093 = vmatpush3.msra.mxu0 %v6536_v44  ;;  %5109 = vmatprep.subr.mxu1 %v5652_v9 }
0x1103   :  { %5094 = vmatprep.subr.mxu0 %v5652_v9  ;;  %5110 = vmatpush3.msra.mxu1 %v6544_v45 }
0x1104   :  { %5095 = vmatpush3.msra.mxu0 %v6550_v47  ;;  %5111 = vmatprep.subr.mxu1 %v5652_v9 }
0x1105   :  { %5096 = vmatprep.subr.mxu0 %v5652_v9  ;;  %5112 = vmatpush3.msra.mxu1 %v6558_v55 }
0x1106   :  { %5097 = vmatpush3.msra.mxu0 %v6564_v8  ;;  %5098 = vmatprep.mubr.msk.f32.mxu0 %vm5653_vm0, %v5652_v9 }
0x1107   :  { %5113 = vmatprep.subr.mxu1 %v5652_v9  ;;  %5120 = vmatprep.subr.mxu0 %v5652_v9 }
0x1108   :  { %5114 = vmatpush3.msra.mxu1 %v6574_v10  ;;  %5117 = vmatprep.mubr.msk.f32.mxu1 %vm5653_vm0, %v5652_v9 }
0x1109   :  { %5115 = vmatprep.subr.mxu1 %v5652_v9 }
0x110a   :  { %5116 = vmatpush3.msra.mxu1 %v6583_v11 }
0x110b   :  { %5139 = vmatprep.subr.mxu1 %v5652_v9 }
0x11a5   :  { %v2223_v51 = vpop.f32.mrf.mxu0 }
0x11a6   :  { %v2224_v54 = vadd.f32 %v6590_v13, %v2223_v51  ;;  %v6932_v13 = vld [vmem:[%s7304_s1 + $0x118] ss:$0 sm:$0xff] }
0x11a7   :  { %v5024_v16 = vpop.f32.mrf.mxu0 }
0x11a8   :  { %v4254_v18 = vmul.f32 -1.442695, %v2224_v54 }
0x11a9   :  { %v2329_v20 = vpop.f32.mrf.mxu1 }
0x11aa   :  { %5467 = vpow2.f32 %v4254_v18  ;;  %v2330_v21 = vadd.f32 %v6758_v2, %v2329_v20 }
0x11ab   :  { %v5043_v23 = vpop.f32.mrf.mxu1 }
0x11ac   :  { %v4257_v26 = vmul.f32 -1.442695, %v2330_v21 }
0x11ae   :  { %5469 = vpow2.f32 %v4257_v26 }
0x11b6   :  { %v2435_v31 = vpop.f32.mrf.mxu0 }
0x11b7   :  { %v5468_v44 = vpop.eup %5467  ;;  %v2436_v45 = vadd.f32 %v6764_v6, %v2435_v31 }
0x11b8   :  { %v2230_v47 = vadd.f32 1.0, %v5468_v44  ;;  %v5062_v55 = vpop.f32.mrf.mxu0 }
0x11b9   :  { %v4260_v8 = vmul.f32 -1.442695, %v2436_v45 }
0x11ba   :  { %5471 = vrcp.f32 %v2230_v47  ;;  %v2541_v10 = vpop.f32.mrf.mxu1 }
0x11bb   :  { %v5470_v11 = vpop.eup %5469  ;;  %5473 = vpow2.f32 %v4260_v8  ;;  %v2542_v35 = vadd.f32 %v6932_v13, %v2541_v10 }
0x11bc   :  { %v2336_v38 = vadd.f32 1.0, %v5470_v11  ;;  %v5081_v42 = vpop.f32.mrf.mxu1 }
0x11bd   :  { %v4263_v4 = vmul.f32 -1.442695, %v2542_v35 }
0x11be   :  { %5475 = vrcp.f32 %v2336_v38 }
0x11bf   :  { %5477 = vpow2.f32 %v4263_v4 }
0x11c7   :  { %v5472_v1 = vpop.eup %5471 }
0x11c8   :  { %v5474_v30 = vpop.eup %5473  ;;  %v2233_v34 = vmul.f32 2.0, %v5472_v1  ;;  %v2235_v20 = vmul.f32 %v5472_v1, %v6777_v43 }
0x11c9   :  { %v2442_v56 = vadd.f32 1.0, %v5474_v30 }
0x11ca   :  { %v4255_v32 = vadd.f32 -1.0, %v2233_v34 }
0x11cb   :  { %v5476_v40 = vpop.eup %5475  ;;  %5479 = vrcp.f32 %v2442_v56 }
0x11cc   :  { %v5478_v58 = vpop.eup %5477  ;;  %2237 = vrot.lane.b32.xlu1 %v4255_v32, %s5654_s22  ;;  %v2339_v61 = vmul.f32 2.0, %v5476_v40  ;;  %v2341_v26 = vmul.f32 %v5476_v40, %v6781_v52 }
0x11cd   :  { %v2548_v17 = vadd.f32 1.0, %v5478_v58 }
0x11ce   :  { %v4258_v63 = vadd.f32 -1.0, %v2339_v61 }
0x11cf   :  { %5481 = vrcp.f32 %v2548_v17 }
0x11d0   :  { %2343 = vrot.lane.b32.xlu0 %v4258_v63, %s5654_s22 }
0x11d8   :  { %v5480_v41 = vpop.eup %5479 }
0x11d9   :  { %v2445_v37 = vmul.f32 2.0, %v5480_v41  ;;  %v2447_v47 = vmul.f32 %v5480_v41, %v6786_v12 }
0x11db   :  { %v4261_v53 = vadd.f32 -1.0, %v2445_v37 }
0x11dc   :  { %v5482_v24 = vpop.eup %5481 }
0x11dd   :  { %2449 = vrot.lane.b32.xlu1 %v4261_v53, %s5654_s22  ;;  %v2551_v7 = vmul.f32 2.0, %v5482_v24  ;;  %v2553_v10 = vmul.f32 %v5482_v24, %v6791_v22 }
0x11df   :  { %v4264_v33 = vadd.f32 -1.0, %v2551_v7 }
0x11e1   :  { %2555 = vrot.lane.b32.xlu0 %v4264_v33, %s5654_s22  ;;  %v5587_v33 = vld [vmem:[%s7304_s1 + $0x80] sm:$0xff] }
0x123e   :  { %v2238_v46 = vpop.permute.xlu1 %2237 }
0x123f   :  { %v2240_v15 = vmul.f32 %v5472_v1, %v2238_v46 }
0x1241   :  { %2242 = vrot.lane.b32.xlu1 %v2240_v15, %s5655_s23  ;;  %v5588_v15 = vld [vmem:[%s7304_s1 + $0x78] sm:$0xff] }
0x1242   :  { %v2344_v50 = vpop.permute.xlu0 %2343 }
0x1243   :  { %v2346_v59 = vmul.f32 %v5476_v40, %v2344_v50  ;;  %v5589_v50 = vld [vmem:[%s7304_s1 + $0x70] sm:$0xff] }
0x1245   :  { %2348 = vrot.lane.b32.xlu0 %v2346_v59, %s5655_s23  ;;  %v5590_v59 = vld [vmem:[%s7304_s1 + $0x68] sm:$0xff] }
0x124f   :  { %v2450_v51 = vpop.permute.xlu1 %2449 }
0x1250   :  { %v2452_v54 = vmul.f32 %v5480_v41, %v2450_v51  ;;  %v5593_v51 = vld [vmem:[%s7304_s1 + $0x50] sm:$0xff] }
0x1252   :  { %2454 = vrot.lane.b32.xlu1 %v2452_v54, %s5655_s23 }
0x1253   :  { %v2556_v16 = vpop.permute.xlu0 %2555 }
0x1254   :  { %v2558_v18 = vmul.f32 %v5482_v24, %v2556_v16 }
0x1256   :  { %2560 = vrot.lane.b32.xlu0 %v2558_v18, %s5655_s23 }
0x12b3   :  { %v2243_v21 = vpop.permute.xlu1 %2242 }
0x12b4   :  { %v6944_v23 = vadd.f32 %v2243_v21, %v2235_v20 }
0x12b6   :  { %5483 = vtanh.f32 %v6944_v23 }
0x12b7   :  { %v2349_v31 = vpop.permute.xlu0 %2348 }
0x12b8   :  { %v6948_v44 = vadd.f32 %v2349_v31, %v2341_v26 }
0x12ba   :  { %5485 = vtanh.f32 %v6948_v44 }
0x12c3   :  { %v5484_v45 = vpop.eup %5483 }
0x12c4   :  { %v2455_v55 = vpop.permute.xlu1 %2454  ;;  %2248 = vrot.lane.b32.xlu1 %v5484_v45, %s5654_s22 }
0x12c5   :  { %v6953_v8 = vadd.f32 %v2455_v55, %v2447_v47 }
0x12c7   :  { %v5486_v43 = vpop.eup %5485  ;;  %5487 = vtanh.f32 %v6953_v8 }
0x12c8   :  { %v2561_v11 = vpop.permute.xlu0 %2560  ;;  %2354 = vrot.lane.b32.xlu0 %v5486_v43, %s5654_s22 }
0x12c9   :  { %v6958_v52 = vadd.f32 %v2561_v11, %v2553_v10 }
0x12cb   :  { %5489 = vtanh.f32 %v6958_v52 }
0x12d4   :  { %v5488_v35 = vpop.eup %5487 }
0x12d5   :  { %2460 = vrot.lane.b32.xlu1 %v5488_v35, %s5654_s22 }
0x12d8   :  { %v5490_v12 = vpop.eup %5489 }
0x12d9   :  { %2566 = vrot.lane.b32.xlu0 %v5490_v12, %s5654_s22 }
0x1336   :  { %v2249_v38 = vpop.permute.xlu1 %2248 }
0x1337   :  { %v2251_v42 = vmul.f32 %v5472_v1, %v2249_v38  ;;  %v2570_v1 = vld [vmem:[%s7303_s0 + $0x38] sm:$0xff] }
0x1339   :  { %2674 = vrot.lane.b32.xlu0 %v2251_v42, %s5655_s23  ;;  %2572 = vrot.lane.b32.xlu1 %v2251_v42, %s5654_s22 }
0x133a   :  { %v2355_v22 = vpop.permute.xlu0 %2354 }
0x133b   :  { %v2357_v4 = vmul.f32 %v5476_v40, %v2355_v22 }
0x133d   :  { %2780 = vrot.lane.b32.xlu0 %v2357_v4, %s5655_s23  ;;  %2678 = vrot.lane.b32.xlu1 %v2357_v4, %s5654_s22 }
0x1347   :  { %v2461_v30 = vpop.permute.xlu1 %2460 }
0x1348   :  { %v2463_v34 = vmul.f32 %v5480_v41, %v2461_v30 }
0x134a   :  { %2886 = vrot.lane.b32.xlu0 %v2463_v34, %s5655_s23  ;;  %2784 = vrot.lane.b32.xlu1 %v2463_v34, %s5654_s22 }
0x134b   :  { %v2567_v56 = vpop.permute.xlu0 %2566 }
0x134c   :  { %v2569_v32 = vmul.f32 %v5482_v24, %v2567_v56 }
0x134e   :  { %2890 = vrot.lane.b32.xlu1 %v2569_v32, %s5654_s22 }
0x13ab   :  { %v2573_v58 = vpop.permute.xlu1 %2572  ;;  %v2675_v61 = vpop.permute.xlu0 %2674 }
0x13ac   :  { %v2575_v40 = vsel %vm212_vm1, %v2570_v1, %v2573_v58 }
0x13ad   :  { %5099 = vmatmul.mubr.msk.f32.vlgmr.msra.gmra.mxu0 %vm227_vm2, %v2575_v40 }
0x13ae   :  { %5121 = vmatpush3.msra.mxu0 %v6639_v48  ;;  %5136 = vmatprep.mubr.msk.f32.mxu0 %vm5653_vm0, %v5652_v9 }
0x13af   :  { %5122 = vmatprep.subr.mxu0 %v5652_v9  ;;  %v2679_v17 = vpop.permute.xlu1 %2678  ;;  %v2781_v41 = vpop.permute.xlu0 %2780 }
0x13b0   :  { %5123 = vmatpush3.msra.mxu0 %v6648_v36  ;;  %v2681_v63 = vsel %vm212_vm1, %v2675_v61, %v2679_v17 }
0x13b1   :  { %5124 = vmatprep.subr.mxu0 %v5652_v9  ;;  %5118 = vmatmul.mubr.msk.f32.vlgmr.msra.gmra.mxu1 %vm227_vm2, %v2681_v63 }
0x13b2   :  { %5125 = vmatpush3.msra.mxu0 %v6657_v57  ;;  %5140 = vmatpush3.msra.mxu1 %v6820_v62 }
0x13b3   :  { %5126 = vmatprep.subr.mxu0 %v5652_v9  ;;  %5141 = vmatprep.subr.mxu1 %v5652_v9 }
0x13b4   :  { %5127 = vmatpush3.msra.mxu0 %v6666_v39  ;;  %5142 = vmatpush3.msra.mxu1 %v6829_v14 }
0x13b5   :  { %5128 = vmatprep.subr.mxu0 %v5652_v9  ;;  %5143 = vmatprep.subr.mxu1 %v5652_v9 }
0x13b6   :  { %5129 = vmatpush3.msra.mxu0 %v6675_v25  ;;  %5144 = vmatpush3.msra.mxu1 %v6838_v3 }
0x13b7   :  { %5130 = vmatprep.subr.mxu0 %v5652_v9  ;;  %5145 = vmatprep.subr.mxu1 %v5652_v9 }
0x13b8   :  { %5131 = vmatpush3.msra.mxu0 %v6684_v27  ;;  %5146 = vmatpush3.msra.mxu1 %v6847_v5 }
0x13b9   :  { %5132 = vmatprep.subr.mxu0 %v5652_v9  ;;  %5147 = vmatprep.subr.mxu1 %v5652_v9 }
0x13ba   :  { %5133 = vmatpush3.msra.mxu0 %v6693_v28  ;;  %5148 = vmatpush3.msra.mxu1 %v6856_v19 }
0x13bb   :  { %5134 = vmatprep.subr.mxu0 %v5652_v9  ;;  %5149 = vmatprep.subr.mxu1 %v5652_v9 }
0x13bc   :  { %v2785_v37 = vpop.permute.xlu1 %2784  ;;  %5135 = vmatpush3.msra.mxu0 %v6702_v29  ;;  %5150 = vmatpush3.msra.mxu1 %v6865_v60  ;;  %v2887_v24 = vpop.permute.xlu0 %2886 }
0x13bd   :  { %v2787_v53 = vsel %vm212_vm1, %v2781_v41, %v2785_v37  ;;  %5151 = vmatprep.subr.mxu1 %v5652_v9  ;;  %5155 = vmatprep.mubr.msk.f32.mxu1 %vm5653_vm0, %v5652_v9 }
0x13be   :  { %5137 = vmatmul.mubr.msk.f32.vlgmr.msra.gmra.mxu0 %vm227_vm2, %v2787_v53  ;;  %5152 = vmatpush3.msra.mxu1 %v6876_v49 }
0x13bf   :  { %5153 = vmatprep.subr.mxu1 %v5652_v9  ;;  %5158 = vmatprep.subr.mxu0 %v5652_v9 }
0x13c0   :  { %v2891_v7 = vpop.permute.xlu1 %2890  ;;  %5154 = vmatpush3.msra.mxu1 %v6884_v0  ;;  %5159 = vmatpush3.msra.mxu0 %v5587_v33 }
0x13c1   :  { %v2893_v46 = vsel %vm212_vm1, %v2887_v24, %v2891_v7  ;;  %5160 = vmatprep.subr.mxu0 %v5652_v9  ;;  %5177 = vmatprep.subr.mxu1 %v5652_v9 }
0x13c2   :  { %5156 = vmatmul.mubr.msk.f32.vlgmr.msra.gmra.mxu1 %vm227_vm2, %v2893_v46  ;;  %5161 = vmatpush3.msra.mxu0 %v5588_v15 }
0x13c3   :  { %5162 = vmatprep.subr.mxu0 %v5652_v9  ;;  %5178 = vmatpush3.msra.mxu1 %v6639_v48  ;;  %v5591_v48 = vld [vmem:[%s7304_s1 + $0x60] sm:$0xff] }
0x13c4   :  { %5163 = vmatpush3.msra.mxu0 %v5589_v50  ;;  %5179 = vmatprep.subr.mxu1 %v5652_v9 }
0x13c5   :  { %5164 = vmatprep.subr.mxu0 %v5652_v9  ;;  %5180 = vmatpush3.msra.mxu1 %v6648_v36  ;;  %v5592_v36 = vld [vmem:[%s7304_s1 + $0x58] sm:$0xff] }
0x13c6   :  { %5165 = vmatpush3.msra.mxu0 %v5590_v59  ;;  %5174 = vmatprep.mubr.msk.f32.mxu0 %vm5653_vm0, %v5652_v9 }
0x13c7   :  { %5166 = vmatprep.subr.mxu0 %v5652_v9  ;;  %5181 = vmatprep.subr.mxu1 %v5652_v9 }
0x13c8   :  { %5167 = vmatpush3.msra.mxu0 %v5591_v48  ;;  %5182 = vmatpush3.msra.mxu1 %v6657_v57  ;;  %v5594_v57 = vld [vmem:[%s7304_s1 + $0x48] sm:$0xff] }
0x13c9   :  { %5168 = vmatprep.subr.mxu0 %v5652_v9  ;;  %5183 = vmatprep.subr.mxu1 %v5652_v9 }
0x13ca   :  { %5169 = vmatpush3.msra.mxu0 %v5592_v36  ;;  %5184 = vmatpush3.msra.mxu1 %v6666_v39 }
0x13cb   :  { %5170 = vmatprep.subr.mxu0 %v5652_v9  ;;  %5185 = vmatprep.subr.mxu1 %v5652_v9 }
0x13cc   :  { %5171 = vmatpush3.msra.mxu0 %v5593_v51  ;;  %5186 = vmatpush3.msra.mxu1 %v6675_v25  ;;  %v5595_v25 = vld [vmem:[%s7304_s1 + $0x40] ss:$0 sm:$0xff] }
0x13cd   :  { %5172 = vmatprep.subr.mxu0 %v5652_v9  ;;  %5187 = vmatprep.subr.mxu1 %v5652_v9 }
0x13ce   :  { %5173 = vmatpush3.msra.mxu0 %v5594_v57  ;;  %5188 = vmatpush3.msra.mxu1 %v6684_v27 }
0x13cf   :  { %5196 = vmatprep.subr.mxu0 %v5652_v9  ;;  %5189 = vmatprep.subr.mxu1 %v5652_v9 }
0x13d0   :  { %5190 = vmatpush3.msra.mxu1 %v6693_v28  ;;  %5193 = vmatprep.mubr.msk.f32.mxu1 %vm5653_vm0, %v5652_v9 }
0x13d1   :  { %5191 = vmatprep.subr.mxu1 %v5652_v9 }
0x13d2   :  { %5192 = vmatpush3.msra.mxu1 %v6702_v29 }
0x13d3   :  { %5215 = vmatprep.subr.mxu1 %v5652_v9 }
0x146d   :  { %v2645_v39 = vpop.f32.mrf.mxu0 }
0x146e   :  { %v2646_v27 = vadd.f32 %v5595_v25, %v2645_v39 }
0x146f   :  { %v5100_v54 = vpop.f32.mrf.mxu0 }
0x1470   :  { %v4266_v16 = vmul.f32 -1.442695, %v2646_v27 }
0x1471   :  { %v2751_v18 = vpop.f32.mrf.mxu1 }
0x1472   :  { %5491 = vpow2.f32 %v4266_v16  ;;  %v2752_v28 = vadd.f32 %v6758_v2, %v2751_v18 }
0x1473   :  { %v5119_v20 = vpop.f32.mrf.mxu1 }
0x1474   :  { %v4269_v21 = vmul.f32 -1.442695, %v2752_v28 }
0x1476   :  { %5493 = vpow2.f32 %v4269_v21 }
0x147e   :  { %v2857_v26 = vpop.f32.mrf.mxu0 }
0x147f   :  { %v5492_v31 = vpop.eup %5491  ;;  %v2858_v29 = vadd.f32 %v6764_v6, %v2857_v26 }
0x1480   :  { %v2652_v45 = vadd.f32 1.0, %v5492_v31  ;;  %v5138_v47 = vpop.f32.mrf.mxu0 }
0x1481   :  { %v4272_v55 = vmul.f32 -1.442695, %v2858_v29 }
0x1482   :  { %5495 = vrcp.f32 %v2652_v45  ;;  %v2963_v43 = vpop.f32.mrf.mxu1 }
0x1483   :  { %v5494_v10 = vpop.eup %5493  ;;  %5497 = vpow2.f32 %v4272_v55  ;;  %v2964_v11 = vadd.f32 %v6932_v13, %v2963_v43 }
0x1484   :  { %v2758_v35 = vadd.f32 1.0, %v5494_v10  ;;  %v5157_v12 = vpop.f32.mrf.mxu1 }
0x1485   :  { %v4275_v38 = vmul.f32 -1.442695, %v2964_v11 }
0x1486   :  { %5499 = vrcp.f32 %v2758_v35 }
0x1487   :  { %5501 = vpow2.f32 %v4275_v38 }
0x148f   :  { %v5496_v2 = vpop.eup %5495 }
0x1490   :  { %v5498_v42 = vpop.eup %5497  ;;  %v2655_v22 = vmul.f32 2.0, %v5496_v2  ;;  %v2657_v59 = vmul.f32 %v5496_v2, %v6944_v23 }
0x1491   :  { %v2864_v4 = vadd.f32 1.0, %v5498_v42 }
0x1492   :  { %v4267_v30 = vadd.f32 -1.0, %v2655_v22 }
0x1493   :  { %v5500_v6 = vpop.eup %5499  ;;  %5503 = vrcp.f32 %v2864_v4 }
0x1494   :  { %v5502_v34 = vpop.eup %5501  ;;  %2659 = vrot.lane.b32.xlu0 %v4267_v30, %s5654_s22  ;;  %v2761_v56 = vmul.f32 2.0, %v5500_v6  ;;  %v2763_v51 = vmul.f32 %v5500_v6, %v6948_v44  ;;  %v5597_v30 = vld [vmem:[%s7304_s1 + $0xc0] sm:$0xff] }
0x1495   :  { %v2970_v32 = vadd.f32 1.0, %v5502_v34  ;;  %v5599_v34 = vld [vmem:[%s7304_s1 + $0xb0] sm:$0xff] }
0x1496   :  { %v4270_v1 = vadd.f32 -1.0, %v2761_v56  ;;  %v5600_v56 = vld [vmem:[%s7304_s1 + $0xa8] sm:$0xff] }
0x1497   :  { %5505 = vrcp.f32 %v2970_v32  ;;  %v5601_v32 = vld [vmem:[%s7304_s1 + $0xa0] sm:$0xff] }
0x1498   :  { %2765 = vrot.lane.b32.xlu1 %v4270_v1, %s5654_s22  ;;  %v5602_v1 = vld [vmem:[%s7304_s1 + $0x98] sm:$0xff] }
0x14a0   :  { %v5504_v58 = vpop.eup %5503 }
0x14a1   :  { %v2867_v40 = vmul.f32 2.0, %v5504_v58  ;;  %v2869_v27 = vmul.f32 %v5504_v58, %v6953_v8 }
0x14a3   :  { %v4273_v61 = vadd.f32 -1.0, %v2867_v40 }
0x14a4   :  { %v5506_v17 = vpop.eup %5505 }
0x14a5   :  { %2871 = vrot.lane.b32.xlu0 %v4273_v61, %s5654_s22  ;;  %v2973_v63 = vmul.f32 2.0, %v5506_v17  ;;  %v2975_v23 = vmul.f32 %v5506_v17, %v6958_v52  ;;  %v5604_v61 = vld [vmem:[%s7304_s1 + $0x88] ss:$0 sm:$0xff] }
0x14a7   :  { %v4276_v41 = vadd.f32 -1.0, %v2973_v63 }
0x14a9   :  { %2977 = vrot.lane.b32.xlu1 %v4276_v41, %s5654_s22 }
0x1506   :  { %v2660_v37 = vpop.permute.xlu0 %2659 }
0x1507   :  { %v2662_v53 = vmul.f32 %v5496_v2, %v2660_v37 }
0x1509   :  { %2664 = vrot.lane.b32.xlu0 %v2662_v53, %s5655_s23  ;;  %v7187_v53 = vld [vmem:[%s7304_s1 + $0xd0] ss:$0 sm:$0xff] }
0x150a   :  { %v2766_v24 = vpop.permute.xlu1 %2765 }
0x150b   :  { %v2768_v7 = vmul.f32 %v5500_v6, %v2766_v24 }
0x150d   :  { %2770 = vrot.lane.b32.xlu1 %v2768_v7, %s5655_s23 }
0x1517   :  { %v2872_v33 = vpop.permute.xlu0 %2871 }
0x1518   :  { %v2874_v46 = vmul.f32 %v5504_v58, %v2872_v33 }
0x151a   :  { %2876 = vrot.lane.b32.xlu0 %v2874_v46, %s5655_s23 }
0x151b   :  { %v2978_v15 = vpop.permute.xlu1 %2977 }
0x151c   :  { %v2980_v50 = vmul.f32 %v5506_v17, %v2978_v15 }
0x151e   :  { %2982 = vrot.lane.b32.xlu1 %v2980_v50, %s5655_s23 }
0x157b   :  { %v2665_v48 = vpop.permute.xlu0 %2664 }
0x157c   :  { %v2667_v36 = vadd.f32 %v2665_v48, %v2657_v59 }
0x157e   :  { %5507 = vtanh.f32 %v2667_v36 }
0x157f   :  { %v2771_v57 = vpop.permute.xlu1 %2770 }
0x1580   :  { %v7085_v39 = vadd.f32 %v2771_v57, %v2763_v51 }
0x1582   :  { %5509 = vtanh.f32 %v7085_v39 }
0x158b   :  { %v5508_v25 = vpop.eup %5507 }
0x158c   :  { %v2877_v54 = vpop.permute.xlu0 %2876  ;;  %2670 = vrot.lane.b32.xlu0 %v5508_v25, %s5654_s22 }
0x158d   :  { %v7090_v16 = vadd.f32 %v2877_v54, %v2869_v27 }
0x158f   :  { %v5510_v18 = vpop.eup %5509  ;;  %5511 = vtanh.f32 %v7090_v16 }
0x1590   :  { %v2983_v28 = vpop.permute.xlu1 %2982  ;;  %2776 = vrot.lane.b32.xlu1 %v5510_v18, %s5654_s22 }
0x1591   :  { %v7095_v44 = vadd.f32 %v2983_v28, %v2975_v23 }
0x1593   :  { %5513 = vtanh.f32 %v7095_v44 }
0x159c   :  { %v5512_v20 = vpop.eup %5511 }
0x159d   :  { %2882 = vrot.lane.b32.xlu0 %v5512_v20, %s5654_s22 }
0x15a0   :  { %v5514_v8 = vpop.eup %5513 }
0x15a1   :  { %2988 = vrot.lane.b32.xlu1 %v5514_v8, %s5654_s22 }
0x15fe   :  { %v2671_v21 = vpop.permute.xlu0 %2670 }
0x15ff   :  { %v2673_v26 = vmul.f32 %v5496_v2, %v2671_v21  ;;  %v5596_v2 = vld [vmem:[%s7304_s1 + $0xc8] sm:$0xff] }
0x1601   :  { %2993 = vrot.lane.b32.xlu0 %v2673_v26, %s5655_s23 }
0x1602   :  { %v2777_v31 = vpop.permute.xlu1 %2776 }
0x1603   :  { %v2779_v29 = vmul.f32 %v5500_v6, %v2777_v31  ;;  %v5598_v6 = vld [vmem:[%s7304_s1 + $0xb8] sm:$0xff] }
0x1605   :  { %2997 = vrot.lane.b32.xlu1 %v2779_v29, %s5654_s22  ;;  %3099 = vrot.lane.b32.xlu0 %v2779_v29, %s5655_s23 }
0x160f   :  { %v2883_v52 = vpop.permute.xlu0 %2882 }
0x1610   :  { %v2885_v45 = vmul.f32 %v5504_v58, %v2883_v52  ;;  %v5603_v58 = vld [vmem:[%s7304_s1 + $0x90] sm:$0xff]  ;;  %s5656_s1 = smov [#allocation3]  }
0x1611   :  { %s207_s25 = sshll.u32 %s5656_s1, 4  ;;  %s208_s25 = int_to_ptr.vmem [resolvable:$true] %s207_s25 }
0x1612   :  { %3205 = vrot.lane.b32.xlu0 %v2885_v45, %s5655_s23  ;;  %3103 = vrot.lane.b32.xlu1 %v2885_v45, %s5654_s22  ;;  %s5614_s26 = scalar_lea.vmem %s208_s25, 4352  ;;  %p5619_p1 = scmp.lt.s32.totalorder %s208_s25, %s208_s25 }
0x1613   :  { %v2989_v47 = vpop.permute.xlu1 %2988  ;;  %p5615_p0 = scmp.ne.s32.totalorder %s208_s25, %s5614_s26  ;;  %p5620_p2 = scmp.lt.s32.totalorder %s5614_s26, %s5614_s26 }
0x1614   :  { %v2991_v55 = vmul.f32 %v5506_v17, %v2989_v47 }
0x1615   :  { %p5621_p3 = por %p5620_p2, %p5619_p1 }
0x1616   :  { %3209 = vrot.lane.b32.xlu1 %v2991_v55, %s5654_s22 }
0x1617   :  { %p5622_p4 = pnand %p5621_p3, %p5615_p0 }
0x1673   :  { %v2994_v43 = vpop.permute.xlu0 %2993 }
0x1677   :  { %v2998_v10 = vpop.permute.xlu1 %2997  ;;  %v3100_v35 = vpop.permute.xlu0 %3099 }
0x1678   :  { %v3000_v11 = vsel %vm212_vm1, %v2994_v43, %v2998_v10 }
0x1679   :  { %5175 = vmatmul.mubr.msk.f32.vlgmr.msra.gmra.mxu0 %vm227_vm2, %v3000_v11 }
0x167a   :  { %5197 = vmatpush3.msra.mxu0 %v6820_v62  ;;  %5212 = vmatprep.mubr.msk.f32.mxu0 %vm5653_vm0, %v5652_v9 }
0x167b   :  { %5198 = vmatprep.subr.mxu0 %v5652_v9 }
0x167c   :  { %5199 = vmatpush3.msra.mxu0 %v6829_v14 }
0x167d   :  { %5200 = vmatprep.subr.mxu0 %v5652_v9 }
0x167e   :  { %5201 = vmatpush3.msra.mxu0 %v6838_v3 }
0x167f   :  { %5202 = vmatprep.subr.mxu0 %v5652_v9 }
0x1680   :  { %5203 = vmatpush3.msra.mxu0 %v6847_v5 }
0x1681   :  { %5204 = vmatprep.subr.mxu0 %v5652_v9 }
0x1682   :  { %5205 = vmatpush3.msra.mxu0 %v6856_v19 }
0x1683   :  { %5206 = vmatprep.subr.mxu0 %v5652_v9 }
0x1684   :  { %v3104_v12 = vpop.permute.xlu1 %3103  ;;  %5207 = vmatpush3.msra.mxu0 %v6865_v60  ;;  %v3206_v42 = vpop.permute.xlu0 %3205 }
0x1685   :  { %v3106_v38 = vsel %vm212_vm1, %v3100_v35, %v3104_v12  ;;  %5208 = vmatprep.subr.mxu0 %v5652_v9 }
0x1686   :  { %5194 = vmatmul.mubr.msk.f32.vlgmr.msra.gmra.mxu1 %vm227_vm2, %v3106_v38  ;;  %5209 = vmatpush3.msra.mxu0 %v6876_v49 }
0x1687   :  { %5210 = vmatprep.subr.mxu0 %v5652_v9  ;;  %5216 = vmatpush3.msra.mxu1 %v5596_v2 }
0x1688   :  { %v3210_v22 = vpop.permute.xlu1 %3209  ;;  %5211 = vmatpush3.msra.mxu0 %v6884_v0  ;;  %5217 = vmatprep.subr.mxu1 %v5652_v9 }
0x1689   :  { %v3212_v4 = vsel %vm212_vm1, %v3206_v42, %v3210_v22  ;;  %5218 = vmatpush3.msra.mxu1 %v5597_v30  ;;  %5234 = vmatprep.subr.mxu0 %v5652_v9 }
0x168a   :  { %5213 = vmatmul.mubr.msk.f32.vlgmr.msra.gmra.mxu0 %vm227_vm2, %v3212_v4  ;;  %5219 = vmatprep.subr.mxu1 %v5652_v9 }
0x168b   :  { %5220 = vmatpush3.msra.mxu1 %v5598_v6  ;;  %5235 = vmatpush3.msra.mxu0 %v6820_v62 }
0x168c   :  { %5221 = vmatprep.subr.mxu1 %v5652_v9  ;;  %5236 = vmatprep.subr.mxu0 %v5652_v9 }
0x168d   :  { %5222 = vmatpush3.msra.mxu1 %v5599_v34  ;;  %5237 = vmatpush3.msra.mxu0 %v6829_v14 }
0x168e   :  { %5223 = vmatprep.subr.mxu1 %v5652_v9  ;;  %5238 = vmatprep.subr.mxu0 %v5652_v9 }
0x168f   :  { %5224 = vmatpush3.msra.mxu1 %v5600_v56  ;;  %5239 = vmatpush3.msra.mxu0 %v6838_v3 }
0x1690   :  { %5225 = vmatprep.subr.mxu1 %v5652_v9  ;;  %5240 = vmatprep.subr.mxu0 %v5652_v9 }
0x1691   :  { %5226 = vmatpush3.msra.mxu1 %v5601_v32  ;;  %5241 = vmatpush3.msra.mxu0 %v6847_v5 }
0x1692   :  { %5227 = vmatprep.subr.mxu1 %v5652_v9  ;;  %5242 = vmatprep.subr.mxu0 %v5652_v9 }
0x1693   :  { %5228 = vmatpush3.msra.mxu1 %v5602_v1  ;;  %5243 = vmatpush3.msra.mxu0 %v6856_v19 }
0x1694   :  { %5229 = vmatprep.subr.mxu1 %v5652_v9  ;;  %5244 = vmatprep.subr.mxu0 %v5652_v9 }
0x1695   :  { %5230 = vmatpush3.msra.mxu1 %v5603_v58  ;;  %5231 = vmatprep.mubr.msk.f32.mxu1 %vm5653_vm0, %v5652_v9 }
0x1696   :  { %5245 = vmatpush3.msra.mxu0 %v6865_v60  ;;  %5250 = vmatprep.mubr.msk.f32.mxu0 %vm5653_vm0, %v5652_v9 }
0x1697   :  { %5246 = vmatprep.subr.mxu0 %v5652_v9  ;;  %5253 = vmatprep.subr.mxu1 %v5652_v9 }
0x1698   :  { %5247 = vmatpush3.msra.mxu0 %v6876_v49 }
0x1699   :  { %5248 = vmatprep.subr.mxu0 %v5652_v9 }
0x169a   :  { %5249 = vmatpush3.msra.mxu0 %v6884_v0 }
0x1739   :  { %v3070_v40 = vpop.f32.mrf.mxu0 }
0x173a   :  { %v3071_v17 = vadd.f32 %v5604_v61, %v3070_v40 }
0x173b   :  { %v5176_v63 = vpop.f32.mrf.mxu0 }
0x173c   :  { %v4278_v41 = vmul.f32 -1.442695, %v3071_v17 }
0x173e   :  { %5515 = vpow2.f32 %v4278_v41 }
0x1746   :  { %v3176_v37 = vpop.f32.mrf.mxu1 }
0x1747   :  { %v3177_v24 = vadd.f32 %v7187_v53, %v3176_v37 }
0x1748   :  { %v5195_v7 = vpop.f32.mrf.mxu1 }
0x1749   :  { %v4281_v33 = vmul.f32 -1.442695, %v3177_v24 }
0x174a   :  { %v3282_v46 = vpop.f32.mrf.mxu0 }
0x174b   :  { %v5516_v15 = vpop.eup %5515  ;;  %5517 = vpow2.f32 %v4281_v33  ;;  %v3283_v50 = vadd.f32 %v6932_v13, %v3282_v46 }
0x174c   :  { %v3077_v59 = vadd.f32 1.0, %v5516_v15  ;;  %v5214_v48 = vpop.f32.mrf.mxu0 }
0x174d   :  { %v4284_v36 = vmul.f32 -1.442695, %v3283_v50 }
0x174e   :  { %5519 = vrcp.f32 %v3077_v59 }
0x174f   :  { %5521 = vpow2.f32 %v4284_v36 }
0x1758   :  { %v5518_v51 = vpop.eup %5517 }
0x1759   :  { %v3183_v57 = vadd.f32 1.0, %v5518_v51 }
0x175b   :  { %v5520_v25 = vpop.eup %5519  ;;  %5523 = vrcp.f32 %v3183_v57 }
0x175c   :  { %v5522_v27 = vpop.eup %5521  ;;  %v3080_v54 = vmul.f32 2.0, %v5520_v25  ;;  %v3082_v10 = vmul.f32 %v5520_v25, %v7085_v39 }
0x175d   :  { %v3289_v18 = vadd.f32 1.0, %v5522_v27 }
0x175e   :  { %v4279_v23 = vadd.f32 -1.0, %v3080_v54 }
0x175f   :  { %5525 = vrcp.f32 %v3289_v18 }
0x1760   :  { %3084 = vrot.lane.b32.xlu0 %v4279_v23, %s5654_s22 }
0x1768   :  { %v5524_v28 = vpop.eup %5523 }
0x1769   :  { %v3186_v20 = vmul.f32 2.0, %v5524_v28  ;;  %v3188_v12 = vmul.f32 %v5524_v28, %v7090_v16 }
0x176b   :  { %v4282_v8 = vadd.f32 -1.0, %v3186_v20 }
0x176c   :  { %v5526_v21 = vpop.eup %5525 }
0x176d   :  { %3190 = vrot.lane.b32.xlu1 %v4282_v8, %s5654_s22  ;;  %v3292_v26 = vmul.f32 2.0, %v5526_v21  ;;  %v3294_v22 = vmul.f32 %v5526_v21, %v7095_v44 }
0x176f   :  { %v4285_v31 = vadd.f32 -1.0, %v3292_v26 }
0x1771   :  { %3296 = vrot.lane.b32.xlu0 %v4285_v31, %s5654_s22 }
0x17d2   :  { %v3085_v29 = vpop.permute.xlu0 %3084 }
0x17d3   :  { %v3087_v52 = vmul.f32 %v5520_v25, %v3085_v29 }
0x17d5   :  { %3089 = vrot.lane.b32.xlu1 %v3087_v52, %s5655_s23 }
0x17df   :  { %v3191_v45 = vpop.permute.xlu1 %3190 }
0x17e0   :  { %v3193_v47 = vmul.f32 %v5524_v28, %v3191_v45 }
0x17e2   :  { %3195 = vrot.lane.b32.xlu0 %v3193_v47, %s5655_s23 }
0x17e3   :  { %v3297_v55 = vpop.permute.xlu0 %3296 }
0x17e4   :  { %v3299_v43 = vmul.f32 %v5526_v21, %v3297_v55 }
0x17e6   :  { %3301 = vrot.lane.b32.xlu1 %v3299_v43, %s5655_s23 }
0x1847   :  { %v3090_v11 = vpop.permute.xlu1 %3089 }
0x1848   :  { %v3092_v35 = vadd.f32 %v3090_v11, %v3082_v10 }
0x184a   :  { %5527 = vtanh.f32 %v3092_v35 }
0x1854   :  { %v3196_v38 = vpop.permute.xlu0 %3195 }
0x1855   :  { %v7199_v2 = vadd.f32 %v3196_v38, %v3188_v12 }
0x1857   :  { %v5528_v42 = vpop.eup %5527  ;;  %5529 = vtanh.f32 %v7199_v2 }
0x1858   :  { %v3302_v4 = vpop.permute.xlu1 %3301  ;;  %3095 = vrot.lane.b32.xlu0 %v5528_v42, %s5654_s22 }
0x1859   :  { %v7204_v30 = vadd.f32 %v3302_v4, %v3294_v22 }
0x185b   :  { %5531 = vtanh.f32 %v7204_v30 }
0x1864   :  { %v5530_v39 = vpop.eup %5529 }
0x1865   :  { %3201 = vrot.lane.b32.xlu1 %v5530_v39, %s5654_s22 }
0x1868   :  { %v5532_v6 = vpop.eup %5531 }
0x1869   :  { %3307 = vrot.lane.b32.xlu0 %v5532_v6, %s5654_s22 }
0x18ca   :  { %v3096_v16 = vpop.permute.xlu0 %3095 }
0x18cb   :  { %v3098_v34 = vmul.f32 %v5520_v25, %v3096_v16 }
0x18cd   :  { %3312 = vrot.lane.b32.xlu1 %v3098_v34, %s5655_s23 }
0x18d7   :  { %v3202_v56 = vpop.permute.xlu1 %3201 }
0x18d8   :  { %v3204_v32 = vmul.f32 %v5524_v28, %v3202_v56 }
0x18da   :  { %3316 = vrot.lane.b32.xlu0 %v3204_v32, %s5654_s22  ;;  %3418 = vrot.lane.b32.xlu1 %v3204_v32, %s5655_s23 }
0x18db   :  { %v3308_v44 = vpop.permute.xlu0 %3307 }
0x18dc   :  { %v3310_v1 = vmul.f32 %v5526_v21, %v3308_v44 }
0x18de   :  { %3422 = vrot.lane.b32.xlu0 %v3310_v1, %s5654_s22 }
0x193f   :  { %v3313_v58 = vpop.permute.xlu1 %3312 }
0x194c   :  { %v3317_v40 = vpop.permute.xlu0 %3316  ;;  %v3419_v17 = vpop.permute.xlu1 %3418 }
0x194d   :  { %v3319_v61 = vsel %vm212_vm1, %v3313_v58, %v3317_v40 }
0x194e   :  { %5232 = vmatmul.mubr.msk.f32.vlgmr.msra.gmra.mxu1 %vm227_vm2, %v3319_v61 }
0x194f   :  { %5254 = vmatpush3.msra.mxu1 %v6820_v62  ;;  %5269 = vmatprep.mubr.msk.f32.mxu1 %vm5653_vm0, %v5652_v9 }
0x1950   :  { %v3423_v63 = vpop.permute.xlu0 %3422  ;;  %5255 = vmatprep.subr.mxu1 %v5652_v9 }
0x1951   :  { %v3425_v41 = vsel %vm212_vm1, %v3419_v17, %v3423_v63  ;;  %5256 = vmatpush3.msra.mxu1 %v6829_v14 }
0x1952   :  { %5251 = vmatmul.mubr.msk.f32.vlgmr.msra.gmra.mxu0 %vm227_vm2, %v3425_v41  ;;  %5257 = vmatprep.subr.mxu1 %v5652_v9 }
0x1953   :  { %5258 = vmatpush3.msra.mxu1 %v6838_v3 }
0x1954   :  { %5259 = vmatprep.subr.mxu1 %v5652_v9 }
0x1955   :  { %5260 = vmatpush3.msra.mxu1 %v6847_v5 }
0x1956   :  { %5261 = vmatprep.subr.mxu1 %v5652_v9 }
0x1957   :  { %5262 = vmatpush3.msra.mxu1 %v6856_v19 }
0x1958   :  { %5263 = vmatprep.subr.mxu1 %v5652_v9 }
0x1959   :  { %5264 = vmatpush3.msra.mxu1 %v6865_v60 }
0x195a   :  { %5265 = vmatprep.subr.mxu1 %v5652_v9 }
0x195b   :  { %5266 = vmatpush3.msra.mxu1 %v6876_v49 }
0x195c   :  { %5267 = vmatprep.subr.mxu1 %v5652_v9 }
0x195d   :  { %5268 = vmatpush3.msra.mxu1 %v6884_v0 }
0x1a0e   :  { %v3389_v62 = vpop.f32.mrf.mxu1 }
0x1a0f   :  { %v3390_v14 = vadd.f32 %v7187_v53, %v3389_v62 }
0x1a10   :  { %v5233_v3 = vpop.f32.mrf.mxu1 }
0x1a11   :  { %v4287_v5 = vmul.f32 -1.442695, %v3390_v14 }
0x1a12   :  { %v3495_v37 = vpop.f32.mrf.mxu0 }
0x1a13   :  { %5533 = vpow2.f32 %v4287_v5  ;;  %v3496_v19 = vadd.f32 %v6932_v13, %v3495_v37 }
0x1a14   :  { %v5252_v24 = vpop.f32.mrf.mxu0 }
0x1a15   :  { %v4290_v7 = vmul.f32 -1.442695, %v3496_v19 }
0x1a17   :  { %5535 = vpow2.f32 %v4290_v7 }
0x1a20   :  { %v5534_v60 = vpop.eup %5533 }
0x1a21   :  { %v3396_v33 = vadd.f32 1.0, %v5534_v60 }
0x1a23   :  { %5537 = vrcp.f32 %v3396_v33 }
0x1a24   :  { %v5536_v49 = vpop.eup %5535 }
0x1a25   :  { %v3502_v46 = vadd.f32 1.0, %v5536_v49 }
0x1a27   :  { %5539 = vrcp.f32 %v3502_v46 }
0x1a30   :  { %v5538_v15 = vpop.eup %5537 }
0x1a31   :  { %v3399_v0 = vmul.f32 2.0, %v5538_v15  ;;  %v3401_v27 = vmul.f32 %v5538_v15, %v7199_v2 }
0x1a33   :  { %v4288_v50 = vadd.f32 -1.0, %v3399_v0 }
0x1a34   :  { %v5540_v59 = vpop.eup %5539 }
0x1a35   :  { %3403 = vrot.lane.b32.xlu1 %v4288_v50, %s5654_s22  ;;  %v3505_v53 = vmul.f32 2.0, %v5540_v59  ;;  %v3507_v23 = vmul.f32 %v5540_v59, %v7204_v30 }
0x1a37   :  { %v4291_v48 = vadd.f32 -1.0, %v3505_v53 }
0x1a39   :  { %3509 = vrot.lane.b32.xlu0 %v4291_v48, %s5654_s22 }
0x1aa7   :  { %v3404_v36 = vpop.permute.xlu1 %3403 }
0x1aa8   :  { %v3406_v51 = vmul.f32 %v5538_v15, %v3404_v36 }
0x1aaa   :  { %3408 = vrot.lane.b32.xlu1 %v3406_v51, %s5655_s23 }
0x1aab   :  { %v3510_v57 = vpop.permute.xlu0 %3509 }
0x1aac   :  { %v3512_v25 = vmul.f32 %v5540_v59, %v3510_v57 }
0x1aae   :  { %3514 = vrot.lane.b32.xlu0 %v3512_v25, %s5655_s23 }
0x1b1c   :  { %v3409_v54 = vpop.permute.xlu1 %3408 }
0x1b1d   :  { %v3411_v18 = vadd.f32 %v3409_v54, %v3401_v27 }
0x1b1f   :  { %5541 = vtanh.f32 %v3411_v18 }
0x1b20   :  { %v3515_v28 = vpop.permute.xlu0 %3514 }
0x1b21   :  { %v3517_v20 = vadd.f32 %v3515_v28, %v3507_v23 }
0x1b23   :  { %5543 = vtanh.f32 %v3517_v20 }
0x1b2c   :  { %v5542_v8 = vpop.eup %5541 }
0x1b2d   :  { %3414 = vrot.lane.b32.xlu1 %v5542_v8, %s5654_s22 }
0x1b30   :  { %v5544_v21 = vpop.eup %5543 }
0x1b31   :  { %3520 = vrot.lane.b32.xlu0 %v5544_v21, %s5654_s22 }
0x1b9f   :  { %v3415_v26 = vpop.permute.xlu1 %3414 }
0x1ba0   :  { %v3417_v31 = vmul.f32 %v5538_v15, %v3415_v26 }
0x1ba2   :  { %3525 = vrot.lane.b32.xlu1 %v3417_v31, %s5655_s23 }
0x1ba3   :  { %v3521_v29 = vpop.permute.xlu0 %3520 }
0x1ba4   :  { %v3523_v52 = vmul.f32 %v5540_v59, %v3521_v29 }
0x1ba6   :  { %3529 = vrot.lane.b32.xlu0 %v3523_v52, %s5654_s22 }
0x1c14   :  { %v3526_v45 = vpop.permute.xlu1 %3525 }
0x1c18   :  { %v3530_v47 = vpop.permute.xlu0 %3529 }
0x1c19   :  { %v3532_v55 = vsel %vm212_vm1, %v3526_v45, %v3530_v47 }
0x1c1a   :  { %5270 = vmatmul.mubr.msk.f32.vlgmr.msra.gmra.mxu1 %vm227_vm2, %v3532_v55 }
0x1cda   :  { %v3602_v43 = vpop.f32.mrf.mxu1 }
0x1cdb   :  { %v3603_v10 = vadd.f32 %v6932_v13, %v3602_v43 }
0x1cdc   :  { %v5271_v11 = vpop.f32.mrf.mxu1 }
0x1cdd   :  { %v4293_v35 = vmul.f32 -1.442695, %v3603_v10 }
0x1cdf   :  { %5545 = vpow2.f32 %v4293_v35 }
0x1cec   :  { %v5546_v12 = vpop.eup %5545 }
0x1ced   :  { %v3609_v38 = vadd.f32 1.0, %v5546_v12 }
0x1cef   :  { %5547 = vrcp.f32 %v3609_v38 }
0x1cfc   :  { %v5548_v2 = vpop.eup %5547 }
0x1cfd   :  { %v3612_v42 = vmul.f32 2.0, %v5548_v2  ;;  %v3614_v39 = vmul.f32 %v5548_v2, %v3517_v20 }
0x1cff   :  { %v4294_v22 = vadd.f32 -1.0, %v3612_v42 }
0x1d01   :  { %3616 = vrot.lane.b32.xlu1 %v4294_v22, %s5654_s22 }
0x1d73   :  { %v3617_v4 = vpop.permute.xlu1 %3616 }
0x1d74   :  { %v3619_v30 = vmul.f32 %v5548_v2, %v3617_v4 }
0x1d76   :  { %3621 = vrot.lane.b32.xlu0 %v3619_v30, %s5655_s23 }
0x1de8   :  { %v3622_v6 = vpop.permute.xlu0 %3621 }
0x1de9   :  { %v3624_v16 = vadd.f32 %v3622_v6, %v3614_v39 }
0x1deb   :  { %5549 = vtanh.f32 %v3624_v16 }
0x1dec   :  { %5625 = shalt.err (!%p5622_p4)  }
0x1ded   :  { %210 = dma.hbm_to_vmem [thread:$0]  %s7306_s3, 4352, %s208_s25, [#allocation4 + $0x1] }
0x1df8   :  { %v5550_v13 = vpop.eup %5549 }
0x1df9   :  { %3627 = vrot.lane.b32.xlu1 %v5550_v13, %s5654_s22 }
0x1e6b   :  { %v3628_v34 = vpop.permute.xlu1 %3627 }
0x1e6c   :  { %v3630_v56 = vmul.f32 %v5548_v2, %v3628_v34 }
0x1e6d   :  { %5646 = dma.done.wait [#allocation4], 9216 }
0x1e6e   :  { %5647 = vsyncadd [#allocation4], 4294958080  ;;  %3648 = vrot.lane.b32.xlu0 %v3630_v56, %s5655_s23 }
0x1e6f   :  { %5648 = dma.done.wait [#allocation4 + $0x1], 4352 }
0x1e70   :  { %5649 = vsyncadd [#allocation4 + $0x1], 4294962944  ;;  %5272 = vmatprep.subr.mxu0 %v5652_v9  ;;  %5280 = vmatprep.mubr.msk.f32.mxu0 %vm5653_vm0, %v5652_v9  ;;  %v3641_v32 = vld [vmem:[#allocation2 + $0x18] sm:$0xff]  ;;  %v3640_v44 = vld [vmem:[#allocation2 + $0x10] sm:$0xff]  ;;  %s5657_s3 = smov [#allocation5]  }
0x1e71   :  { %3832 = vmatprep.mubr.f32.mxu1 %v5652_v9  ;;  %5273 = vmatpush3.msra.mxu0 %v3641_v32  ;;  %v3754_v1 = vld [vmem:[#allocation3 + $0xf8] sm:$0xff]  ;;  %v3753_v58 = vld [vmem:[#allocation3 + $0xf0] sm:$0xff]  ;;  %v3639_v40 = vld [vmem:[#allocation2 + $0x8] sm:$0xff]  ;;  %s4139_s22 = sshll.u32 %s5657_s3, 4  ;;  %s4140_s22 = int_to_ptr.vmem [resolvable:$true] %s4139_s22 }
0x1e72   :  { %5274 = vmatprep.subr.mxu0 %v5652_v9  ;;  %3768 = vmatprep.subr.mxu1 %v3754_v1  ;;  %v3752_v61 = vld [vmem:[#allocation3 + $0xe8] sm:$0xff]  ;;  %v3751_v17 = vld [vmem:[#allocation3 + $0xe0] sm:$0xff]  ;;  %v3750_v63 = vld [vmem:[#allocation3 + $0xd8] sm:$0xff]  ;;  %s5626_s23 = scalar_lea.vmem %s4140_s22, 128  ;;  %p5631_p6 = scmp.lt.s32.totalorder %s4140_s22, %s4140_s22 }
0x1e73   :  { %5275 = vmatpush3.msra.mxu0 %v3640_v44  ;;  %3769 = vmatpush1.msra.mxu1 %v3753_v58  ;;  %v3638_v41 = vld [vmem:[#allocation2] sm:$0xff]  ;;  %v3749_v62 = vld [vmem:[#allocation3 + $0xd0] sm:$0xff]  ;;  %v3748_v14 = vld [vmem:[#allocation3 + $0xc8] sm:$0xff]  ;;  %p5627_p5 = scmp.ne.s32.totalorder %s4140_s22, %s5626_s23  ;;  %p5632_p7 = scmp.lt.s32.totalorder %s5626_s23, %s5626_s23 }
0x1e74   :  { %5276 = vmatprep.subr.mxu0 %v5652_v9  ;;  %3770 = vmatprep.subr.mxu1 %v3752_v61  ;;  %v3747_v3 = vld [vmem:[#allocation3 + $0xc0] sm:$0xff]  ;;  %v3746_v5 = vld [vmem:[#allocation3 + $0xb8] sm:$0xff]  ;;  %v3745_v37 = vld [vmem:[#allocation3 + $0xb0] sm:$0xff] }
0x1e75   :  { %5277 = vmatpush3.msra.mxu0 %v3639_v40  ;;  %3771 = vmatpush1.msra.mxu1 %v3751_v17  ;;  %v3744_v19 = vld [vmem:[#allocation3 + $0xa8] sm:$0xff]  ;;  %v3743_v24 = vld [vmem:[#allocation3 + $0xa0] sm:$0xff]  ;;  %v3742_v7 = vld [vmem:[#allocation3 + $0x98] sm:$0xff]  ;;  %p5633_p8 = por %p5632_p7, %p5631_p6 }
0x1e76   :  { %5278 = vmatprep.subr.mxu0 %v5652_v9  ;;  %3772 = vmatprep.subr.mxu1 %v3750_v63  ;;  %v3741_v60 = vld [vmem:[#allocation3 + $0x90] sm:$0xff]  ;;  %v3740_v33 = vld [vmem:[#allocation3 + $0x88] sm:$0xff]  ;;  %v3739_v49 = vld [vmem:[#allocation3 + $0x80] sm:$0xff] }
0x1e77   :  { %5279 = vmatpush3.msra.mxu0 %v3638_v41  ;;  %3773 = vmatpush1.msra.mxu1 %v3749_v62  ;;  %v3738_v46 = vld [vmem:[#allocation3 + $0x78] sm:$0xff]  ;;  %v3737_v15 = vld [vmem:[#allocation3 + $0x70] sm:$0xff]  ;;  %v3736_v0 = vld [vmem:[#allocation3 + $0x68] sm:$0xff]  ;;  %p5634_p9 = pnand %p5633_p8, %p5627_p5 }
0x1e78   :  { %3774 = vmatprep.subr.mxu1 %v3748_v14  ;;  %v3735_v50 = vld [vmem:[#allocation3 + $0x60] sm:$0xff]  ;;  %v3734_v59 = vld [vmem:[#allocation3 + $0x58] sm:$0xff]  ;;  %v3733_v53 = vld [vmem:[#allocation3 + $0x50] sm:$0xff] }
0x1e79   :  { %3775 = vmatpush1.msra.mxu1 %v3747_v3  ;;  %v3732_v48 = vld [vmem:[#allocation3 + $0x48] sm:$0xff]  ;;  %v3731_v36 = vld [vmem:[#allocation3 + $0x40] sm:$0xff]  ;;  %v3730_v51 = vld [vmem:[#allocation3 + $0x38] sm:$0xff] }
0x1e7a   :  { %3776 = vmatprep.subr.mxu1 %v3746_v5  ;;  %v3729_v57 = vld [vmem:[#allocation3 + $0x30] sm:$0xff]  ;;  %v3728_v25 = vld [vmem:[#allocation3 + $0x28] sm:$0xff]  ;;  %v3727_v54 = vld [vmem:[#allocation3 + $0x20] sm:$0xff] }
0x1e7b   :  { %3777 = vmatpush1.msra.mxu1 %v3745_v37  ;;  %v3726_v18 = vld [vmem:[#allocation3 + $0x18] sm:$0xff]  ;;  %v3725_v23 = vld [vmem:[#allocation3 + $0x10] sm:$0xff]  ;;  %v3724_v28 = vld [vmem:[#allocation3 + $0x8] sm:$0xff] }
0x1e7c   :  { %3778 = vmatprep.subr.mxu1 %v3744_v19  ;;  %v3723_v20 = vld [vmem:[#allocation3] sm:$0xff]  ;;  %v3871_v26 = vld [vmem:[#allocation2 + $0x118] sm:$0xff]  ;;  %v3870_v29 = vld [vmem:[#allocation2 + $0x110] sm:$0xff] }
0x1e7d   :  { %3779 = vmatpush1.msra.mxu1 %v3743_v24  ;;  %v3872_v8 = vld [vmem:[#allocation2 + $0x120] sm:$0xff]  ;;  %v3855_v31 = vld [vmem:[#allocation2 + $0x98] sm:$0xff]  ;;  %v3854_v52 = vld [vmem:[#allocation2 + $0x90] sm:$0xff] }
0x1e7e   :  { %3780 = vmatprep.subr.mxu1 %v3742_v7  ;;  %v3856_v21 = vld [vmem:[#allocation2 + $0xa0] sm:$0xff]  ;;  %4595 = vmatprep.subr.mxu0 %v3872_v8  ;;  %v3869_v45 = vld [vmem:[#allocation2 + $0x108] sm:$0xff]  ;;  %v3867_v10 = vld [vmem:[#allocation2 + $0xf8] sm:$0xff] }
0x1e7f   :  { %3781 = vmatpush1.msra.mxu1 %v3741_v60  ;;  %v3853_v47 = vld [vmem:[#allocation2 + $0x88] sm:$0xff]  ;;  %v3868_v55 = vld [vmem:[#allocation2 + $0x100] sm:$0xff]  ;;  %v3851_v11 = vld [vmem:[#allocation2 + $0x78] sm:$0xff] }
0x1e80   :  { %3782 = vmatprep.subr.mxu1 %v3740_v33  ;;  %v3852_v43 = vld [vmem:[#allocation2 + $0x80] sm:$0xff]  ;;  %v3866_v35 = vld [vmem:[#allocation2 + $0xf0] sm:$0xff]  ;;  %v3865_v38 = vld [vmem:[#allocation2 + $0xe8] sm:$0xff] }
0x1e81   :  { %3783 = vmatpush1.msra.mxu1 %v3739_v49  ;;  %v3850_v12 = vld [vmem:[#allocation2 + $0x70] sm:$0xff]  ;;  %v3849_v2 = vld [vmem:[#allocation2 + $0x68] sm:$0xff]  ;;  %v3864_v42 = vld [vmem:[#allocation2 + $0xe0] sm:$0xff] }
0x1e82   :  { %3784 = vmatprep.subr.mxu1 %v3738_v46  ;;  %v3848_v22 = vld [vmem:[#allocation2 + $0x60] sm:$0xff]  ;;  %v3863_v4 = vld [vmem:[#allocation2 + $0xd8] sm:$0xff]  ;;  %v3862_v39 = vld [vmem:[#allocation2 + $0xd0] sm:$0xff] }
0x1e83   :  { %3785 = vmatpush1.msra.mxu1 %v3737_v15  ;;  %v3847_v30 = vld [vmem:[#allocation2 + $0x58] sm:$0xff]  ;;  %v3846_v6 = vld [vmem:[#allocation2 + $0x50] sm:$0xff]  ;;  %v3861_v16 = vld [vmem:[#allocation2 + $0xc8] sm:$0xff] }
0x1e84   :  { %3786 = vmatprep.subr.mxu1 %v3736_v0  ;;  %v3845_v13 = vld [vmem:[#allocation2 + $0x48] sm:$0xff]  ;;  %v4295_v34 = vld [vmem:[#allocation2 + $0x20] ss:$0 sm:$0xff]  ;;  %v3859_v61 = vld [vmem:[#allocation2 + $0xb8] sm:$0xff]  ;;  %v3758_v0 = vlaneseq }
0x1e85   :  { %3787 = vmatpush1.msra.mxu1 %v3735_v50  ;;  %v3860_v58 = vld [vmem:[#allocation2 + $0xc0] sm:$0xff]  ;;  %v3843_v17 = vld [vmem:[#allocation2 + $0x38] sm:$0xff]  ;;  %v3858_v63 = vld [vmem:[#allocation2 + $0xb0] sm:$0xff] }
0x1e86   :  { %3788 = vmatprep.subr.mxu1 %v3734_v59  ;;  %v3844_v40 = vld [vmem:[#allocation2 + $0x40] sm:$0xff]  ;;  %v3842_v41 = vld [vmem:[#allocation2 + $0x30] sm:$0xff]  ;;  %v3857_v62 = vld [vmem:[#allocation2 + $0xa8] sm:$0xff]  ;;  %v3759_v50 = vshrl.u32 %v3758_v0, 7 }
0x1e87   :  { %3789 = vmatpush1.msra.mxu1 %v3733_v53  ;;  %v3841_v14 = vld [vmem:[#allocation2 + $0x28] sm:$0xff]  ;;  %v3963_v5 = vld [vmem:[#allocation2 + $0x1a0] sm:$0xff]  ;;  %v3962_v37 = vld [vmem:[#allocation2 + $0x198] sm:$0xff] }
0x1e88   :  { %3790 = vmatprep.subr.mxu1 %v3732_v48  ;;  %v3964_v3 = vld [vmem:[#allocation2 + $0x1a8] sm:$0xff]  ;;  %v3961_v19 = vld [vmem:[#allocation2 + $0x190] sm:$0xff]  ;;  %v3959_v7 = vld [vmem:[#allocation2 + $0x180] sm:$0xff]  ;;  %v3760_v59 = vsub.s32 0, %v3759_v50  ;;  %v3764_v48 = vsub.s32 1, %v3759_v50 }
0x1e89   :  { %3791 = vmatpush1.msra.mxu1 %v3731_v36  ;;  %v3960_v24 = vld [vmem:[#allocation2 + $0x188] sm:$0xff]  ;;  %v3958_v60 = vld [vmem:[#allocation2 + $0x178] sm:$0xff]  ;;  %v3957_v33 = vld [vmem:[#allocation2 + $0x170] sm:$0xff] }
0x1e8a   :  { %3792 = vmatprep.subr.mxu1 %v3730_v51  ;;  %v3956_v49 = vld [vmem:[#allocation2 + $0x168] sm:$0xff]  ;;  %v3955_v46 = vld [vmem:[#allocation2 + $0x160] sm:$0xff]  ;;  %v3954_v15 = vld [vmem:[#allocation2 + $0x158] sm:$0xff] }
0x1e8b   :  { %3793 = vmatpush1.msra.mxu1 %v3729_v57  ;;  %v3756_v53 = vld [vmem:[#allocation3 + $0x100] ss:$8 sm:$0x3] }
0x1e8c   :  { %3794 = vmatprep.subr.mxu1 %v3728_v25  ;;  %v3761_v36 = vrot.slane %v3756_v53, %v3760_v59  ;;  %v3765_v51 = vrot.slane %v3756_v53, %v3764_v48  ;;  %v3951_v8 = vld [vmem:[#allocation2 + $0x140] sm:$0xff] }
0x1e8d   :  { %3795 = vmatpush1.msra.mxu1 %v3727_v54 }
0x1e8e   :  { %3796 = vmatprep.subr.mxu1 %v3726_v18 }
0x1e8f   :  { %3797 = vmatpush1.msra.mxu1 %v3725_v23 }
0x1e90   :  { %3798 = vmatprep.subr.mxu1 %v3724_v28  ;;  %v3953_v28 = vld [vmem:[#allocation2 + $0x150] sm:$0xff] }
0x1e91   :  { %3799 = vmatpush1.msra.mxu1 %v3723_v20  ;;  %v3952_v20 = vld [vmem:[#allocation2 + $0x148] sm:$0xff] }
0x1e92   :  { %5283 = vmatprep.subr.mxu1 %v5652_v9 }
0x1ee0   :  { %v3649_v27 = vpop.permute.xlu0 %3648 }
0x1ee1   :  { %5281 = vmatmul.mubr.msk.f32.vlgmr.msra.gmra.mxu0 %vm212_vm1, %v3649_v27 }
0x1ee2   :  { %4596 = vmatpush3.msra.mxu0 %v3856_v21  ;;  %v3950_v21 = vld [vmem:[#allocation2 + $0x138] sm:$0xff] }
0x1ee3   :  { %4597 = vmatprep.subr.mxu0 %v3871_v26  ;;  %v3949_v26 = vld [vmem:[#allocation2 + $0x130] sm:$0xff] }
0x1ee4   :  { %4598 = vmatpush3.msra.mxu0 %v3855_v31  ;;  %v4056_v31 = vld [vmem:[#allocation2 + $0x230] sm:$0xff] }
0x1ee5   :  { %4599 = vmatprep.subr.mxu0 %v3870_v29  ;;  %v4055_v29 = vld [vmem:[#allocation2 + $0x228] sm:$0xff] }
0x1ee6   :  { %4600 = vmatpush3.msra.mxu0 %v3854_v52  ;;  %v4054_v52 = vld [vmem:[#allocation2 + $0x220] sm:$0xff] }
0x1ee7   :  { %4601 = vmatprep.subr.mxu0 %v3869_v45  ;;  %v4053_v45 = vld [vmem:[#allocation2 + $0x218] sm:$0xff] }
0x1ee8   :  { %4602 = vmatpush3.msra.mxu0 %v3853_v47  ;;  %v4052_v47 = vld [vmem:[#allocation2 + $0x210] sm:$0xff] }
0x1ee9   :  { %4603 = vmatprep.subr.mxu0 %v3868_v55  ;;  %v4051_v55 = vld [vmem:[#allocation2 + $0x208] sm:$0xff] }
0x1eea   :  { %4604 = vmatpush3.msra.mxu0 %v3852_v43  ;;  %v4050_v43 = vld [vmem:[#allocation2 + $0x200] sm:$0xff] }
0x1eeb   :  { %4605 = vmatprep.subr.mxu0 %v3867_v10  ;;  %v4049_v10 = vld [vmem:[#allocation2 + $0x1f8] sm:$0xff] }
0x1eec   :  { %4606 = vmatpush3.msra.mxu0 %v3851_v11  ;;  %v4048_v11 = vld [vmem:[#allocation2 + $0x1f0] sm:$0xff] }
0x1eed   :  { %4607 = vmatprep.subr.mxu0 %v3866_v35  ;;  %v4047_v35 = vld [vmem:[#allocation2 + $0x1e8] sm:$0xff] }
0x1eee   :  { %4608 = vmatpush3.msra.mxu0 %v3850_v12  ;;  %v4046_v12 = vld [vmem:[#allocation2 + $0x1e0] sm:$0xff] }
0x1eef   :  { %4609 = vmatprep.subr.mxu0 %v3865_v38  ;;  %v4045_v38 = vld [vmem:[#allocation2 + $0x1d8] sm:$0xff] }
0x1ef0   :  { %4610 = vmatpush3.msra.mxu0 %v3849_v2  ;;  %v4044_v2 = vld [vmem:[#allocation2 + $0x1d0] sm:$0xff] }
0x1ef1   :  { %4611 = vmatprep.subr.mxu0 %v3864_v42 }
0x1ef2   :  { %4612 = vmatpush3.msra.mxu0 %v3848_v22  ;;  %v4297_v22 = vld [vmem:[#allocation2 + $0x128] ss:$0 sm:$0xff] }
0x1ef3   :  { %4613 = vmatprep.subr.mxu0 %v3863_v4 }
0x1ef4   :  { %4614 = vmatpush3.msra.mxu0 %v3847_v30 }
0x1ef5   :  { %4615 = vmatprep.subr.mxu0 %v3862_v39 }
0x1ef6   :  { %4616 = vmatpush3.msra.mxu0 %v3846_v6 }
0x1ef7   :  { %4617 = vmatprep.subr.mxu0 %v3861_v16  ;;  %v4043_v16 = vld [vmem:[#allocation2 + $0x1c8] sm:$0xff] }
0x1ef8   :  { %4618 = vmatpush3.msra.mxu0 %v3845_v13  ;;  %v4042_v13 = vld [vmem:[#allocation2 + $0x1c0] sm:$0xff] }
0x1ef9   :  { %4619 = vmatprep.subr.mxu0 %v3860_v58 }
0x1efa   :  { %4620 = vmatpush3.msra.mxu0 %v3844_v40  ;;  %v4299_v40 = vld [vmem:[#allocation2 + $0x238] ss:$0 sm:$0xff] }
0x1efb   :  { %4621 = vmatprep.subr.mxu0 %v3859_v61 }
0x1efc   :  { %4622 = vmatpush3.msra.mxu0 %v3843_v17 }
0x1efd   :  { %4623 = vmatprep.subr.mxu0 %v3858_v63 }
0x1efe   :  { %4624 = vmatpush3.msra.mxu0 %v3842_v41 }
0x1eff   :  { %4625 = vmatprep.subr.mxu0 %v3857_v62 }
0x1f00   :  { %4626 = vmatpush3.msra.mxu0 %v3841_v14 }
0x1f01   :  { %5318 = vmatprep.subr.mxu0 %v5652_v9 }
0x1fa1   :  { %v3718_v56 = vpop.f32.mrf.mxu0 }
0x1fa2   :  { %v3719_v32 = vadd.f32 %v4295_v34, %v3718_v56  ;;  %v4041_v34 = vld [vmem:[#allocation2 + $0x1b8] sm:$0xff]  ;;  %v4298_v56 = vld [vmem:[#allocation2 + $0x1b0] ss:$0 sm:$0xff] }
0x1fa3   :  { %v5282_v44 = vpop.f32.mrf.mxu0 }
0x1fa4   :  { %v3722_v1 = vmax.f32 %v3719_v32, 0.0 }
0x1fa6   :  { %3833 = vmatmul.mubr.f32.vlgmr.msra.gmra.mxu1 %v3722_v1 }
0x1fa7   :  { %5315 = vmatprep.mubr.msk.f32.mxu1 %vm5653_vm0, %v5652_v9  ;;  %5284 = vmatpush3.msra.mxu1 %v3964_v3 }
0x1fa8   :  { %5285 = vmatprep.subr.mxu1 %v5652_v9 }
0x1fa9   :  { %5286 = vmatpush3.msra.mxu1 %v3963_v5 }
0x1faa   :  { %5287 = vmatprep.subr.mxu1 %v5652_v9 }
0x1fab   :  { %5288 = vmatpush3.msra.mxu1 %v3962_v37 }
0x1fac   :  { %5289 = vmatprep.subr.mxu1 %v5652_v9 }
0x1fad   :  { %5290 = vmatpush3.msra.mxu1 %v3961_v19 }
0x1fae   :  { %5291 = vmatprep.subr.mxu1 %v5652_v9 }
0x1faf   :  { %5292 = vmatpush3.msra.mxu1 %v3960_v24 }
0x1fb0   :  { %5293 = vmatprep.subr.mxu1 %v5652_v9 }
0x1fb1   :  { %5294 = vmatpush3.msra.mxu1 %v3959_v7 }
0x1fb2   :  { %5295 = vmatprep.subr.mxu1 %v5652_v9 }
0x1fb3   :  { %5296 = vmatpush3.msra.mxu1 %v3958_v60 }
0x1fb4   :  { %5297 = vmatprep.subr.mxu1 %v5652_v9 }
0x1fb5   :  { %5298 = vmatpush3.msra.mxu1 %v3957_v33 }
0x1fb6   :  { %5299 = vmatprep.subr.mxu1 %v5652_v9 }
0x1fb7   :  { %5300 = vmatpush3.msra.mxu1 %v3956_v49 }
0x1fb8   :  { %5301 = vmatprep.subr.mxu1 %v5652_v9 }
0x1fb9   :  { %5302 = vmatpush3.msra.mxu1 %v3955_v46 }
0x1fba   :  { %5303 = vmatprep.subr.mxu1 %v5652_v9 }
0x1fbb   :  { %5304 = vmatpush3.msra.mxu1 %v3954_v15 }
0x1fbc   :  { %5305 = vmatprep.subr.mxu1 %v5652_v9 }
0x1fbd   :  { %5306 = vmatpush3.msra.mxu1 %v3953_v28 }
0x1fbe   :  { %5307 = vmatprep.subr.mxu1 %v5652_v9 }
0x1fbf   :  { %5308 = vmatpush3.msra.mxu1 %v3952_v20 }
0x1fc0   :  { %5309 = vmatprep.subr.mxu1 %v5652_v9 }
0x1fc1   :  { %5310 = vmatpush3.msra.mxu1 %v3951_v8 }
0x1fc2   :  { %5311 = vmatprep.subr.mxu1 %v5652_v9 }
0x1fc3   :  { %5312 = vmatpush3.msra.mxu1 %v3950_v21 }
0x1fc4   :  { %5313 = vmatprep.subr.mxu1 %v5652_v9 }
0x1fc5   :  { %5314 = vmatpush3.msra.mxu1 %v3949_v26 }
0x2066   :  { %v3834_v57 = vpop.f32.mrf.mxu1 }
0x2067   :  { %v3835_v25 = vadd.f32 %v3834_v57, %v3761_v36 }
0x2068   :  { %v3836_v27 = vpop.f32.mrf.mxu1 }
0x2069   :  { %v3837_v54 = vadd.f32 %v3836_v27, %v3765_v51  ;;  %v3839_v23 = vmax.f32 %v3835_v25, 0.0 }
0x206b   :  { %v3840_v18 = vmax.f32 %v3837_v54, 0.0 }
0x206d   :  { %3942 = vmatprep.mubr.f32.mxu0 %v3840_v18 }
0x206e   :  { %3943 = vmatmul.mubr.f32.vlgmr.msra.gmra.mxu0 %v3839_v23 }
0x206f   :  { %5350 = vmatprep.mubr.msk.f32.mxu0 %vm5653_vm0, %v5652_v9  ;;  %5319 = vmatpush3.msra.mxu0 %v4056_v31 }
0x2070   :  { %5320 = vmatprep.subr.mxu0 %v5652_v9 }
0x2071   :  { %5321 = vmatpush3.msra.mxu0 %v4055_v29 }
0x2072   :  { %5322 = vmatprep.subr.mxu0 %v5652_v9 }
0x2073   :  { %5323 = vmatpush3.msra.mxu0 %v4054_v52 }
0x2074   :  { %5324 = vmatprep.subr.mxu0 %v5652_v9 }
0x2075   :  { %5325 = vmatpush3.msra.mxu0 %v4053_v45 }
0x2076   :  { %5326 = vmatprep.subr.mxu0 %v5652_v9 }
0x2077   :  { %5327 = vmatpush3.msra.mxu0 %v4052_v47 }
0x2078   :  { %5328 = vmatprep.subr.mxu0 %v5652_v9 }
0x2079   :  { %5329 = vmatpush3.msra.mxu0 %v4051_v55 }
0x207a   :  { %5330 = vmatprep.subr.mxu0 %v5652_v9 }
0x207b   :  { %5331 = vmatpush3.msra.mxu0 %v4050_v43 }
0x207c   :  { %5332 = vmatprep.subr.mxu0 %v5652_v9 }
0x207d   :  { %5333 = vmatpush3.msra.mxu0 %v4049_v10 }
0x207e   :  { %5334 = vmatprep.subr.mxu0 %v5652_v9 }
0x207f   :  { %5335 = vmatpush3.msra.mxu0 %v4048_v11 }
0x2080   :  { %5336 = vmatprep.subr.mxu0 %v5652_v9 }
0x2081   :  { %5337 = vmatpush3.msra.mxu0 %v4047_v35 }
0x2082   :  { %5338 = vmatprep.subr.mxu0 %v5652_v9 }
0x2083   :  { %5339 = vmatpush3.msra.mxu0 %v4046_v12 }
0x2084   :  { %5340 = vmatprep.subr.mxu0 %v5652_v9 }
0x2085   :  { %5341 = vmatpush3.msra.mxu0 %v4045_v38 }
0x2086   :  { %5342 = vmatprep.subr.mxu0 %v5652_v9 }
0x2087   :  { %5343 = vmatpush3.msra.mxu0 %v4044_v2 }
0x2088   :  { %5344 = vmatprep.subr.mxu0 %v5652_v9 }
0x2089   :  { %5345 = vmatpush3.msra.mxu0 %v4043_v16 }
0x208a   :  { %5346 = vmatprep.subr.mxu0 %v5652_v9 }
0x208b   :  { %5347 = vmatpush3.msra.mxu0 %v4042_v13 }
0x208c   :  { %5348 = vmatprep.subr.mxu0 %v5652_v9 }
0x208d   :  { %5349 = vmatpush3.msra.mxu0 %v4041_v34 }
0x212e   :  { %v4627_v42 = vpop.f32.mrf.mxu0 }
0x2130   :  { %v4628_v4 = vpop.f32.mrf.mxu0 }
0x2131   :  { %v4629_v30 = vadd.f32 %v4628_v4, %v4627_v42 }
0x2133   :  { %v3945_v39 = vadd.f32 %v4629_v30, %v4297_v22 }
0x2135   :  { %v3948_v6 = vmax.f32 %v3945_v39, 0.0 }
0x2137   :  { %5316 = vmatmul.mubr.f32.vlgmr.msra.gmra.mxu1 %v3948_v6 }
0x21f7   :  { %v4036_v32 = vpop.f32.mrf.mxu1 }
0x21f8   :  { %v4037_v44 = vadd.f32 %v4298_v56, %v4036_v32 }
0x21f9   :  { %v5317_v1 = vpop.f32.mrf.mxu1 }
0x21fa   :  { %v4040_v58 = vmax.f32 %v4037_v44, 0.0 }
0x21fc   :  { %5351 = vmatmul.mubr.f32.vlgmr.msra.gmra.mxu0 %v4040_v58 }
0x22bc   :  { %v4128_v61 = vpop.f32.mrf.mxu0 }
0x22bd   :  { %v4129_v17 = vadd.f32 %v4299_v40, %v4128_v61 }
0x22be   :  { %v5352_v63 = vpop.f32.mrf.mxu0 }
0x22bf   :  { %4132 = vst [vmem:[#allocation5] sm:$0xff] %v4129_v17 }
0x22c0   :  { %5637 = shalt.err (!%p5634_p9)
}
0x22c1   :  { %4142 = dma.vmem_to_hbm [thread:$0]  %s4140_s22, 128, %s7307_s4, [#allocation6]  }
0x22c2   :  { %5650 = dma.done.wait [#allocation6], 128  }
0x22c3   :  { %5651 = vsyncadd [#allocation6], 4294967168 }
0x22c4   :  { %4146 = vsyncpa [#allocation6], 1 }
0x22c5   :  { %4147 = vsyncmov [#allocation4] }
0x22c8   :  { %s4148_s5 = vpop.sfrf %4147 }
0x22c9   :  { %p4300_p10 = scmp.ne.s32.totalorder %s4148_s5, 0 }
0x22cb   :  { %4152 = shalt.err (%p4300_p10)  }
0x22cc   :  { %4154 = vsyncmov [#allocation4 + $0x1] }
0x22cf   :  { %s4155_s6 = vpop.sfrf %4154 }
0x22d0   :  { %p4301_p11 = scmp.ne.s32.totalorder %s4155_s6, 0 }
0x22d2   :  { %4159 = shalt.err (%p4301_p11)  }

</bundles_post_ra>
